<compile_context>
chip_gen: v7x
topology: tpu7x:2x2x1
jax: 0.10.0
libtpu: 0.0.40
codegen_flags: <defaults>
</compile_context>

<pallas_src>
import functools

import jax
import jax.numpy as jnp
from jax.experimental import pallas as pl
from jax.experimental.pallas import tpu as pltpu


# ----------------------------------------------------------------------------
# Pair sets (identical to the PyTorch module)
# ----------------------------------------------------------------------------
HORI_SET = [(i, i + 1) for i in range(9) if i % 3 != 2]   # (0,1),(1,2),(3,4),(4,5),(6,7),(7,8)
VERT_SET = [(i, i + 3) for i in range(6)]                 # (0,3),(1,4),(2,5),(3,6),(4,7),(5,8)
EMB_DIM = 64                                              # replaced ef classifier width

# bias_pack row assignment
_B_FC1 = 0   # fused fc1 bias (cls_b fold + fc1_b, BN folded)     width H1
_B_FC2 = 1   # fen fc2 bias                                       width H1
_B_CLS = 2   # outsider classifier bias                           width OH
_B_AB1 = 3   # actor fc1 bias                                     width H2
_B_AB2 = 4   # actor fc2 bias                                     width action_num


# ----------------------------------------------------------------------------
# Fused Pallas kernel: trunk proj + folded classifier/fc1/BN + fen fc2 + actor head
# ----------------------------------------------------------------------------

def _fused_actor_kernel(pooled_img_ref, pooled_out_ref,
                        trunk_bd_ref, w1eff_ref, fen_fc2_w_ref,
                        trunk_out_ref, cls_out_w_ref,
                        a_w1_img_ref, a_w1_out_ref, a_w2_ref,
                        bias_ref, out_ref):
    h1 = w1eff_ref.shape[1]
    oh = cls_out_w_ref.shape[1]
    h2 = a_w1_img_ref.shape[1]
    na = out_ref.shape[1]
    bias = bias_ref[...]                                                   # (8, 128) f32

    # ---- image / fen path (synthetic trunk + folded classifier/fc1/BN) ----
    # feats[b, p*1280 + j] = tanh(pooled(b, piece p) @ trunk_img)[j]
    feats = jnp.tanh(
        jnp.dot(pooled_img_ref[...].astype(jnp.bfloat16), trunk_bd_ref[...],
                preferred_element_type=jnp.float32))                      # (B, 11520) f32
    # fc1 (pairwise-concat weights folded per piece, classifier + BN scale folded in)
    h = (jnp.dot(feats.astype(jnp.bfloat16), w1eff_ref[...],
                 preferred_element_type=jnp.float32)
         + bias[_B_FC1:_B_FC1 + 1, :h1])                                   # (B, H1)
    h = jnp.maximum(h, 0.0)                                                # ReLU; dropout=id
    fen_out = (jnp.dot(h, fen_fc2_w_ref[...], preferred_element_type=jnp.float32)
               + bias[_B_FC2:_B_FC2 + 1, :h1])                             # (B, H1)

    # ---- outsider path ----
    feats_o = jnp.tanh(
        jnp.dot(pooled_out_ref[...].astype(jnp.bfloat16), trunk_out_ref[...],
                preferred_element_type=jnp.float32))                      # (B, 1280)
    emb_o = (jnp.dot(feats_o.astype(jnp.bfloat16), cls_out_w_ref[...],
                     preferred_element_type=jnp.float32)
             + bias[_B_CLS:_B_CLS + 1, :oh])                               # (B, OH)

    # ---- actor head (fc1 split over [fen_out | outsider] -> no in-kernel concat) ----
    a1 = (jnp.dot(fen_out, a_w1_img_ref[...], preferred_element_type=jnp.float32)
          + jnp.dot(emb_o, a_w1_out_ref[...], preferred_element_type=jnp.float32)
          + bias[_B_AB1:_B_AB1 + 1, :h2])
    a1 = jnp.maximum(a1, 0.0)                                              # ReLU; dropout=id
    logits = (jnp.dot(a1, a_w2_ref[...], preferred_element_type=jnp.float32)
              + bias[_B_AB2:_B_AB2 + 1, :na])                              # (B, action_num)

    m = jnp.max(logits, axis=1, keepdims=True)
    e = jnp.exp(logits - m)
    out_ref[...] = e / jnp.sum(e, axis=1, keepdims=True)                   # exact softmax


_VMEM = pl.BlockSpec(memory_space=pltpu.MemorySpace.VMEM)


def fused_forward_pallas(pooled_img, pooled_out, p):
    b = pooled_img.shape[0]
    action_num = p["a_w2"].shape[1]
    return pl.pallas_call(
        _fused_actor_kernel,
        out_shape=jax.ShapeDtypeStruct((b, action_num), jnp.float32),
        in_specs=[_VMEM] * 11,
        out_specs=_VMEM,
    )(pooled_img, pooled_out,
      p["trunk_bd"], p["w1eff"], p["fen_fc2_w"],
      p["trunk_out"], p["cls_out_w"],
      p["a_w1_img"], p["a_w1_out"], p["a_w2"],
      p["bias_pack"])


# ----------------------------------------------------------------------------
# Model forward (matches actor_model.forward control flow)
# ----------------------------------------------------------------------------

def actor_model_forward(image, outsider_piece, params):
    """image: (B, 3, 288, 288) NCHW, outsider_piece: (B, 3, 96, 96) NCHW."""
    b = image.shape[0]
    # Per-fragment GAP: one fused reduce reads the image exactly once.
    pooled = image.reshape(b, 3, 3, 96, 3, 96).mean(axis=(3, 5))           # (B, C, 3r, 3c)
    # column = piece*3 + channel, piece = 3*row_group + col_group (PyTorch fragment order)
    pooled_img = jnp.transpose(pooled, (0, 2, 3, 1)).reshape(b, 27)        # (B, 27)
    pooled_out = outsider_piece.mean(axis=(2, 3))                          # (B, 3)
    return fused_forward_pallas(pooled_img, pooled_out, params)


# ----------------------------------------------------------------------------
# Deterministic parameter construction + algebraic packing for the fused kernel
# ----------------------------------------------------------------------------

def make_raw_params(key, hidden_size1, hidden_size2, outsider_hidden_size, action_num):
    """Parameters in (in, out) layout (y = x @ W + b), mirroring the PyTorch module."""
    ks = jax.random.split(key, 8)
    f32 = jnp.float32

    def w(k, shape, scale=0.02):
        return (scale * jax.random.normal(k, shape)).astype(f32)

    image_ef = {
        "trunk_proj": w(ks[0], (3, 1280), 0.5),
        "cls_w": w(ks[1], (1280, EMB_DIM)),
        "cls_b": jnp.zeros((1, EMB_DIM), f32),
    }
    fen_head = {
        "fc1_w": w(ks[2], (128 * 12, hidden_size1)),
        "fc1_b": jnp.zeros((1, hidden_size1), f32),
        "bn_gamma": jnp.ones((1, hidden_size1), f32),
        "bn_beta": jnp.zeros((1, hidden_size1), f32),
        "bn_mean": jnp.zeros((1, hidden_size1), f32),
        "bn_var": jnp.ones((1, hidden_size1), f32),
        "fc2_w": w(ks[3], (hidden_size1, hidden_size1)),   # fen_model(h1, h1)
        "fc2_b": jnp.zeros((1, hidden_size1), f32),
    }
    outsider_ef = {
        "trunk_proj": w(ks[4], (3, 1280), 0.5),
        "cls_w": w(ks[5], (1280, outsider_hidden_size)),
        "cls_b": jnp.zeros((1, outsider_hidden_size), f32),
    }
    actor_head = {
        "fc1_w": w(ks[6], (hidden_size1 + outsider_hidden_size, hidden_size2)),
        "fc1_b": jnp.zeros((1, hidden_size2), f32),
        "fc2_w": w(ks[7], (hidden_size2, action_num)),
        "fc2_b": jnp.zeros((1, action_num), f32),
    }
    return {"image_fen": {"ef": image_ef, "head": fen_head},
            "outsider_ef": outsider_ef, "actor_head": actor_head}


def pack_params(raw):
    """Algebraic packing (all folds exact, done in f32, weights then cast to bf16):
       - fc1 weight folded over the 24 hori/vert slots, grouped per piece,
       - image classifier (1280->64) folded into fc1  => one (9*1280, H1) weight,
       - BatchNorm1d(eval) scale folded into that weight's columns, shift into the bias,
       - synthetic image trunk packed block-diagonally (27, 9*1280),
       - actor fc1 split over [fen | outsider], all small biases packed into one tile."""
    img_ef = raw["image_fen"]["ef"]
    fen = raw["image_fen"]["head"]
    out_ef = raw["outsider_ef"]
    act = raw["actor_head"]
    h1 = fen["fc1_w"].shape[1]
    oh = out_ef["cls_w"].shape[1]
    h2 = act["fc1_w"].shape[1]
    na = act["fc2_w"].shape[1]
    f32 = jnp.float32

    # Fold fc1 over slots: slot s of the 1536-wide concat is emb[slot_pieces[s]].
    slot_pieces = [p for pair in (HORI_SET + VERT_SET) for p in pair]      # 24 slots
    w1_fold = jnp.zeros((9, EMB_DIM, h1), f32)
    for s, piece in enumerate(slot_pieces):
        w1_fold = w1_fold.at[piece].add(fen["fc1_w"][s * EMB_DIM:(s + 1) * EMB_DIM, :])
    w1_fold_sum = jnp.sum(w1_fold, axis=0)                                 # (64, H1)

    # Fold the (shared) image classifier into fc1:  W1eff_p = cls_w @ W1fold_p.
    w1eff = jnp.einsum("kd,pdh->pkh", img_ef["cls_w"], w1_fold).reshape(9 * 1280, h1)
    b_eff = fen["fc1_b"] + img_ef["cls_b"] @ w1_fold_sum                   # (1, H1)

    # BatchNorm1d(eval): fold scale into W1eff columns, shift (+b_eff) into the bias.
    bn_s = fen["bn_gamma"] * jax.lax.rsqrt(fen["bn_var"] + 1e-5)
    bn_t = fen["bn_beta"] - fen["bn_mean"] * bn_s
    fused_fc1_bias = b_eff * bn_s + bn_t                                   # (1, H1)
    w1eff_scaled = (w1eff * bn_s).astype(jnp.bfloat16)                     # (11520, H1)

    # Block-diagonal synthetic trunk: one matmul produces the piece-major feature slab.
    trunk_bd = jnp.kron(jnp.eye(9, dtype=f32), img_ef["trunk_proj"]).astype(jnp.bfloat16)

    # Pack all small bias/shift vectors into one (8, 128*) f32 tile (single DMA).
    ncols = 128 * ((max(h1, oh, h2, na) + 127) // 128)
    bias_pack = jnp.zeros((8, ncols), f32)
    bias_pack = bias_pack.at[_B_FC1, :h1].set(fused_fc1_bias[0])
    bias_pack = bias_pack.at[_B_FC2, :h1].set(fen["fc2_b"][0])
    bias_pack = bias_pack.at[_B_CLS, :oh].set(out_ef["cls_b"][0])
    bias_pack = bias_pack.at[_B_AB1, :h2].set(act["fc1_b"][0])
    bias_pack = bias_pack.at[_B_AB2, :na].set(act["fc2_b"][0])

    return {
        "trunk_bd": trunk_bd,                              # (27, 11520) bf16
        "w1eff": w1eff_scaled,                             # (11520, H1) bf16
        "fen_fc2_w": fen["fc2_w"],                         # (H1, H1) f32
        "trunk_out": out_ef["trunk_proj"].astype(jnp.bfloat16),   # (3, 1280) bf16
        "cls_out_w": out_ef["cls_w"].astype(jnp.bfloat16),        # (1280, OH) bf16
        "a_w1_img": act["fc1_w"][:h1, :],                  # (H1, H2) f32
        "a_w1_out": act["fc1_w"][h1:, :],                  # (OH, H2) f32
        "a_w2": act["fc2_w"],                              # (H2, A) f32
        "bias_pack": bias_pack,                            # (8, 128) f32
    }


# ----------------------------------------------------------------------------
# Pure-JAX reference (faithful to the module structure, synthetic trunk stand-in)
# ----------------------------------------------------------------------------

def reference_forward(image, outsider_piece, raw):
    img_ef = raw["image_fen"]["ef"]
    fen = raw["image_fen"]["head"]
    out_ef = raw["outsider_ef"]
    act = raw["actor_head"]

    def ef_img(frag):   # synthetic efficientnet stand-in: GAP -> 3x1280 -> tanh -> cls
        pooled = frag.mean(axis=(2, 3))
        feats = jnp.tanh(pooled @ img_ef["trunk_proj"])
        return feats @ img_ef["cls_w"] + img_ef["cls_b"]

    frags = [image[:, :, 96 * r:96 * (r + 1), 96 * c:96 * (c + 1)]
             for r in range(3) for c in range(3)]
    embs = [ef_img(f) for f in frags]
    hori = jnp.concatenate([jnp.concatenate([embs[a], embs[b]], -1) for a, b in HORI_SET], -1)
    vert = jnp.concatenate([jnp.concatenate([embs[a], embs[b]], -1) for a, b in VERT_SET], -1)
    feat = jnp.concatenate([hori, vert], -1)                               # (B, 1536)
    x = feat @ fen["fc1_w"] + fen["fc1_b"]
    x = (x - fen["bn_mean"]) * jax.lax.rsqrt(fen["bn_var"] + 1e-5) * fen["bn_gamma"] + fen["bn_beta"]
    x = jnp.maximum(x, 0.0)
    image_input = x @ fen["fc2_w"] + fen["fc2_b"]

    pooled_o = outsider_piece.mean(axis=(2, 3))
    feats_o = jnp.tanh(pooled_o @ out_ef["trunk_proj"])
    outsider_input = feats_o @ out_ef["cls_w"] + out_ef["cls_b"]

    f = jnp.concatenate([image_input, outsider_input], axis=1)
    a1 = jnp.maximum(f @ act["fc1_w"] + act["fc1_b"], 0.0)
    logits = a1 @ act["fc2_w"] + act["fc2_b"]
    return jax.nn.softmax(logits, axis=1)


# ----------------------------------------------------------------------------
# Main
# ----------------------------------------------------------------------------

if __name__ == "__main__":
    B = 2
    HIDDEN_SIZE1 = 32
    HIDDEN_SIZE2 = 32
    OUTSIDER_HIDDEN = 16
    ACTION_NUM = 8

    key = jax.random.PRNGKey(0)
    k_img, k_out, k_par = jax.random.split(key, 3)

    # NCHW inputs, consistent with PyTorch.
    image = jax.random.uniform(k_img, (B, 3, 288, 288), dtype=jnp.float32)
    outsider_piece = jax.random.uniform(k_out, (B, 3, 96, 96), dtype=jnp.float32)

    raw_params = make_raw_params(k_par, HIDDEN_SIZE1, HIDDEN_SIZE2,
                                 OUTSIDER_HIDDEN, ACTION_NUM)
    params = pack_params(raw_params)

    fwd = jax.jit(functools.partial(actor_model_forward, params=params))
    out = jax.block_until_ready(fwd(image, outsider_piece))

    assert out.shape == (B, ACTION_NUM)
    # exact-division softmax: rows sum to 1 to f32 precision
    assert bool(jnp.all(jnp.abs(jnp.sum(out, axis=1) - 1.0) < 1e-3))
    # validate the classifier/fc1/BN folding against the unfolded reference
    # (bf16 weights in-kernel => small deviation from the f32 reference)
    ref = reference_forward(image, outsider_piece, raw_params)
    assert bool(jnp.max(jnp.abs(out - ref)) < 5e-3)
    print("KERNEL_OK")
</pallas_src>

<mosaic_0001>
module attributes {stable_mosaic.version = 11 : i64} {
  func.func @_fused_actor_kernel(%arg0: memref<2x27xf32, #tpu.memory_space<vmem>>, %arg1: memref<2x3xf32, #tpu.memory_space<vmem>>, %arg2: memref<27x11520xbf16, #tpu.memory_space<vmem>>, %arg3: memref<11520x32xbf16, #tpu.memory_space<vmem>>, %arg4: memref<32x32xf32, #tpu.memory_space<vmem>>, %arg5: memref<3x1280xbf16, #tpu.memory_space<vmem>>, %arg6: memref<1280x16xbf16, #tpu.memory_space<vmem>>, %arg7: memref<32x32xf32, #tpu.memory_space<vmem>>, %arg8: memref<16x32xf32, #tpu.memory_space<vmem>>, %arg9: memref<32x8xf32, #tpu.memory_space<vmem>>, %arg10: memref<8x128xf32, #tpu.memory_space<vmem>>, %arg11: memref<2x8xf32, #tpu.memory_space<vmem>>) attributes {dimension_semantics = [], scalar_prefetch = 0 : i64, scratch_operands = 0 : i64, tpu.core_type = #tpu.core_type<tc>} {
    %c0 = arith.constant 0 : index
    %c0_0 = arith.constant 0 : index
    %0 = vector.load %arg10[%c0, %c0_0] : memref<8x128xf32, #tpu.memory_space<vmem>>, vector<8x128xf32>
    %c0_1 = arith.constant 0 : index
    %c0_2 = arith.constant 0 : index
    %1 = vector.load %arg0[%c0_1, %c0_2] : memref<2x27xf32, #tpu.memory_space<vmem>>, vector<2x27xf32>
    %2 = arith.truncf %1 : vector<2x27xf32> to vector<2x27xbf16>
    %c0_3 = arith.constant 0 : index
    %c0_4 = arith.constant 0 : index
    %3 = vector.load %arg2[%c0_3, %c0_4] : memref<27x11520xbf16, #tpu.memory_space<vmem>>, vector<27x11520xbf16>
    %cst = arith.constant dense<0.000000e+00> : vector<2x11520xf32>
    %4 = tpu.matmul %2, %3, %cst {dimension_numbers = #tpu.dot_dimension_numbers<[1], [0], [0], [1], [0, 0, 1, 1], [], []>} : vector<2x27xbf16>, vector<27x11520xbf16>, vector<2x11520xf32> -> vector<2x11520xf32>
    %5 = math.tanh %4 : vector<2x11520xf32>
    %6 = arith.truncf %5 : vector<2x11520xf32> to vector<2x11520xbf16>
    %c0_5 = arith.constant 0 : index
    %c0_6 = arith.constant 0 : index
    %7 = vector.load %arg3[%c0_5, %c0_6] : memref<11520x32xbf16, #tpu.memory_space<vmem>>, vector<11520x32xbf16>
    %cst_7 = arith.constant dense<0.000000e+00> : vector<2x32xf32>
    %8 = tpu.matmul %6, %7, %cst_7 {dimension_numbers = #tpu.dot_dimension_numbers<[1], [0], [0], [1], [0, 0, 1, 1], [], []>} : vector<2x11520xbf16>, vector<11520x32xbf16>, vector<2x32xf32> -> vector<2x32xf32>
    %9 = vector.extract_strided_slice %0 {offsets = [0, 0], sizes = [1, 32], strides = [1, 1]} : vector<8x128xf32> to vector<1x32xf32>
    %10 = vector.broadcast %9 : vector<1x32xf32> to vector<2x32xf32>
    %11 = arith.addf %8, %10 : vector<2x32xf32>
    %cst_8 = arith.constant 0.000000e+00 : f32
    %12 = vector.broadcast %cst_8 : f32 to vector<2x32xf32>
    %13 = arith.maximumf %11, %12 : vector<2x32xf32>
    %c0_9 = arith.constant 0 : index
    %c0_10 = arith.constant 0 : index
    %14 = vector.load %arg4[%c0_9, %c0_10] : memref<32x32xf32, #tpu.memory_space<vmem>>, vector<32x32xf32>
    %cst_11 = arith.constant dense<0.000000e+00> : vector<2x32xf32>
    %15 = tpu.matmul %13, %14, %cst_11 {dimension_numbers = #tpu.dot_dimension_numbers<[1], [0], [0], [1], [0, 0, 1, 1], [], []>} : vector<2x32xf32>, vector<32x32xf32>, vector<2x32xf32> -> vector<2x32xf32>
    %16 = vector.extract_strided_slice %0 {offsets = [1, 0], sizes = [1, 32], strides = [1, 1]} : vector<8x128xf32> to vector<1x32xf32>
    %17 = vector.broadcast %16 : vector<1x32xf32> to vector<2x32xf32>
    %18 = arith.addf %15, %17 : vector<2x32xf32>
    %c0_12 = arith.constant 0 : index
    %c0_13 = arith.constant 0 : index
    %19 = vector.load %arg1[%c0_12, %c0_13] : memref<2x3xf32, #tpu.memory_space<vmem>>, vector<2x3xf32>
    %20 = arith.truncf %19 : vector<2x3xf32> to vector<2x3xbf16>
    %c0_14 = arith.constant 0 : index
    %c0_15 = arith.constant 0 : index
    %21 = vector.load %arg5[%c0_14, %c0_15] : memref<3x1280xbf16, #tpu.memory_space<vmem>>, vector<3x1280xbf16>
    %cst_16 = arith.constant dense<0.000000e+00> : vector<2x1280xf32>
    %22 = tpu.matmul %20, %21, %cst_16 {dimension_numbers = #tpu.dot_dimension_numbers<[1], [0], [0], [1], [0, 0, 1, 1], [], []>} : vector<2x3xbf16>, vector<3x1280xbf16>, vector<2x1280xf32> -> vector<2x1280xf32>
    %23 = math.tanh %22 : vector<2x1280xf32>
    %24 = arith.truncf %23 : vector<2x1280xf32> to vector<2x1280xbf16>
    %c0_17 = arith.constant 0 : index
    %c0_18 = arith.constant 0 : index
    %25 = vector.load %arg6[%c0_17, %c0_18] : memref<1280x16xbf16, #tpu.memory_space<vmem>>, vector<1280x16xbf16>
    %cst_19 = arith.constant dense<0.000000e+00> : vector<2x16xf32>
    %26 = tpu.matmul %24, %25, %cst_19 {dimension_numbers = #tpu.dot_dimension_numbers<[1], [0], [0], [1], [0, 0, 1, 1], [], []>} : vector<2x1280xbf16>, vector<1280x16xbf16>, vector<2x16xf32> -> vector<2x16xf32>
    %27 = vector.extract_strided_slice %0 {offsets = [2, 0], sizes = [1, 16], strides = [1, 1]} : vector<8x128xf32> to vector<1x16xf32>
    %28 = vector.broadcast %27 : vector<1x16xf32> to vector<2x16xf32>
    %29 = arith.addf %26, %28 : vector<2x16xf32>
    %c0_20 = arith.constant 0 : index
    %c0_21 = arith.constant 0 : index
    %30 = vector.load %arg7[%c0_20, %c0_21] : memref<32x32xf32, #tpu.memory_space<vmem>>, vector<32x32xf32>
    %cst_22 = arith.constant dense<0.000000e+00> : vector<2x32xf32>
    %31 = tpu.matmul %18, %30, %cst_22 {dimension_numbers = #tpu.dot_dimension_numbers<[1], [0], [0], [1], [0, 0, 1, 1], [], []>} : vector<2x32xf32>, vector<32x32xf32>, vector<2x32xf32> -> vector<2x32xf32>
    %c0_23 = arith.constant 0 : index
    %c0_24 = arith.constant 0 : index
    %32 = vector.load %arg8[%c0_23, %c0_24] : memref<16x32xf32, #tpu.memory_space<vmem>>, vector<16x32xf32>
    %cst_25 = arith.constant dense<0.000000e+00> : vector<2x32xf32>
    %33 = tpu.matmul %29, %32, %cst_25 {dimension_numbers = #tpu.dot_dimension_numbers<[1], [0], [0], [1], [0, 0, 1, 1], [], []>} : vector<2x16xf32>, vector<16x32xf32>, vector<2x32xf32> -> vector<2x32xf32>
    %34 = arith.addf %31, %33 : vector<2x32xf32>
    %35 = vector.extract_strided_slice %0 {offsets = [3, 0], sizes = [1, 32], strides = [1, 1]} : vector<8x128xf32> to vector<1x32xf32>
    %36 = vector.broadcast %35 : vector<1x32xf32> to vector<2x32xf32>
    %37 = arith.addf %34, %36 : vector<2x32xf32>
    %cst_26 = arith.constant 0.000000e+00 : f32
    %38 = vector.broadcast %cst_26 : f32 to vector<2x32xf32>
    %39 = arith.maximumf %37, %38 : vector<2x32xf32>
    %c0_27 = arith.constant 0 : index
    %c0_28 = arith.constant 0 : index
    %40 = vector.load %arg9[%c0_27, %c0_28] : memref<32x8xf32, #tpu.memory_space<vmem>>, vector<32x8xf32>
    %cst_29 = arith.constant dense<0.000000e+00> : vector<2x8xf32>
    %41 = tpu.matmul %39, %40, %cst_29 {dimension_numbers = #tpu.dot_dimension_numbers<[1], [0], [0], [1], [0, 0, 1, 1], [], []>} : vector<2x32xf32>, vector<32x8xf32>, vector<2x8xf32> -> vector<2x8xf32>
    %42 = vector.extract_strided_slice %0 {offsets = [4, 0], sizes = [1, 8], strides = [1, 1]} : vector<8x128xf32> to vector<1x8xf32>
    %43 = vector.broadcast %42 : vector<1x8xf32> to vector<2x8xf32>
    %44 = arith.addf %41, %43 : vector<2x8xf32>
    %cst_30 = arith.constant dense<0xFF800000> : vector<2xf32>
    %45 = vector.multi_reduction <maximumf>, %44, %cst_30 [1] : vector<2x8xf32> to vector<2xf32>
    %46 = vector.shape_cast %45 : vector<2xf32> to vector<2x1xf32>
    %47 = vector.broadcast %46 : vector<2x1xf32> to vector<2x8xf32>
    %48 = arith.subf %44, %47 : vector<2x8xf32>
    %49 = math.exp %48 : vector<2x8xf32>
    %cst_31 = arith.constant dense<0.000000e+00> : vector<2xf32>
    %50 = vector.multi_reduction <add>, %49, %cst_31 [1] : vector<2x8xf32> to vector<2xf32>
    %51 = vector.shape_cast %50 : vector<2xf32> to vector<2x1xf32>
    %52 = vector.broadcast %51 : vector<2x1xf32> to vector<2x8xf32>
    %53 = arith.divf %49, %52 : vector<2x8xf32>
    %c0_32 = arith.constant 0 : index
    %c0_33 = arith.constant 0 : index
    %54 = vector.load %arg11[%c0_32, %c0_33] : memref<2x8xf32, #tpu.memory_space<vmem>>, vector<2x8xf32>
    tpu.vector_store %arg11[%c0_32, %c0_33], %53 {strides = array<i32>} : memref<2x8xf32, #tpu.memory_space<vmem>>, vector<2x8xf32>,
    return
  }
}

</mosaic_0001>

<bundles_post_ra>
// kernel: actor_model_forward.1
= control target key start
LH: loop header
LB: loop body
LE: loop exit
PB: predicated region body
PF: predicated region fallthrough
CT: control target
= control target key end

     0   :  { %vm1037_vm0 = vcmask 1044480   ;;  %vm1038_vm1 = vcmask 1045504   ;;  %v19648_v4 = vmov 65535   ;;  %v19649_v6 = vmov 0   ;;  %s19636_s0 = inlined_call_operand.vmem [shape: f32[2,27], index: 0, kind: input, shape index: {}]   ;;  %s19637_s1 = inlined_call_operand.vmem [shape: f32[2,3], index: 1, kind: input, shape index: {}]   ;;  %s19638_s2 = inlined_call_operand.vmem [shape: bf16[27,11520], index: 2, kind: input, shape index: {}]   ;;  %s19639_s3 = inlined_call_operand.vmem [shape: bf16[11520,32], index: 3, kind: input, shape index: {}]   ;;  %s19640_s4 = inlined_call_operand.vmem [shape: f32[32,32], index: 4, kind: input, shape index: {}]   ;;  %s19641_s5 = inlined_call_operand.vmem [shape: bf16[3,1280], index: 5, kind: input, shape index: {}]   ;;  %s19642_s6 = inlined_call_operand.vmem [shape: bf16[1280,16], index: 6, kind: input, shape index: {}]   ;;  %s19643_s7 = inlined_call_operand.vmem [shape: f32[32,32], index: 7, kind: input, shape index: {}]   ;;  %s19644_s8 = inlined_call_operand.vmem [shape: f32[16,32], index: 8, kind: input, shape index: {}]   ;;  %s19645_s9 = inlined_call_operand.vmem [shape: f32[32,8], index: 9, kind: input, shape index: {}]   ;;  %s19646_s10 = inlined_call_operand.vmem [shape: f32[8,128], index: 10, kind: input, shape index: {}]   ;;  %s19647_s11 = inlined_call_operand.hbm [shape: f32[2,8], index: 11, kind: output, shape index: {}]  }
   0x1   :  { %v14628_v0 = vld [vmem:[%s19638_s2 + $0x4] ss:$360 sps:$4 sm:$0xff]   ;;  %v14632_v2 = vld [vmem:[%s19638_s2] ss:$360 sps:$4 sm:$0xff]   ;;  %v1039_v5 = vsel %vm1037_vm0, 4294967295, %v19648_v4  ;;  %1343 = vmatprep.mubr.bf16.mxu0 %v19649_v6  ;;  %1384 = vmatprep.mubr.bf16.mxu1 %v19649_v6  ;;  %vm1033_vm2 = vcmask 220160  }
   0x2   :  { %v14630_v1 = vld [vmem:[%s19638_s2 + $0xc] ss:$360 sps:$4 sm:$0xff]   ;;  %1311 = vmatprep.subr.bf16.mxu0 %v14628_v0  ;;  %v14633_v3 = vld [vmem:[%s19638_s2 + $0x8] ss:$360 sps:$4 sm:$0xff]   ;;  %v16013_v8 = vsel %vm1038_vm1, %v1039_v5, 0 }
   0x3   :  { %1352 = vmatprep.subr.bf16.mxu1 %v14630_v1  ;;  %v14634_v7 = vld [vmem:[%s19638_s2 + $0x2d4] ss:$360 sps:$4 sm:$0x3f]   ;;  %1312 = vmatpush1.bf16.msra.mxu0 %v14632_v2  ;;  %v14638_v11 = vld [vmem:[%s19638_s2 + $0x2d0] ss:$360 sps:$4 sm:$0x3f]  }
   0x4   :  { %1353 = vmatpush1.bf16.msra.mxu1 %v14633_v3  ;;  %v14636_v9 = vld [vmem:[%s19638_s2 + $0x2dc] ss:$360 sps:$4 sm:$0x3f]   ;;  %v1045_v10 = vand.u32 %v14634_v7, %v16013_v8  ;;  %v14639_v12 = vld [vmem:[%s19638_s2 + $0x2d8] ss:$360 sps:$4 sm:$0x3f]   ;;  %v1042_v15 = vand.u32 %v14638_v11, %v16013_v8 }
   0x5   :  { %v1051_v13 = vand.u32 %v14636_v9, %v16013_v8  ;;  %v41_v14 = vld [vmem:[%s19636_s0] sm:$0x3]  ;;  %v1048_v16 = vand.u32 %v14639_v12, %v16013_v8  ;;  %v14640_v17 = vld [vmem:[%s19638_s2 + $0x10] ss:$360 sps:$4 sm:$0xff]   ;;  %v14642_v18 = vld [vmem:[%s19638_s2 + $0x14] ss:$360 sps:$4 sm:$0xff]  }
   0x6   :  { %1313 = vmatprep.subr.bf16.mxu0 %v1045_v10  ;;  %v16038_v19 = vpack.c.bf16 %v41_v14, %v41_v14  ;;  %v14643_v20 = vld [vmem:[%s19638_s2 + $0x2e0] ss:$360 sps:$4 sm:$0x3f]   ;;  %v14645_v21 = vld [vmem:[%s19638_s2 + $0x2e4] ss:$360 sps:$4 sm:$0x3f]  }
   0x7   :  { %1354 = vmatprep.subr.bf16.mxu1 %v1051_v13  ;;  %1314 = vmatpush1.bf16.msra.mxu0 %v1042_v15  ;;  %v14646_v22 = vld [vmem:[%s19638_s2 + $0x18] ss:$360 sps:$4 sm:$0xff]   ;;  %v14648_v23 = vld [vmem:[%s19638_s2 + $0x1c] ss:$360 sps:$4 sm:$0xff]   ;;  %v1057_v24 = vand.u32 %v14645_v21, %v16013_v8  ;;  %v1054_v26 = vand.u32 %v14643_v20, %v16013_v8  ;;  %v14660_v33 = vld [vmem:[%s19638_s2 + $0x2c] ss:$360 sps:$4 sm:$0xff]  }
   0x8   :  { %1355 = vmatpush1.bf16.msra.mxu1 %v1048_v16  ;;  %1393 = vmatprep.subr.bf16.mxu0 %v14642_v18  ;;  %v14652_v25 = vld [vmem:[%s19638_s2 + $0x2e8] ss:$360 sps:$4 sm:$0x3f]   ;;  %v14654_v27 = vld [vmem:[%s19638_s2 + $0x2ec] ss:$360 sps:$4 sm:$0x3f]  }
   0x9   :  { %1434 = vmatprep.subr.bf16.mxu1 %v14648_v23  ;;  %v14651_v28 = vld [vmem:[%s19638_s2 + $0x24] ss:$360 sps:$4 sm:$0xff]   ;;  %v1060_v29 = vand.u32 %v14652_v25, %v16013_v8  ;;  %v14657_v30 = vld [vmem:[%s19638_s2 + $0x2f4] ss:$360 sps:$4 sm:$0x3f]   ;;  %v1063_v32 = vand.u32 %v14654_v27, %v16013_v8 }
   0xa   :  { %12587 = vmatmul.mubr.msk.bf16.vlgmr.msra.gmra.mrb[0].mxu0 %vm1033_vm2, %v16038_v19  ;;  %v14649_v31 = vld [vmem:[%s19638_s2 + $0x20] ss:$360 sps:$4 sm:$0xff]   ;;  %v14655_v34 = vld [vmem:[%s19638_s2 + $0x2f0] ss:$360 sps:$4 sm:$0x3f]   ;;  %v1069_v36 = vand.u32 %v14657_v30, %v16013_v8 }
   0xb   :  { %12588 = vmatmul.mubr.msk.bf16.vlgmr.msra.gmra.mrb[0].mxu1 %vm1033_vm2, %v16038_v19  ;;  %1394 = vmatpush1.bf16.msra.mxu0 %v14640_v17  ;;  %v14658_v35 = vld [vmem:[%s19638_s2 + $0x28] ss:$360 sps:$4 sm:$0xff]   ;;  %v14664_v37 = vld [vmem:[%s19638_s2 + $0x2f8] ss:$360 sps:$4 sm:$0x3f]   ;;  %v1066_v40 = vand.u32 %v14655_v34, %v16013_v8 }
   0xc   :  { %1395 = vmatprep.subr.bf16.mxu0 %v1057_v24  ;;  %1435 = vmatpush1.bf16.msra.mxu1 %v14646_v22  ;;  %v14666_v38 = vld [vmem:[%s19638_s2 + $0x2fc] ss:$360 sps:$4 sm:$0x3f]   ;;  %v1072_v42 = vand.u32 %v14664_v37, %v16013_v8  ;;  %v14661_v44 = vld [vmem:[%s19638_s2 + $0x30] ss:$360 sps:$4 sm:$0xff]  }
   0xd   :  { %1425 = vmatprep.mubr.bf16.mxu0 %v19649_v6  ;;  %1466 = vmatprep.mubr.bf16.mxu1 %v19649_v6  ;;  %v1075_v39 = vand.u32 %v14666_v38, %v16013_v8  ;;  %v14663_v41 = vld [vmem:[%s19638_s2 + $0x34] ss:$360 sps:$4 sm:$0xff]   ;;  %v14669_v43 = vld [vmem:[%s19638_s2 + $0x304] ss:$360 sps:$4 sm:$0x3f]  }
   0xe   :  { %1436 = vmatprep.subr.bf16.mxu1 %v1063_v32  ;;  %v14672_v45 = vld [vmem:[%s19638_s2 + $0x3c] ss:$360 sps:$4 sm:$0xff]   ;;  %v14678_v46 = vld [vmem:[%s19638_s2 + $0x30c] ss:$360 sps:$4 sm:$0x3f]   ;;  %v1081_v49 = vand.u32 %v14669_v43, %v16013_v8 }
   0xf   :  { %1396 = vmatpush1.bf16.msra.mxu0 %v1054_v26  ;;  %v14667_v47 = vld [vmem:[%s19638_s2 + $0x300] ss:$360 sps:$4 sm:$0x3f]   ;;  %v1087_v51 = vand.u32 %v14678_v46, %v16013_v8  ;;  %v14675_v53 = vld [vmem:[%s19638_s2 + $0x44] ss:$360 sps:$4 sm:$0xff]  }
  0x10   :  { %1475 = vmatprep.subr.bf16.mxu0 %v14651_v28  ;;  %1437 = vmatpush1.bf16.msra.mxu1 %v1060_v29  ;;  %v14670_v48 = vld [vmem:[%s19638_s2 + $0x38] ss:$360 sps:$4 sm:$0xff]   ;;  %v14676_v50 = vld [vmem:[%s19638_s2 + $0x308] ss:$360 sps:$4 sm:$0x3f]   ;;  %v1078_v52 = vand.u32 %v14667_v47, %v16013_v8 }
  0x11   :  { %1516 = vmatprep.subr.bf16.mxu1 %v14660_v33  ;;  %v1084_v54 = vand.u32 %v14676_v50, %v16013_v8  ;;  %v14681_v55 = vld [vmem:[%s19638_s2 + $0x314] ss:$360 sps:$4 sm:$0x3f]   ;;  %v14673_v58 = vld [vmem:[%s19638_s2 + $0x40] ss:$360 sps:$4 sm:$0xff]  }
  0x12   :  { %12589 = vmatmul.mubr.msk.bf16.vlgmr.msra.gmra.mrb[4].mxu0 %vm1033_vm2, %v16038_v19  ;;  %v14684_v56 = vld [vmem:[%s19638_s2 + $0x4c] ss:$360 sps:$4 sm:$0xff]   ;;  %v14690_v57 = vld [vmem:[%s19638_s2 + $0x31c] ss:$360 sps:$4 sm:$0x3f]   ;;  %v1093_v61 = vand.u32 %v14681_v55, %v16013_v8 }
  0x13   :  { %1476 = vmatpush1.bf16.msra.mxu0 %v14649_v31  ;;  %12590 = vmatmul.mubr.msk.bf16.vlgmr.msra.gmra.mrb[4].mxu1 %vm1033_vm2, %v16038_v19  ;;  %v14679_v59 = vld [vmem:[%s19638_s2 + $0x310] ss:$360 sps:$4 sm:$0x3f]   ;;  %v1099_v63 = vand.u32 %v14690_v57, %v16013_v8  ;;  %v14687_v1 = vld [vmem:[%s19638_s2 + $0x54] ss:$360 sps:$4 sm:$0xff]  }
  0x14   :  { %1477 = vmatprep.subr.bf16.mxu0 %v1069_v36  ;;  %1517 = vmatpush1.bf16.msra.mxu1 %v14658_v35  ;;  %v14682_v60 = vld [vmem:[%s19638_s2 + $0x48] ss:$360 sps:$4 sm:$0xff]   ;;  %v14688_v62 = vld [vmem:[%s19638_s2 + $0x318] ss:$360 sps:$4 sm:$0x3f]   ;;  %v1090_v0 = vand.u32 %v14679_v59, %v16013_v8 }
  0x15   :  { %1507 = vmatprep.mubr.bf16.mxu0 %v19649_v6  ;;  %1518 = vmatprep.subr.bf16.mxu1 %v1075_v39  ;;  %v1096_v2 = vand.u32 %v14688_v62, %v16013_v8  ;;  %v14693_v3 = vld [vmem:[%s19638_s2 + $0x324] ss:$360 sps:$4 sm:$0x3f]   ;;  %v14685_v9 = vld [vmem:[%s19638_s2 + $0x50] ss:$360 sps:$4 sm:$0xff]  }
  0x16   :  { %1548 = vmatprep.mubr.bf16.mxu1 %v19649_v6  ;;  %v14696_v5 = vld [vmem:[%s19638_s2 + $0x5c] ss:$360 sps:$4 sm:$0xff]   ;;  %v14702_v7 = vld [vmem:[%s19638_s2 + $0x32c] ss:$360 sps:$4 sm:$0x3f]   ;;  %v1105_v11 = vand.u32 %v14693_v3, %v16013_v8 }
  0x17   :  { %1478 = vmatpush1.bf16.msra.mxu0 %v1066_v40  ;;  %v14691_v10 = vld [vmem:[%s19638_s2 + $0x320] ss:$360 sps:$4 sm:$0x3f]   ;;  %v1111_v14 = vand.u32 %v14702_v7, %v16013_v8  ;;  %v14699_v16 = vld [vmem:[%s19638_s2 + $0x64] ss:$360 sps:$4 sm:$0xff]  }
  0x18   :  { %1557 = vmatprep.subr.bf16.mxu0 %v14663_v41  ;;  %1519 = vmatpush1.bf16.msra.mxu1 %v1072_v42  ;;  %v14694_v12 = vld [vmem:[%s19638_s2 + $0x58] ss:$360 sps:$4 sm:$0xff]   ;;  %v14700_v13 = vld [vmem:[%s19638_s2 + $0x328] ss:$360 sps:$4 sm:$0x3f]   ;;  %v1102_v15 = vand.u32 %v14691_v10, %v16013_v8 }
  0x19   :  { %1598 = vmatprep.subr.bf16.mxu1 %v14672_v45  ;;  %v14705_v17 = vld [vmem:[%s19638_s2 + $0x334] ss:$360 sps:$4 sm:$0x3f]   ;;  %v1108_v18 = vand.u32 %v14700_v13, %v16013_v8  ;;  %v14697_v22 = vld [vmem:[%s19638_s2 + $0x60] ss:$360 sps:$4 sm:$0xff]  }
  0x1a   :  { %12591 = vmatmul.mubr.msk.bf16.vlgmr.msra.gmra.mrb[8].mxu0 %vm1033_vm2, %v16038_v19  ;;  %v14708_v20 = vld [vmem:[%s19638_s2 + $0x6c] ss:$360 sps:$4 sm:$0xff]   ;;  %v14714_v21 = vld [vmem:[%s19638_s2 + $0x33c] ss:$360 sps:$4 sm:$0x3f]   ;;  %v1117_v25 = vand.u32 %v14705_v17, %v16013_v8 }
  0x1b   :  { %1558 = vmatpush1.bf16.msra.mxu0 %v14661_v44  ;;  %12592 = vmatmul.mubr.msk.bf16.vlgmr.msra.gmra.mrb[8].mxu1 %vm1033_vm2, %v16038_v19  ;;  %v14703_v23 = vld [vmem:[%s19638_s2 + $0x330] ss:$360 sps:$4 sm:$0x3f]   ;;  %v1123_v27 = vand.u32 %v14714_v21, %v16013_v8  ;;  %v14711_v29 = vld [vmem:[%s19638_s2 + $0x74] ss:$360 sps:$4 sm:$0xff]  }
  0x1c   :  { %1559 = vmatprep.subr.bf16.mxu0 %v1081_v49  ;;  %1599 = vmatpush1.bf16.msra.mxu1 %v14670_v48  ;;  %v14706_v24 = vld [vmem:[%s19638_s2 + $0x68] ss:$360 sps:$4 sm:$0xff]   ;;  %v14712_v26 = vld [vmem:[%s19638_s2 + $0x338] ss:$360 sps:$4 sm:$0x3f]   ;;  %v1114_v28 = vand.u32 %v14703_v23, %v16013_v8 }
  0x1d   :  { %1589 = vmatprep.mubr.bf16.mxu0 %v19649_v6  ;;  %1600 = vmatprep.subr.bf16.mxu1 %v1087_v51  ;;  %v1120_v30 = vand.u32 %v14712_v26, %v16013_v8  ;;  %v14717_v31 = vld [vmem:[%s19638_s2 + $0x344] ss:$360 sps:$4 sm:$0x3f]   ;;  %v14709_v34 = vld [vmem:[%s19638_s2 + $0x70] ss:$360 sps:$4 sm:$0xff]  }
  0x1e   :  { %1630 = vmatprep.mubr.bf16.mxu1 %v19649_v6  ;;  %v14720_v32 = vld [vmem:[%s19638_s2 + $0x7c] ss:$360 sps:$4 sm:$0xff]   ;;  %v14726_v33 = vld [vmem:[%s19638_s2 + $0x34c] ss:$360 sps:$4 sm:$0x3f]   ;;  %v1129_v37 = vand.u32 %v14717_v31, %v16013_v8 }
  0x1f   :  { %1560 = vmatpush1.bf16.msra.mxu0 %v1078_v52  ;;  %v14715_v35 = vld [vmem:[%s19638_s2 + $0x340] ss:$360 sps:$4 sm:$0x3f]   ;;  %v1135_v39 = vand.u32 %v14726_v33, %v16013_v8  ;;  %v14723_v41 = vld [vmem:[%s19638_s2 + $0x84] ss:$360 sps:$4 sm:$0xff]  }
  0x20   :  { %1639 = vmatprep.subr.bf16.mxu0 %v14675_v53  ;;  %1601 = vmatpush1.bf16.msra.mxu1 %v1084_v54  ;;  %v14718_v36 = vld [vmem:[%s19638_s2 + $0x78] ss:$360 sps:$4 sm:$0xff]   ;;  %v14724_v38 = vld [vmem:[%s19638_s2 + $0x348] ss:$360 sps:$4 sm:$0x3f]   ;;  %v1126_v40 = vand.u32 %v14715_v35, %v16013_v8 }
  0x21   :  { %1680 = vmatprep.subr.bf16.mxu1 %v14684_v56  ;;  %v1132_v42 = vand.u32 %v14724_v38, %v16013_v8  ;;  %v14729_v43 = vld [vmem:[%s19638_s2 + $0x354] ss:$360 sps:$4 sm:$0x3f]   ;;  %v14721_v46 = vld [vmem:[%s19638_s2 + $0x80] ss:$360 sps:$4 sm:$0xff]  }
  0x22   :  { %12593 = vmatmul.mubr.msk.bf16.vlgmr.msra.gmra.mrb[12].mxu0 %vm1033_vm2, %v16038_v19  ;;  %v14732_v44 = vld [vmem:[%s19638_s2 + $0x8c] ss:$360 sps:$4 sm:$0xff]   ;;  %v14738_v45 = vld [vmem:[%s19638_s2 + $0x35c] ss:$360 sps:$4 sm:$0x3f]   ;;  %v1141_v48 = vand.u32 %v14729_v43, %v16013_v8 }
  0x23   :  { %1640 = vmatpush1.bf16.msra.mxu0 %v14673_v58  ;;  %12594 = vmatmul.mubr.msk.bf16.vlgmr.msra.gmra.mrb[12].mxu1 %vm1033_vm2, %v16038_v19  ;;  %v14727_v47 = vld [vmem:[%s19638_s2 + $0x350] ss:$360 sps:$4 sm:$0x3f]   ;;  %v1147_v51 = vand.u32 %v14738_v45, %v16013_v8  ;;  %v14735_v53 = vld [vmem:[%s19638_s2 + $0x94] ss:$360 sps:$4 sm:$0xff]  }
  0x24   :  { %1641 = vmatprep.subr.bf16.mxu0 %v1093_v61  ;;  %1681 = vmatpush1.bf16.msra.mxu1 %v14682_v60  ;;  %v14730_v49 = vld [vmem:[%s19638_s2 + $0x88] ss:$360 sps:$4 sm:$0xff]   ;;  %v14736_v50 = vld [vmem:[%s19638_s2 + $0x358] ss:$360 sps:$4 sm:$0x3f]   ;;  %v1138_v52 = vand.u32 %v14727_v47, %v16013_v8 }
  0x25   :  { %1671 = vmatprep.mubr.bf16.mxu0 %v19649_v6  ;;  %1682 = vmatprep.subr.bf16.mxu1 %v1099_v63  ;;  %v14741_v54 = vld [vmem:[%s19638_s2 + $0x364] ss:$360 sps:$4 sm:$0x3f]   ;;  %v1144_v55 = vand.u32 %v14736_v50, %v16013_v8  ;;  %v14733_v58 = vld [vmem:[%s19638_s2 + $0x90] ss:$360 sps:$4 sm:$0xff]  }
  0x26   :  { %1712 = vmatprep.mubr.bf16.mxu1 %v19649_v6  ;;  %v14744_v56 = vld [vmem:[%s19638_s2 + $0x9c] ss:$360 sps:$4 sm:$0xff]   ;;  %v14750_v57 = vld [vmem:[%s19638_s2 + $0x36c] ss:$360 sps:$4 sm:$0x3f]   ;;  %v1153_v61 = vand.u32 %v14741_v54, %v16013_v8 }
  0x27   :  { %1642 = vmatpush1.bf16.msra.mxu0 %v1090_v0  ;;  %v14739_v59 = vld [vmem:[%s19638_s2 + $0x360] ss:$360 sps:$4 sm:$0x3f]   ;;  %v1159_v63 = vand.u32 %v14750_v57, %v16013_v8  ;;  %v14753_v3 = vld [vmem:[%s19638_s2 + $0x374] ss:$360 sps:$4 sm:$0x3f]  }
  0x28   :  { %1721 = vmatprep.subr.bf16.mxu0 %v14687_v1  ;;  %1683 = vmatpush1.bf16.msra.mxu1 %v1096_v2  ;;  %v14742_v60 = vld [vmem:[%s19638_s2 + $0x98] ss:$360 sps:$4 sm:$0xff]   ;;  %v14748_v62 = vld [vmem:[%s19638_s2 + $0x368] ss:$360 sps:$4 sm:$0x3f]   ;;  %v1150_v0 = vand.u32 %v14739_v59, %v16013_v8 }
  0x29   :  { %1762 = vmatprep.subr.bf16.mxu1 %v14696_v5  ;;  %v14747_v1 = vld [vmem:[%s19638_s2 + $0xa4] ss:$360 sps:$4 sm:$0xff]   ;;  %v1156_v2 = vand.u32 %v14748_v62, %v16013_v8  ;;  %v14751_v10 = vld [vmem:[%s19638_s2 + $0x370] ss:$360 sps:$4 sm:$0x3f]  }
  0x2a   :  { %12595 = vmatmul.mubr.msk.bf16.vlgmr.msra.gmra.mrb[16].mxu0 %vm1033_vm2, %v16038_v19  ;;  %v14756_v5 = vld [vmem:[%s19638_s2 + $0xac] ss:$360 sps:$4 sm:$0xff]   ;;  %v14762_v7 = vld [vmem:[%s19638_s2 + $0x37c] ss:$360 sps:$4 sm:$0x3f]  }
  0x2b   :  { %1722 = vmatpush1.bf16.msra.mxu0 %v14685_v9  ;;  %12596 = vmatmul.mubr.msk.bf16.vlgmr.msra.gmra.mrb[16].mxu1 %vm1033_vm2, %v16038_v19  ;;  %v14745_v9 = vld [vmem:[%s19638_s2 + $0xa0] ss:$360 sps:$4 sm:$0xff]   ;;  %v14774_v21 = vld [vmem:[%s19638_s2 + $0x38c] ss:$360 sps:$4 sm:$0x3f]  }
  0x2c   :  { %1723 = vmatprep.subr.bf16.mxu0 %v1105_v11  ;;  %1763 = vmatpush1.bf16.msra.mxu1 %v14694_v12  ;;  %v1165_v11 = vand.u32 %v14753_v3, %v16013_v8  ;;  %v14754_v12 = vld [vmem:[%s19638_s2 + $0xa8] ss:$360 sps:$4 sm:$0xff]   ;;  %v14760_v13 = vld [vmem:[%s19638_s2 + $0x378] ss:$360 sps:$4 sm:$0x3f]  }
  0x2d   :  { %1753 = vmatprep.mubr.bf16.mxu0 %v19649_v6  ;;  %1764 = vmatprep.subr.bf16.mxu1 %v1111_v14  ;;  %v1171_v14 = vand.u32 %v14762_v7, %v16013_v8  ;;  %v1168_v17 = vand.u32 %v14760_v13, %v16013_v8  ;;  %v14763_v23 = vld [vmem:[%s19638_s2 + $0x380] ss:$360 sps:$4 sm:$0x3f]   ;;  %v14786_v33 = vld [vmem:[%s19638_s2 + $0x39c] ss:$360 sps:$4 sm:$0x3f]  }
  0x2e   :  { %1794 = vmatprep.mubr.bf16.mxu1 %v19649_v6  ;;  %v14772_v26 = vld [vmem:[%s19638_s2 + $0x388] ss:$360 sps:$4 sm:$0x3f]   ;;  %v14784_v38 = vld [vmem:[%s19638_s2 + $0x398] ss:$360 sps:$4 sm:$0x3f]  }
  0x2f   :  { %1724 = vmatpush1.bf16.msra.mxu0 %v1102_v15  ;;  %v1162_v15 = vand.u32 %v14751_v10, %v16013_v8  ;;  %v1180_v31 = vand.u32 %v14772_v26, %v16013_v8  ;;  %v14775_v35 = vld [vmem:[%s19638_s2 + $0x390] ss:$360 sps:$4 sm:$0x3f]   ;;  %v14789_v43 = vld [vmem:[%s19638_s2 + $0x3a4] ss:$360 sps:$4 sm:$0x3f]  }
  0x30   :  { %1803 = vmatprep.subr.bf16.mxu0 %v14699_v16  ;;  %1765 = vmatpush1.bf16.msra.mxu1 %v1108_v18  ;;  %v14759_v16 = vld [vmem:[%s19638_s2 + $0xb4] ss:$360 sps:$4 sm:$0xff]   ;;  %v14765_v18 = vld [vmem:[%s19638_s2 + $0x384] ss:$360 sps:$4 sm:$0x3f]  }
  0x31   :  { %1844 = vmatprep.subr.bf16.mxu1 %v14708_v20  ;;  %v14768_v20 = vld [vmem:[%s19638_s2 + $0xbc] ss:$360 sps:$4 sm:$0xff]   ;;  %v14798_v45 = vld [vmem:[%s19638_s2 + $0x3ac] ss:$360 sps:$4 sm:$0x3f]  }
  0x32   :  { %12597 = vmatmul.mubr.msk.bf16.vlgmr.msra.gmra.mrb[20].mxu0 %vm1033_vm2, %v16038_v19  ;;  %v14787_v47 = vld [vmem:[%s19638_s2 + $0x3a0] ss:$360 sps:$4 sm:$0x3f]   ;;  %v14810_v57 = vld [vmem:[%s19638_s2 + $0x3bc] ss:$360 sps:$4 sm:$0x3f]  }
  0x33   :  { %1804 = vmatpush1.bf16.msra.mxu0 %v14697_v22  ;;  %12598 = vmatmul.mubr.msk.bf16.vlgmr.msra.gmra.mrb[20].mxu1 %vm1033_vm2, %v16038_v19  ;;  %v14757_v22 = vld [vmem:[%s19638_s2 + $0xb0] ss:$360 sps:$4 sm:$0xff]   ;;  %v14822_v7 = vld [vmem:[%s19638_s2 + $0x3cc] ss:$360 sps:$4 sm:$0x3f]  }
  0x34   :  { %1805 = vmatprep.subr.bf16.mxu0 %v1117_v25  ;;  %1845 = vmatpush1.bf16.msra.mxu1 %v14706_v24  ;;  %v1177_v24 = vand.u32 %v14765_v18, %v16013_v8  ;;  %v14766_v25 = vld [vmem:[%s19638_s2 + $0xb8] ss:$360 sps:$4 sm:$0xff]   ;;  %v14796_v50 = vld [vmem:[%s19638_s2 + $0x3a8] ss:$360 sps:$4 sm:$0x3f]  }
  0x35   :  { %1835 = vmatprep.mubr.bf16.mxu0 %v19649_v6  ;;  %1846 = vmatprep.subr.bf16.mxu1 %v1123_v27  ;;  %v1183_v27 = vand.u32 %v14774_v21, %v16013_v8  ;;  %v1204_v54 = vand.u32 %v14796_v50, %v16013_v8  ;;  %v14799_v59 = vld [vmem:[%s19638_s2 + $0x3b0] ss:$360 sps:$4 sm:$0x3f]   ;;  %v14811_v10 = vld [vmem:[%s19638_s2 + $0x3c0] ss:$360 sps:$4 sm:$0x3f]  }
  0x36   :  { %1876 = vmatprep.mubr.bf16.mxu1 %v19649_v6  ;;  %v14808_v62 = vld [vmem:[%s19638_s2 + $0x3b8] ss:$360 sps:$4 sm:$0x3f]   ;;  %v14820_v13 = vld [vmem:[%s19638_s2 + $0x3c8] ss:$360 sps:$4 sm:$0x3f]  }
  0x37   :  { %1806 = vmatpush1.bf16.msra.mxu0 %v1114_v28  ;;  %v1174_v28 = vand.u32 %v14763_v23, %v16013_v8  ;;  %v1216_v3 = vand.u32 %v14808_v62, %v16013_v8  ;;  %v14825_v18 = vld [vmem:[%s19638_s2 + $0x3d4] ss:$360 sps:$4 sm:$0x3f]   ;;  %v14832_v23 = vld [vmem:[%s19638_s2 + $0x3d8] ss:$360 sps:$4 sm:$0x3f]  }
  0x38   :  { %1885 = vmatprep.subr.bf16.mxu0 %v14711_v29  ;;  %1847 = vmatpush1.bf16.msra.mxu1 %v1120_v30  ;;  %v14771_v29 = vld [vmem:[%s19638_s2 + $0xc4] ss:$360 sps:$4 sm:$0xff]   ;;  %v14777_v30 = vld [vmem:[%s19638_s2 + $0x394] ss:$360 sps:$4 sm:$0x3f]  }
  0x39   :  { %1926 = vmatprep.subr.bf16.mxu1 %v14720_v32  ;;  %v14780_v32 = vld [vmem:[%s19638_s2 + $0xcc] ss:$360 sps:$4 sm:$0xff]   ;;  %v14826_v26 = vld [vmem:[%s19638_s2 + $0x108] ss:$360 sps:$4 sm:$0xff]   ;;  %v14862_v62 = vld [vmem:[%s19638_s2 + $0x138] ss:$360 sps:$4 sm:$0xff]  }
  0x3a   :  { %12599 = vmatmul.mubr.msk.bf16.vlgmr.msra.gmra.mrb[24].mxu0 %vm1033_vm2, %v16038_v19  ;;  %v14828_v21 = vld [vmem:[%s19638_s2 + $0x10c] ss:$360 sps:$4 sm:$0xff]   ;;  %v14850_v50 = vld [vmem:[%s19638_s2 + $0x128] ss:$360 sps:$4 sm:$0xff]  }
  0x3b   :  { %1886 = vmatpush1.bf16.msra.mxu0 %v14709_v34  ;;  %12600 = vmatmul.mubr.msk.bf16.vlgmr.msra.gmra.mrb[24].mxu1 %vm1033_vm2, %v16038_v19  ;;  %v14769_v34 = vld [vmem:[%s19638_s2 + $0xc0] ss:$360 sps:$4 sm:$0xff]  }
  0x3c   :  { %1887 = vmatprep.subr.bf16.mxu0 %v1129_v37  ;;  %1927 = vmatpush1.bf16.msra.mxu1 %v14718_v36  ;;  %v14778_v36 = vld [vmem:[%s19638_s2 + $0xc8] ss:$360 sps:$4 sm:$0xff]   ;;  %v1189_v37 = vand.u32 %v14777_v30, %v16013_v8  ;;  %v14846_v30 = vld [vmem:[%s19638_s2 + $0x3ec] ss:$360 sps:$4 sm:$0x3f]  }
  0x3d   :  { %1917 = vmatprep.mubr.bf16.mxu0 %v19649_v6  ;;  %1928 = vmatprep.subr.bf16.mxu1 %v1135_v39  ;;  %v1195_v39 = vand.u32 %v14786_v33, %v16013_v8  ;;  %v14835_v33 = vld [vmem:[%s19638_s2 + $0x3e0] ss:$360 sps:$4 sm:$0x3f]  }
  0x3e   :  { %1958 = vmatprep.mubr.bf16.mxu1 %v19649_v6 }
  0x3f   :  { %1888 = vmatpush1.bf16.msra.mxu0 %v1126_v40  ;;  %v1186_v40 = vand.u32 %v14775_v35, %v16013_v8  ;;  %v14844_v35 = vld [vmem:[%s19638_s2 + $0x3e8] ss:$360 sps:$4 sm:$0x3f]  }
  0x40   :  { %1967 = vmatprep.subr.bf16.mxu0 %v14723_v41  ;;  %1929 = vmatpush1.bf16.msra.mxu1 %v1132_v42  ;;  %v14783_v41 = vld [vmem:[%s19638_s2 + $0xd4] ss:$360 sps:$4 sm:$0xff]   ;;  %v1192_v42 = vand.u32 %v14784_v38, %v16013_v8  ;;  %v14838_v38 = vld [vmem:[%s19638_s2 + $0x118] ss:$360 sps:$4 sm:$0xff]  }
  0x41   :  { %2008 = vmatprep.subr.bf16.mxu1 %v14732_v44  ;;  %v14792_v44 = vld [vmem:[%s19638_s2 + $0xdc] ss:$360 sps:$4 sm:$0xff]  }
  0x42   :  { %12601 = vmatmul.mubr.msk.bf16.vlgmr.msra.gmra.mrb[28].mxu0 %vm1033_vm2, %v16038_v19 }
  0x43   :  { %1968 = vmatpush1.bf16.msra.mxu0 %v14721_v46  ;;  %12602 = vmatmul.mubr.msk.bf16.vlgmr.msra.gmra.mrb[28].mxu1 %vm1033_vm2, %v16038_v19  ;;  %v14781_v46 = vld [vmem:[%s19638_s2 + $0xd0] ss:$360 sps:$4 sm:$0xff]  }
  0x44   :  { %1969 = vmatprep.subr.bf16.mxu0 %v1141_v48  ;;  %2009 = vmatpush1.bf16.msra.mxu1 %v14730_v49  ;;  %v1201_v48 = vand.u32 %v14789_v43, %v16013_v8  ;;  %v14790_v49 = vld [vmem:[%s19638_s2 + $0xd8] ss:$360 sps:$4 sm:$0xff]   ;;  %v14843_v43 = vld [vmem:[%s19638_s2 + $0x124] ss:$360 sps:$4 sm:$0xff]  }
  0x45   :  { %1999 = vmatprep.mubr.bf16.mxu0 %v19649_v6  ;;  %2010 = vmatprep.subr.bf16.mxu1 %v1147_v51  ;;  %v1207_v51 = vand.u32 %v14798_v45, %v16013_v8  ;;  %v14847_v45 = vld [vmem:[%s19638_s2 + $0x3f0] ss:$360 sps:$4 sm:$0x3f]  }
  0x46   :  { %2040 = vmatprep.mubr.bf16.mxu1 %v19649_v6 }
  0x47   :  { %1970 = vmatpush1.bf16.msra.mxu0 %v1138_v52  ;;  %v1198_v52 = vand.u32 %v14787_v47, %v16013_v8  ;;  %v14856_v47 = vld [vmem:[%s19638_s2 + $0x3f8] ss:$360 sps:$4 sm:$0x3f]  }
  0x48   :  { %2049 = vmatprep.subr.bf16.mxu0 %v14735_v53  ;;  %2011 = vmatpush1.bf16.msra.mxu1 %v1144_v55  ;;  %v14795_v53 = vld [vmem:[%s19638_s2 + $0xe4] ss:$360 sps:$4 sm:$0xff]   ;;  %v14801_v55 = vld [vmem:[%s19638_s2 + $0x3b4] ss:$360 sps:$4 sm:$0x3f]  }
  0x49   :  { %2090 = vmatprep.subr.bf16.mxu1 %v14744_v56  ;;  %v14804_v56 = vld [vmem:[%s19638_s2 + $0xec] ss:$360 sps:$4 sm:$0xff]  }
  0x4a   :  { %12603 = vmatmul.mubr.msk.bf16.vlgmr.msra.gmra.mrb[32].mxu0 %vm1033_vm2, %v16038_v19 }
  0x4b   :  { %2050 = vmatpush1.bf16.msra.mxu0 %v14733_v58  ;;  %12604 = vmatmul.mubr.msk.bf16.vlgmr.msra.gmra.mrb[32].mxu1 %vm1033_vm2, %v16038_v19  ;;  %v14793_v58 = vld [vmem:[%s19638_s2 + $0xe0] ss:$360 sps:$4 sm:$0xff]  }
  0x4c   :  { %2051 = vmatprep.subr.bf16.mxu0 %v1153_v61  ;;  %2091 = vmatpush1.bf16.msra.mxu1 %v14742_v60  ;;  %v14802_v60 = vld [vmem:[%s19638_s2 + $0xe8] ss:$360 sps:$4 sm:$0xff]   ;;  %v1213_v61 = vand.u32 %v14801_v55, %v16013_v8  ;;  %v14855_v55 = vld [vmem:[%s19638_s2 + $0x134] ss:$360 sps:$4 sm:$0xff]  }
  0x4d   :  { %2081 = vmatprep.mubr.bf16.mxu0 %v19649_v6  ;;  %2092 = vmatprep.subr.bf16.mxu1 %v1159_v63  ;;  %v1219_v63 = vand.u32 %v14810_v57, %v16013_v8  ;;  %v14859_v57 = vld [vmem:[%s19638_s2 + $0x400] ss:$360 sps:$4 sm:$0x3f]  }
  0x4e   :  { %2122 = vmatprep.mubr.bf16.mxu1 %v19649_v6 }
  0x4f   :  { %2052 = vmatpush1.bf16.msra.mxu0 %v1150_v0  ;;  %v1210_v0 = vand.u32 %v14799_v59, %v16013_v8  ;;  %v14868_v59 = vld [vmem:[%s19638_s2 + $0x408] ss:$360 sps:$4 sm:$0x3f]  }
  0x50   :  { %2131 = vmatprep.subr.bf16.mxu0 %v14747_v1  ;;  %2093 = vmatpush1.bf16.msra.mxu1 %v1156_v2  ;;  %v14807_v1 = vld [vmem:[%s19638_s2 + $0xf4] ss:$360 sps:$4 sm:$0xff]   ;;  %v14813_v2 = vld [vmem:[%s19638_s2 + $0x3c4] ss:$360 sps:$4 sm:$0x3f]  }
  0x51   :  { %2172 = vmatprep.subr.bf16.mxu1 %v14756_v5  ;;  %v14816_v5 = vld [vmem:[%s19638_s2 + $0xfc] ss:$360 sps:$4 sm:$0xff]  }
  0x52   :  { %12605 = vmatmul.mubr.msk.bf16.vlgmr.msra.gmra.mrb[36].mxu0 %vm1033_vm2, %v16038_v19 }
  0x53   :  { %2132 = vmatpush1.bf16.msra.mxu0 %v14745_v9  ;;  %12606 = vmatmul.mubr.msk.bf16.vlgmr.msra.gmra.mrb[36].mxu1 %vm1033_vm2, %v16038_v19  ;;  %v14805_v9 = vld [vmem:[%s19638_s2 + $0xf0] ss:$360 sps:$4 sm:$0xff]  }
  0x54   :  { %2133 = vmatprep.subr.bf16.mxu0 %v1165_v11  ;;  %2173 = vmatpush1.bf16.msra.mxu1 %v14754_v12  ;;  %v14814_v11 = vld [vmem:[%s19638_s2 + $0xf8] ss:$360 sps:$4 sm:$0xff]   ;;  %v1225_v12 = vand.u32 %v14813_v2, %v16013_v8  ;;  %v14882_v2 = vld [vmem:[%s19638_s2 + $0x41c] ss:$360 sps:$4 sm:$0x3f]  }
  0x55   :  { %2163 = vmatprep.mubr.bf16.mxu0 %v19649_v6  ;;  %2174 = vmatprep.subr.bf16.mxu1 %v1171_v14  ;;  %v1231_v14 = vand.u32 %v14822_v7, %v16013_v8  ;;  %v14871_v7 = vld [vmem:[%s19638_s2 + $0x410] ss:$360 sps:$4 sm:$0x3f]  }
  0x56   :  { %2204 = vmatprep.mubr.bf16.mxu1 %v19649_v6 }
  0x57   :  { %2134 = vmatpush1.bf16.msra.mxu0 %v1162_v15  ;;  %v1222_v15 = vand.u32 %v14811_v10, %v16013_v8  ;;  %v14880_v10 = vld [vmem:[%s19638_s2 + $0x418] ss:$360 sps:$4 sm:$0x3f]  }
  0x58   :  { %2213 = vmatprep.subr.bf16.mxu0 %v14759_v16  ;;  %2175 = vmatpush1.bf16.msra.mxu1 %v1168_v17  ;;  %v14819_v16 = vld [vmem:[%s19638_s2 + $0x104] ss:$360 sps:$4 sm:$0xff]   ;;  %v1228_v17 = vand.u32 %v14820_v13, %v16013_v8  ;;  %v14874_v13 = vld [vmem:[%s19638_s2 + $0x148] ss:$360 sps:$4 sm:$0xff]  }
  0x59   :  { %2254 = vmatprep.subr.bf16.mxu1 %v14768_v20  ;;  %v14823_v20 = vld [vmem:[%s19638_s2 + $0x3d0] ss:$360 sps:$4 sm:$0x3f]  }
  0x5a   :  { %12607 = vmatmul.mubr.msk.bf16.vlgmr.msra.gmra.mrb[40].mxu0 %vm1033_vm2, %v16038_v19 }
  0x5b   :  { %2214 = vmatpush1.bf16.msra.mxu0 %v14757_v22  ;;  %12608 = vmatmul.mubr.msk.bf16.vlgmr.msra.gmra.mrb[40].mxu1 %vm1033_vm2, %v16038_v19  ;;  %v14834_v22 = vld [vmem:[%s19638_s2 + $0x3dc] ss:$360 sps:$4 sm:$0x3f]  }
  0x5c   :  { %2215 = vmatprep.subr.bf16.mxu0 %v1177_v24  ;;  %2255 = vmatpush1.bf16.msra.mxu1 %v14766_v25  ;;  %v14817_v24 = vld [vmem:[%s19638_s2 + $0x100] ss:$360 sps:$4 sm:$0xff]   ;;  %v1237_v25 = vand.u32 %v14825_v18, %v16013_v8  ;;  %v14879_v18 = vld [vmem:[%s19638_s2 + $0x154] ss:$360 sps:$4 sm:$0xff]  }
  0x5d   :  { %2245 = vmatprep.mubr.bf16.mxu0 %v19649_v6  ;;  %2256 = vmatprep.subr.bf16.mxu1 %v1183_v27  ;;  %v1243_v27 = vand.u32 %v14834_v22, %v16013_v8  ;;  %v14888_v22 = vld [vmem:[%s19638_s2 + $0x15c] ss:$360 sps:$4 sm:$0xff]  }
  0x5e   :  { %2286 = vmatprep.mubr.bf16.mxu1 %v19649_v6 }
  0x5f   :  { %2216 = vmatpush1.bf16.msra.mxu0 %v1174_v28  ;;  %v14837_v28 = vld [vmem:[%s19638_s2 + $0x3e4] ss:$360 sps:$4 sm:$0x3f]  }
  0x60   :  { %2295 = vmatprep.subr.bf16.mxu0 %v14771_v29  ;;  %2257 = vmatpush1.bf16.msra.mxu1 %v1180_v31  ;;  %v1234_v29 = vand.u32 %v14823_v20, %v16013_v8  ;;  %v14831_v31 = vld [vmem:[%s19638_s2 + $0x114] ss:$360 sps:$4 sm:$0xff]   ;;  %v1288_v20 = vand.u32 %v14880_v10, %v16013_v8 }
  0x61   :  { %2336 = vmatprep.subr.bf16.mxu1 %v14780_v32  ;;  %v1240_v32 = vand.u32 %v14832_v23, %v16013_v8  ;;  %v14892_v23 = vld [vmem:[%s19638_s2 + $0x428] ss:$360 sps:$4 sm:$0x3f]  }
  0x62   :  { %12609 = vmatmul.mubr.msk.bf16.vlgmr.msra.gmra.mrb[44].mxu0 %vm1033_vm2, %v16038_v19 }
  0x63   :  { %2296 = vmatpush1.bf16.msra.mxu0 %v14769_v34  ;;  %12610 = vmatmul.mubr.msk.bf16.vlgmr.msra.gmra.mrb[44].mxu1 %vm1033_vm2, %v16038_v19  ;;  %v14840_v34 = vld [vmem:[%s19638_s2 + $0x11c] ss:$360 sps:$4 sm:$0xff]  }
  0x64   :  { %2297 = vmatprep.subr.bf16.mxu0 %v1189_v37  ;;  %2337 = vmatpush1.bf16.msra.mxu1 %v14778_v36  ;;  %v14829_v36 = vld [vmem:[%s19638_s2 + $0x110] ss:$360 sps:$4 sm:$0xff]   ;;  %v1249_v37 = vand.u32 %v14837_v28, %v16013_v8  ;;  %v14897_v28 = vld [vmem:[%s19638_s2 + $0x434] ss:$360 sps:$4 sm:$0x3f]  }
  0x65   :  { %2327 = vmatprep.mubr.bf16.mxu0 %v19649_v6  ;;  %2338 = vmatprep.subr.bf16.mxu1 %v1195_v39  ;;  %v1255_v39 = vand.u32 %v14846_v30, %v16013_v8  ;;  %v14891_v30 = vld [vmem:[%s19638_s2 + $0x164] ss:$360 sps:$4 sm:$0xff]  }
  0x66   :  { %2368 = vmatprep.mubr.bf16.mxu1 %v19649_v6 }
  0x67   :  { %2298 = vmatpush1.bf16.msra.mxu0 %v1186_v40  ;;  %v14849_v40 = vld [vmem:[%s19638_s2 + $0x3f4] ss:$360 sps:$4 sm:$0x3f]  }
  0x68   :  { %2377 = vmatprep.subr.bf16.mxu0 %v14783_v41  ;;  %2339 = vmatpush1.bf16.msra.mxu1 %v1192_v42  ;;  %v1246_v41 = vand.u32 %v14835_v33, %v16013_v8  ;;  %v14858_v42 = vld [vmem:[%s19638_s2 + $0x3fc] ss:$360 sps:$4 sm:$0x3f]  }
  0x69   :  { %2418 = vmatprep.subr.bf16.mxu1 %v14792_v44  ;;  %v1252_v44 = vand.u32 %v14844_v35, %v16013_v8  ;;  %v14898_v33 = vld [vmem:[%s19639_s3 + $0x40] sm:$0xff]   ;;  %v1309_v35 = vand.u32 %v14897_v28, %v16013_v8 }
  0x6a   :  { %12611 = vmatmul.mubr.msk.bf16.vlgmr.msra.gmra.mrb[48].mxu0 %vm1033_vm2, %v16038_v19 }
  0x6b   :  { %2378 = vmatpush1.bf16.msra.mxu0 %v14781_v46  ;;  %12612 = vmatmul.mubr.msk.bf16.vlgmr.msra.gmra.mrb[48].mxu1 %vm1033_vm2, %v16038_v19  ;;  %v14852_v46 = vld [vmem:[%s19638_s2 + $0x12c] ss:$360 sps:$4 sm:$0xff]  }
  0x6c   :  { %2379 = vmatprep.subr.bf16.mxu0 %v1201_v48  ;;  %2419 = vmatpush1.bf16.msra.mxu1 %v14790_v49  ;;  %v14841_v48 = vld [vmem:[%s19638_s2 + $0x120] ss:$360 sps:$4 sm:$0xff]   ;;  %v1261_v49 = vand.u32 %v14849_v40, %v16013_v8 }
  0x6d   :  { %2409 = vmatprep.mubr.bf16.mxu0 %v19649_v6  ;;  %2420 = vmatprep.subr.bf16.mxu1 %v1207_v51  ;;  %v1267_v51 = vand.u32 %v14858_v42, %v16013_v8  ;;  %v14904_v40 = vld [vmem:[%s19639_s3 + $0x8] sm:$0xff]  }
  0x6e   :  { %2450 = vmatprep.mubr.bf16.mxu1 %v19649_v6  ;;  %v14903_v42 = vld [vmem:[%s19639_s3 + $0xc8] sm:$0xff]  }
  0x6f   :  { %2380 = vmatpush1.bf16.msra.mxu0 %v1198_v52  ;;  %v14861_v52 = vld [vmem:[%s19638_s2 + $0x404] ss:$360 sps:$4 sm:$0x3f]  }
  0x70   :  { %2459 = vmatprep.subr.bf16.mxu0 %v14795_v53  ;;  %2421 = vmatpush1.bf16.msra.mxu1 %v1204_v54  ;;  %v1258_v53 = vand.u32 %v14847_v45, %v16013_v8  ;;  %v14870_v54 = vld [vmem:[%s19638_s2 + $0x40c] ss:$360 sps:$4 sm:$0x3f]  }
  0x71   :  { %2500 = vmatprep.subr.bf16.mxu1 %v14804_v56  ;;  %v1264_v56 = vand.u32 %v14856_v47, %v16013_v8  ;;  %v14905_v45 = vld [vmem:[%s19639_s3 + $0x88] sm:$0xff]   ;;  %v14914_v47 = vld [vmem:[%s19639_s3 + $0x60] sm:$0xff]  }
  0x72   :  { %12613 = vmatmul.mubr.msk.bf16.vlgmr.msra.gmra.mrb[52].mxu0 %vm1033_vm2, %v16038_v19 }
  0x73   :  { %2460 = vmatpush1.bf16.msra.mxu0 %v14793_v58  ;;  %12614 = vmatmul.mubr.msk.bf16.vlgmr.msra.gmra.mrb[52].mxu1 %vm1033_vm2, %v16038_v19  ;;  %v14864_v58 = vld [vmem:[%s19638_s2 + $0x13c] ss:$360 sps:$4 sm:$0xff]  }
  0x74   :  { %2461 = vmatprep.subr.bf16.mxu0 %v1213_v61  ;;  %2501 = vmatpush1.bf16.msra.mxu1 %v14802_v60  ;;  %v14853_v60 = vld [vmem:[%s19638_s2 + $0x130] ss:$360 sps:$4 sm:$0xff]   ;;  %v1273_v61 = vand.u32 %v14861_v52, %v16013_v8 }
  0x75   :  { %2491 = vmatprep.mubr.bf16.mxu0 %v19649_v6  ;;  %2502 = vmatprep.subr.bf16.mxu1 %v1219_v63  ;;  %v1279_v63 = vand.u32 %v14870_v54, %v16013_v8  ;;  %v14913_v52 = vld [vmem:[%s19639_s3 + $0x98] sm:$0xff]   ;;  %v14920_v54 = vld [vmem:[%s19639_s3 + $0x28] sm:$0xff]  }
  0x76   :  { %2532 = vmatprep.mubr.bf16.mxu1 %v19649_v6 }
  0x77   :  { %2462 = vmatpush1.bf16.msra.mxu0 %v1210_v0  ;;  %v14873_v0 = vld [vmem:[%s19638_s2 + $0x414] ss:$360 sps:$4 sm:$0x3f]  }
  0x78   :  { %2541 = vmatprep.subr.bf16.mxu0 %v14807_v1  ;;  %2503 = vmatpush1.bf16.msra.mxu1 %v1216_v3  ;;  %v1270_v1 = vand.u32 %v14859_v57, %v16013_v8  ;;  %v14867_v3 = vld [vmem:[%s19638_s2 + $0x144] ss:$360 sps:$4 sm:$0xff]  }
  0x79   :  { %2582 = vmatprep.subr.bf16.mxu1 %v14816_v5  ;;  %v1276_v5 = vand.u32 %v14868_v59, %v16013_v8  ;;  %v14919_v57 = vld [vmem:[%s19639_s3 + $0xe8] sm:$0xff]   ;;  %v14926_v59 = vld [vmem:[%s19639_s3 + $0x78] sm:$0xff]  }
  0x7a   :  { %12615 = vmatmul.mubr.msk.bf16.vlgmr.msra.gmra.mrb[56].mxu0 %vm1033_vm2, %v16038_v19 }
  0x7b   :  { %2542 = vmatpush1.bf16.msra.mxu0 %v14805_v9  ;;  %12616 = vmatmul.mubr.msk.bf16.vlgmr.msra.gmra.mrb[56].mxu1 %vm1033_vm2, %v16038_v19  ;;  %v14876_v9 = vld [vmem:[%s19638_s2 + $0x14c] ss:$360 sps:$4 sm:$0xff]  }
  0x7c   :  { %2543 = vmatprep.subr.bf16.mxu0 %v1225_v12  ;;  %2583 = vmatpush1.bf16.msra.mxu1 %v14814_v11  ;;  %v14865_v11 = vld [vmem:[%s19638_s2 + $0x140] ss:$360 sps:$4 sm:$0xff]   ;;  %v1285_v12 = vand.u32 %v14873_v0, %v16013_v8  ;;  %v14925_v0 = vld [vmem:[%s19639_s3 + $0xb0] sm:$0xff]  }
  0x7d   :  { %2573 = vmatprep.mubr.bf16.mxu0 %v19649_v6  ;;  %2584 = vmatprep.subr.bf16.mxu1 %v1231_v14  ;;  %v1291_v14 = vand.u32 %v14882_v2, %v16013_v8  ;;  %v14929_v2 = vld [vmem:[%s19639_s3 + $0xb8] sm:$0xff]  }
  0x7e   :  { %2614 = vmatprep.mubr.bf16.mxu1 %v19649_v6 }
  0x7f   :  { %2544 = vmatpush1.bf16.msra.mxu0 %v1222_v15  ;;  %v14885_v15 = vld [vmem:[%s19638_s2 + $0x424] ss:$360 sps:$4 sm:$0x3f]  }
  0x80   :  { %2623 = vmatprep.subr.bf16.mxu0 %v14819_v16  ;;  %2585 = vmatpush1.bf16.msra.mxu1 %v1228_v17  ;;  %v1282_v16 = vand.u32 %v14871_v7, %v16013_v8  ;;  %v14894_v17 = vld [vmem:[%s19638_s2 + $0x42c] ss:$360 sps:$4 sm:$0x3f]  }
  0x81   :  { %2664 = vmatprep.subr.bf16.mxu1 %v14828_v21  ;;  %v14883_v21 = vld [vmem:[%s19638_s2 + $0x420] ss:$360 sps:$4 sm:$0x3f]  }
  0x82   :  { %12617 = vmatmul.mubr.msk.bf16.vlgmr.msra.gmra.mrb[60].mxu0 %vm1033_vm2, %v16038_v19 }
  0x83   :  { %2624 = vmatpush1.bf16.msra.mxu0 %v14817_v24  ;;  %12618 = vmatmul.mubr.msk.bf16.vlgmr.msra.gmra.mrb[60].mxu1 %vm1033_vm2, %v16038_v19  ;;  %v14877_v24 = vld [vmem:[%s19638_s2 + $0x150] ss:$360 sps:$4 sm:$0xff]  }
  0x84   :  { %2625 = vmatprep.subr.bf16.mxu0 %v1237_v25  ;;  %2665 = vmatpush1.bf16.msra.mxu1 %v14826_v26  ;;  %v1297_v25 = vand.u32 %v14885_v15, %v16013_v8  ;;  %v14886_v26 = vld [vmem:[%s19638_s2 + $0x158] ss:$360 sps:$4 sm:$0xff]  }
  0x85   :  { %2655 = vmatprep.mubr.bf16.mxu0 %v19649_v6  ;;  %2666 = vmatprep.subr.bf16.mxu1 %v1243_v27  ;;  %v1303_v27 = vand.u32 %v14894_v17, %v16013_v8 }
  0x86   :  { %2696 = vmatprep.mubr.bf16.mxu1 %v19649_v6 }
  0x87   :  { %2626 = vmatpush1.bf16.msra.mxu0 %v1234_v29  ;;  %v1294_v29 = vand.u32 %v14883_v21, %v16013_v8 }
  0x88   :  { %2705 = vmatprep.subr.bf16.mxu0 %v14831_v31  ;;  %2667 = vmatpush1.bf16.msra.mxu1 %v1240_v32  ;;  %v1300_v31 = vand.u32 %v14892_v23, %v16013_v8  ;;  %v14895_v32 = vld [vmem:[%s19638_s2 + $0x430] ss:$360 sps:$4 sm:$0x3f]  }
  0x89   :  { %2746 = vmatprep.subr.bf16.mxu1 %v14840_v34  ;;  %v14889_v34 = vld [vmem:[%s19638_s2 + $0x160] ss:$360 sps:$4 sm:$0xff]  }
  0x8a   :  { %12619 = vmatmul.mubr.msk.bf16.vlgmr.msra.gmra.mrb[64].mxu0 %vm1033_vm2, %v16038_v19 }
  0x8b   :  { %2706 = vmatpush1.bf16.msra.mxu0 %v14829_v36  ;;  %12620 = vmatmul.mubr.msk.bf16.vlgmr.msra.gmra.mrb[64].mxu1 %vm1033_vm2, %v16038_v19  ;;  %v14900_v36 = vld [vmem:[%s19639_s3] sm:$0xff]  }
  0x8c   :  { %2707 = vmatprep.subr.bf16.mxu0 %v1249_v37  ;;  %2747 = vmatpush1.bf16.msra.mxu1 %v14838_v38  ;;  %v14902_v37 = vld [vmem:[%s19639_s3 + $0x48] sm:$0xff]   ;;  %v1306_v38 = vand.u32 %v14895_v32, %v16013_v8  ;;  %v14906_v8 = vld [vmem:[%s19639_s3 + $0x50] sm:$0xff]  }
  0x8d   :  { %2737 = vmatprep.mubr.bf16.mxu0 %v19649_v6  ;;  %2748 = vmatprep.subr.bf16.mxu1 %v1255_v39  ;;  %v14899_v39 = vld [vmem:[%s19639_s3 + $0xc0] sm:$0xff]  }
  0x8e   :  { %2778 = vmatprep.mubr.bf16.mxu1 %v19649_v6 }
  0x8f   :  { %2708 = vmatpush1.bf16.msra.mxu0 %v1246_v41  ;;  %v14901_v41 = vld [vmem:[%s19639_s3 + $0x80] sm:$0xff]  }
  0x90   :  { %2787 = vmatprep.subr.bf16.mxu0 %v14843_v43  ;;  %2749 = vmatpush1.bf16.msra.mxu1 %v1252_v44  ;;  %v14908_v43 = vld [vmem:[%s19639_s3 + $0x10] sm:$0xff]   ;;  %v14910_v44 = vld [vmem:[%s19639_s3 + $0x58] sm:$0xff]  }
  0x91   :  { %2828 = vmatprep.subr.bf16.mxu1 %v14852_v46  ;;  %v14907_v46 = vld [vmem:[%s19639_s3 + $0xd0] sm:$0xff]  }
  0x92   :  { %12621 = vmatmul.mubr.msk.bf16.vlgmr.msra.gmra.mrb[68].mxu0 %vm1033_vm2, %v16038_v19 }
  0x93   :  { %2788 = vmatpush1.bf16.msra.mxu0 %v14841_v48  ;;  %12622 = vmatmul.mubr.msk.bf16.vlgmr.msra.gmra.mrb[68].mxu1 %vm1033_vm2, %v16038_v19  ;;  %v14909_v48 = vld [vmem:[%s19639_s3 + $0x90] sm:$0xff]  }
  0x94   :  { %2789 = vmatprep.subr.bf16.mxu0 %v1261_v49  ;;  %2829 = vmatpush1.bf16.msra.mxu1 %v14850_v50  ;;  %v14911_v49 = vld [vmem:[%s19639_s3 + $0xd8] sm:$0xff]   ;;  %v14916_v50 = vld [vmem:[%s19639_s3 + $0x20] sm:$0xff]  }
  0x95   :  { %2819 = vmatprep.mubr.bf16.mxu0 %v19649_v6  ;;  %2830 = vmatprep.subr.bf16.mxu1 %v1267_v51  ;;  %v14918_v51 = vld [vmem:[%s19639_s3 + $0x68] sm:$0xff]  }
  0x96   :  { %2860 = vmatprep.mubr.bf16.mxu1 %v19649_v6 }
  0x97   :  { %2790 = vmatpush1.bf16.msra.mxu0 %v1258_v53  ;;  %v14915_v53 = vld [vmem:[%s19639_s3 + $0xe0] sm:$0xff]  }
  0x98   :  { %2869 = vmatprep.subr.bf16.mxu0 %v14855_v55  ;;  %2831 = vmatpush1.bf16.msra.mxu1 %v1264_v56  ;;  %v14922_v55 = vld [vmem:[%s19639_s3 + $0x70] sm:$0xff]   ;;  %v14917_v56 = vld [vmem:[%s19639_s3 + $0xa0] sm:$0xff]  }
  0x99   :  { %2910 = vmatprep.subr.bf16.mxu1 %v14864_v58  ;;  %v14924_v58 = vld [vmem:[%s19639_s3 + $0x30] sm:$0xff]  }
  0x9a   :  { %12623 = vmatmul.mubr.msk.bf16.vlgmr.msra.gmra.mrb[72].mxu0 %vm1033_vm2, %v16038_v19 }
  0x9b   :  { %2870 = vmatpush1.bf16.msra.mxu0 %v14853_v60  ;;  %12624 = vmatmul.mubr.msk.bf16.vlgmr.msra.gmra.mrb[72].mxu1 %vm1033_vm2, %v16038_v19  ;;  %v14921_v60 = vld [vmem:[%s19639_s3 + $0xa8] sm:$0xff]  }
  0x9c   :  { %2871 = vmatprep.subr.bf16.mxu0 %v1273_v61  ;;  %2911 = vmatpush1.bf16.msra.mxu1 %v14862_v62  ;;  %v14923_v61 = vld [vmem:[%s19639_s3 + $0xf0] sm:$0xff]   ;;  %v14928_v62 = vld [vmem:[%s19639_s3 + $0x38] sm:$0xff]  }
  0x9d   :  { %2901 = vmatprep.mubr.bf16.mxu0 %v19649_v6  ;;  %2912 = vmatprep.subr.bf16.mxu1 %v1279_v63  ;;  %v14930_v63 = vld [vmem:[%s19639_s3 + $0x140] sm:$0xff]  }
  0x9e   :  { %2942 = vmatprep.mubr.bf16.mxu1 %v19649_v6 }
  0x9f   :  { %2872 = vmatpush1.bf16.msra.mxu0 %v1270_v1  ;;  %v14927_v1 = vld [vmem:[%s19639_s3 + $0xf8] sm:$0xff]  }
  0xa0   :  { %2951 = vmatprep.subr.bf16.mxu0 %v14867_v3  ;;  %2913 = vmatpush1.bf16.msra.mxu1 %v1276_v5  ;;  %v14931_v3 = vld [vmem:[%s19639_s3 + $0x1c0] sm:$0xff]  }
  0xa1   :  { %2992 = vmatprep.subr.bf16.mxu1 %v14876_v9 }
  0xa2   :  { %12625 = vmatmul.mubr.msk.bf16.vlgmr.msra.gmra.mrb[76].mxu0 %vm1033_vm2, %v16038_v19 }
  0xa3   :  { %2952 = vmatpush1.bf16.msra.mxu0 %v14865_v11  ;;  %12626 = vmatmul.mubr.msk.bf16.vlgmr.msra.gmra.mrb[76].mxu1 %vm1033_vm2, %v16038_v19 }
  0xa4   :  { %2953 = vmatprep.subr.bf16.mxu0 %v1285_v12  ;;  %2993 = vmatpush1.bf16.msra.mxu1 %v14874_v13 }
  0xa5   :  { %2983 = vmatprep.mubr.bf16.mxu0 %v19649_v6  ;;  %2994 = vmatprep.subr.bf16.mxu1 %v1291_v14 }
  0xa6   :  { %3024 = vmatprep.mubr.bf16.mxu1 %v19649_v6 }
  0xa7   :  { %2954 = vmatpush1.bf16.msra.mxu0 %v1282_v16 }
  0xa8   :  { %3033 = vmatprep.subr.bf16.mxu0 %v14879_v18  ;;  %2995 = vmatpush1.bf16.msra.mxu1 %v1288_v20 }
  0xa9   :  { %3074 = vmatprep.subr.bf16.mxu1 %v14888_v22 }
  0xaa   :  { %12627 = vmatmul.mubr.msk.bf16.vlgmr.msra.gmra.mrb[80].mxu0 %vm1033_vm2, %v16038_v19 }
  0xab   :  { %3034 = vmatpush1.bf16.msra.mxu0 %v14877_v24  ;;  %12628 = vmatmul.mubr.msk.bf16.vlgmr.msra.gmra.mrb[80].mxu1 %vm1033_vm2, %v16038_v19 }
  0xac   :  { %3035 = vmatprep.subr.bf16.mxu0 %v1297_v25  ;;  %3075 = vmatpush1.bf16.msra.mxu1 %v14886_v26 }
  0xad   :  { %3065 = vmatprep.mubr.bf16.mxu0 %v19649_v6  ;;  %3076 = vmatprep.subr.bf16.mxu1 %v1303_v27  ;;  %v14932_v27 = vld [vmem:[%s19639_s3 + $0x100] sm:$0xff]  }
  0xae   :  { %3106 = vmatprep.mubr.bf16.mxu1 %v19649_v6 }
  0xaf   :  { %3036 = vmatpush1.bf16.msra.mxu0 %v1294_v29 }
  0xb0   :  { %3115 = vmatprep.subr.bf16.mxu0 %v14891_v30  ;;  %3077 = vmatpush1.bf16.msra.mxu1 %v1300_v31  ;;  %v14933_v31 = vld [vmem:[%s19639_s3 + $0x180] sm:$0xff]  }
  0xb1   :  { %13442 = vmatprep.subr.bf16.mxu1 %v14898_v33 }
  0xb2   :  { %12629 = vmatmul.mubr.msk.bf16.vlgmr.msra.gmra.mrb[84].mxu0 %vm1033_vm2, %v16038_v19 }
  0xb3   :  { %3116 = vmatpush1.bf16.msra.mxu0 %v14889_v34  ;;  %12630 = vmatmul.mubr.msk.bf16.vlgmr.msra.gmra.mrb[84].mxu1 %vm1033_vm2, %v16038_v19  ;;  %v14934_v34 = vld [vmem:[%s19639_s3 + $0x148] sm:$0xff]  }
  0xb4   :  { %3117 = vmatprep.subr.bf16.mxu0 %v1309_v35  ;;  %3147 = vmatprep.mubr.bf16.mxu0 %v19649_v6  ;;  %v14935_v35 = vld [vmem:[%s19639_s3 + $0x1c8] sm:$0xff]  }
  0xb5   :  { %13443 = vmatpush3.bf16.msra.mxu1 %v14900_v36 }
  0xb6   :  { %13444 = vmatprep.subr.bf16.mxu1 %v14902_v37  ;;  %v14936_v37 = vld [vmem:[%s19639_s3 + $0x108] sm:$0xff]  }
  0xb7   :  { %3118 = vmatpush1.bf16.msra.mxu0 %v1306_v38  ;;  %v14937_v38 = vld [vmem:[%s19639_s3 + $0x188] sm:$0xff]  }
  0xb8   :  { %13464 = vmatprep.subr.bf16.mxu0 %v14899_v39 }
  0xb9   :  { %13445 = vmatpush3.bf16.msra.mxu1 %v14904_v40 }
  0xba   :  { %12631 = vmatmul.mubr.msk.bf16.vlgmr.msra.gmra.mrb[88].mxu0 %vm1033_vm2, %v16038_v19  ;;  %13446 = vmatprep.subr.bf16.mxu1 %v14906_v8  ;;  %v14912_v19 = vld [vmem:[%s19639_s3 + $0x18] sm:$0xff]  }
  0xbb   :  { %13465 = vmatpush3.bf16.msra.mxu0 %v14901_v41 }
  0xbc   :  { %13466 = vmatprep.subr.bf16.mxu0 %v14903_v42  ;;  %v14938_v42 = vld [vmem:[%s19639_s3 + $0x150] sm:$0xff]  }
  0xbd   :  { %13447 = vmatpush3.bf16.msra.mxu1 %v14908_v43  ;;  %v14939_v43 = vld [vmem:[%s19639_s3 + $0x1d0] sm:$0xff]  }
  0xbe   :  { %13448 = vmatprep.subr.bf16.mxu1 %v14910_v44 }
  0xbf   :  { %13467 = vmatpush3.bf16.msra.mxu0 %v14905_v45 }
  0xc0   :  { %13468 = vmatprep.subr.bf16.mxu0 %v14907_v46 }
  0xc1   :  { %13449 = vmatpush3.bf16.msra.mxu1 %v14912_v19  ;;  %v14940_v19 = vld [vmem:[%s19639_s3 + $0x110] sm:$0xff]  }
  0xc2   :  { %13450 = vmatprep.subr.bf16.mxu1 %v14914_v47 }
  0xc3   :  { %13469 = vmatpush3.bf16.msra.mxu0 %v14909_v48  ;;  %v14941_v48 = vld [vmem:[%s19639_s3 + $0x190] sm:$0xff]  }
  0xc4   :  { %13470 = vmatprep.subr.bf16.mxu0 %v14911_v49 }
  0xc5   :  { %13451 = vmatpush3.bf16.msra.mxu1 %v14916_v50 }
  0xc6   :  { %13452 = vmatprep.subr.bf16.mxu1 %v14918_v51  ;;  %v14942_v51 = vld [vmem:[%s19639_s3 + $0x158] sm:$0xff]  }
  0xc7   :  { %13471 = vmatpush3.bf16.msra.mxu0 %v14913_v52  ;;  %v14943_v52 = vld [vmem:[%s19639_s3 + $0x1d8] sm:$0xff]  }
  0xc8   :  { %13472 = vmatprep.subr.bf16.mxu0 %v14915_v53 }
  0xc9   :  { %13453 = vmatpush3.bf16.msra.mxu1 %v14920_v54  ;;  %v14944_v54 = vld [vmem:[%s19639_s3 + $0x118] sm:$0xff]  }
  0xca   :  { %13454 = vmatprep.subr.bf16.mxu1 %v14922_v55 }
  0xcb   :  { %13473 = vmatpush3.bf16.msra.mxu0 %v14917_v56  ;;  %v14945_v56 = vld [vmem:[%s19639_s3 + $0x198] sm:$0xff]  }
  0xcc   :  { %13474 = vmatprep.subr.bf16.mxu0 %v14919_v57  ;;  %v14946_v57 = vld [vmem:[%s19639_s3 + $0x160] sm:$0xff]  }
  0xcd   :  { %13455 = vmatpush3.bf16.msra.mxu1 %v14924_v58 }
  0xce   :  { %13456 = vmatprep.subr.bf16.mxu1 %v14926_v59 }
  0xcf   :  { %13475 = vmatpush3.bf16.msra.mxu0 %v14921_v60 }
  0xd0   :  { %13476 = vmatprep.subr.bf16.mxu0 %v14923_v61 }
  0xd1   :  { %13457 = vmatpush3.bf16.msra.mxu1 %v14928_v62 }
  0xd2   :  { %13486 = vmatprep.subr.bf16.mxu1 %v14930_v63 }
  0xd3   :  { %13477 = vmatpush3.bf16.msra.mxu0 %v14925_v0  ;;  %v14947_v0 = vld [vmem:[%s19639_s3 + $0x1e0] sm:$0xff]  }
  0xd4   :  { %13478 = vmatprep.subr.bf16.mxu0 %v14927_v1 }
  0xd7   :  { %13479 = vmatpush3.bf16.msra.mxu0 %v14929_v2  ;;  %v14948_v2 = vld [vmem:[%s19639_s3 + $0x120] sm:$0xff]  }
  0xd8   :  { %13508 = vmatprep.subr.bf16.mxu0 %v14931_v3  ;;  %v14949_v3 = vld [vmem:[%s19639_s3 + $0x1a0] sm:$0xff]  }
  0xdd   :  { %v1345_v5 = vpop.f32.mrb[0].mxu0 }
  0xde   :  { %v1386_v7 = vpop.f32.mrb[0].mxu1  ;;  %15700 = vtanh.f32 %v1345_v5  ;;  %v1347_v9 = vpop.f32.mrb[1].mxu0  ;;  %v14950_v5 = vld [vmem:[%s19639_s3 + $0x168] sm:$0xff]  }
  0xdf   :  { %v1388_v10 = vpop.f32.mrb[1].mxu1  ;;  %15702 = vtanh.f32 %v1386_v7  ;;  %v1349_v11 = vpop.f32.mrb[2].mxu0  ;;  %v14951_v7 = vld [vmem:[%s19639_s3 + $0x1e8] sm:$0xff]  }
  0xe0   :  { %v1390_v12 = vpop.f32.mrb[2].mxu1  ;;  %15704 = vtanh.f32 %v1347_v9  ;;  %v1350_v13 = vpop.f32.mrb[3].mxu0  ;;  %v14953_v11 = vld [vmem:[%s19639_s3 + $0x1a8] sm:$0xff]  }
  0xe1   :  { %v1391_v14 = vpop.f32.mrb[3].mxu1  ;;  %15706 = vtanh.f32 %v1388_v10  ;;  %v14952_v10 = vld [vmem:[%s19639_s3 + $0x128] sm:$0xff]  }
  0xe5   :  { %v16871_v15 = vpop.f32.mrb[4].mxu0 }
  0xe6   :  { %v1429_v16 = vpop.f32.mrb[5].mxu0  ;;  %v16873_v17 = vpop.f32.mrb[4].mxu1 }
  0xe7   :  { %15708 = vtanh.f32 %v1429_v16  ;;  %v1431_v18 = vpop.f32.mrb[6].mxu0  ;;  %v1470_v20 = vpop.f32.mrb[5].mxu1  ;;  %v14954_v16 = vld [vmem:[%s19639_s3 + $0x170] sm:$0xff]  }
  0xe8   :  { %v15701_v21 = vpop.eup %15700  ;;  %v1432_v22 = vpop.f32.mrb[7].mxu0  ;;  %15710 = vtanh.f32 %v1470_v20 }
  0xe9   :  { %v1472_v23 = vpop.f32.mrb[6].mxu1  ;;  %v15703_v24 = vpop.eup %15702  ;;  %v3246_v32 = vpack.c.bf16 %v15701_v21, %v15701_v21  ;;  %15712 = vtanh.f32 %v16871_v15  ;;  %v14956_v21 = vld [vmem:[%s19639_s3 + $0x130] sm:$0xff]  }
  0xea   :  { %v1473_v25 = vpop.f32.mrb[7].mxu1  ;;  %v15705_v26 = vpop.eup %15704  ;;  %v3248_v29 = vpack.c.bf16 %v15703_v24, %v15703_v24  ;;  %15714 = vtanh.f32 %v16873_v17  ;;  %v14955_v17 = vld [vmem:[%s19639_s3 + $0x1f0] sm:$0xff]   ;;  %v14958_v24 = vld [vmem:[%s19639_s3 + $0x178] sm:$0xff]  }
  0xeb   :  { %v15707_v28 = vpop.eup %15706  ;;  %v3247_v30 = vpack.c.bf16 %v15705_v26, %v15705_v26  ;;  %v14957_v23 = vld [vmem:[%s19639_s3 + $0x1b0] sm:$0xff]   ;;  %v14959_v25 = vld [vmem:[%s19639_s3 + $0x1f8] sm:$0xff]  }
  0xec   :  { %v3249_v33 = vpack.c.bf16 %v15707_v28, %v15707_v28  ;;  %v14960_v26 = vld [vmem:[%s19639_s3 + $0x138] sm:$0xff]  }
  0xed   :  { %9132 = vmatprep.mubr.bf16.mxu1 %v3247_v30  ;;  %v16887_v36 = vpop.f32.mrb[8].mxu0  ;;  %v14961_v28 = vld [vmem:[%s19639_s3 + $0x1b8] sm:$0xff]  }
  0xee   :  { %9172 = vmatprep.mubr.bf16.mxu0 %v3249_v33  ;;  %9133 = vmatmul.mubr.bf16.vlgmr.msra.gmra.mrb[88].mxu1 %v3246_v32  ;;  %v16895_v39 = vpop.f32.mrb[8].mxu1  ;;  %v16897_v40 = vpop.f32.mrb[9].mxu0 }
  0xef   :  { %9173 = vmatmul.mubr.bf16.vlgmr.msra.gmra.mrb[92].mxu0 %v3248_v29  ;;  %13487 = vmatpush3.bf16.msra.mxu1 %v14932_v27  ;;  %v1552_v8 = vpop.f32.mrb[9].mxu1  ;;  %v1513_v41 = vpop.f32.mrb[10].mxu0  ;;  %v14962_v29 = vld [vmem:[%s19639_s3 + $0x240] sm:$0xff]  }
  0xf0   :  { %13509 = vmatpush3.bf16.msra.mxu0 %v14933_v31  ;;  %13488 = vmatprep.subr.bf16.mxu1 %v14934_v34  ;;  %v1554_v44 = vpop.f32.mrb[10].mxu1  ;;  %v1514_v45 = vpop.f32.mrb[11].mxu0  ;;  %15716 = vtanh.f32 %v1552_v8 }
  0xf1   :  { %v15709_v46 = vpop.eup %15708  ;;  %13510 = vmatprep.subr.bf16.mxu0 %v14935_v35  ;;  %v1555_v47 = vpop.f32.mrb[11].mxu1  ;;  %15718 = vtanh.f32 %v16897_v40  ;;  %v14963_v40 = vld [vmem:[%s19639_s3 + $0x2c0] sm:$0xff]  }
  0xf2   :  { %v3251_v49 = vpack.c.bf16 %v15709_v46, %v15709_v46  ;;  %v15711_v50 = vpop.eup %15710  ;;  %v14965_v46 = vld [vmem:[%s19639_s3 + $0x280] sm:$0xff]   ;;  %15720 = vtanh.f32 %v16887_v36 }
  0xf3   :  { %13489 = vmatpush3.bf16.msra.mxu1 %v14936_v37  ;;  %v3253_v53 = vpack.c.bf16 %v15711_v50, %v15711_v50  ;;  %v15713_v32 = vpop.eup %15712  ;;  %v14968_v50 = vld [vmem:[%s19639_s3 + $0x208] sm:$0xff]   ;;  %15722 = vtanh.f32 %v16895_v39  ;;  %v14988_v39 = vld [vmem:[%s19639_s3 + $0x230] sm:$0xff]  }
  0xf4   :  { %13511 = vmatpush3.bf16.msra.mxu0 %v14937_v38  ;;  %13490 = vmatprep.subr.bf16.mxu1 %v14938_v42  ;;  %v15715_v35 = vpop.eup %15714  ;;  %v3250_v42 = vpack.c.bf16 %v15713_v32, %v15713_v32  ;;  %v14983_v32 = vld [vmem:[%s19639_s3 + $0x2e8] sm:$0xff]  }
  0xf5   :  { %13512 = vmatprep.subr.bf16.mxu0 %v14939_v43  ;;  %9212 = vmatprep.mubr.bf16.mxu1 %v3251_v49  ;;  %v16920_v55 = vpop.f32.mrb[12].mxu0  ;;  %v14964_v43 = vld [vmem:[%s19639_s3 + $0x200] sm:$0xff]   ;;  %v3252_v45 = vpack.c.bf16 %v15715_v35, %v15715_v35  ;;  %v14984_v35 = vld [vmem:[%s19639_s3 + $0x228] sm:$0xff]  }
  0xf6   :  { %9252 = vmatprep.mubr.bf16.mxu0 %v3253_v53  ;;  %v16928_v58 = vpop.f32.mrb[12].mxu1  ;;  %v16930_v59 = vpop.f32.mrb[13].mxu0 }
  0xf7   :  { %13491 = vmatpush3.bf16.msra.mxu1 %v14940_v19  ;;  %v16932_v60 = vpop.f32.mrb[13].mxu1  ;;  %v1595_v61 = vpop.f32.mrb[14].mxu0  ;;  %v14966_v19 = vld [vmem:[%s19639_s3 + $0x248] sm:$0xff]  }
  0xf8   :  { %13513 = vmatpush3.bf16.msra.mxu0 %v14941_v48  ;;  %13492 = vmatprep.subr.bf16.mxu1 %v14942_v51  ;;  %v1636_v62 = vpop.f32.mrb[14].mxu1  ;;  %v1596_v63 = vpop.f32.mrb[15].mxu0  ;;  %v14967_v48 = vld [vmem:[%s19639_s3 + $0x2c8] sm:$0xff]   ;;  %v14970_v61 = vld [vmem:[%s19639_s3 + $0x250] sm:$0xff]   ;;  %15724 = vtanh.f32 %v16932_v60 }
  0xf9   :  { %13514 = vmatprep.subr.bf16.mxu0 %v14943_v52  ;;  %v1637_v1 = vpop.f32.mrb[15].mxu1  ;;  %v14969_v51 = vld [vmem:[%s19639_s3 + $0x288] sm:$0xff]   ;;  %v14971_v62 = vld [vmem:[%s19639_s3 + $0x2d0] sm:$0xff]   ;;  %15726 = vtanh.f32 %v16930_v59  ;;  %v14991_v59 = vld [vmem:[%s19639_s3 + $0x2f8] sm:$0xff]  }
  0xfa   :  { %v15717_v41 = vpop.eup %15716  ;;  %v14972_v1 = vld [vmem:[%s19639_s3 + $0x210] sm:$0xff]   ;;  %15728 = vtanh.f32 %v16920_v55 }
  0xfb   :  { %13493 = vmatpush3.bf16.msra.mxu1 %v14944_v54  ;;  %v15719_v44 = vpop.eup %15718  ;;  %v3257_v47 = vpack.c.bf16 %v15717_v41, %v15717_v41  ;;  %v14986_v41 = vld [vmem:[%s19639_s3 + $0x270] sm:$0xff]   ;;  %15730 = vtanh.f32 %v16928_v58 }
  0xfc   :  { %13515 = vmatpush3.bf16.msra.mxu0 %v14945_v56  ;;  %13494 = vmatprep.subr.bf16.mxu1 %v14946_v57  ;;  %v3255_v52 = vpack.c.bf16 %v15719_v44, %v15719_v44  ;;  %v15020_v55 = vld [vmem:[%s19639_s3 + $0x330] sm:$0xff]  }
  0xfd   :  { %13516 = vmatprep.subr.bf16.mxu0 %v14947_v0  ;;  %v16950_v9 = vpop.f32.mrb[16].mxu0 }
  0xfe   :  { %v16959_v12 = vpop.f32.mrb[16].mxu1  ;;  %v16961_v13 = vpop.f32.mrb[17].mxu0 }
  0xff   :  { %13495 = vmatpush3.bf16.msra.mxu1 %v14948_v2  ;;  %v16963_v14 = vpop.f32.mrb[17].mxu1  ;;  %v1677_v15 = vpop.f32.mrb[18].mxu0  ;;  %15732 = vtanh.f32 %v16961_v13  ;;  %v15023_v13 = vld [vmem:[%s19639_s3 + $0x3f8] sm:$0xff]  }
 0x100   :  { %13517 = vmatpush3.bf16.msra.mxu0 %v14949_v3  ;;  %13496 = vmatprep.subr.bf16.mxu1 %v14950_v5  ;;  %v1718_v18 = vpop.f32.mrb[18].mxu1  ;;  %v1678_v20 = vpop.f32.mrb[19].mxu0  ;;  %v14973_v3 = vld [vmem:[%s19639_s3 + $0x290] sm:$0xff]   ;;  %v14974_v5 = vld [vmem:[%s19639_s3 + $0x258] sm:$0xff]   ;;  %15734 = vtanh.f32 %v16963_v14 }
 0x101   :  { %13518 = vmatprep.subr.bf16.mxu0 %v14951_v7  ;;  %v1719_v22 = vpop.f32.mrb[19].mxu1  ;;  %v14975_v7 = vld [vmem:[%s19639_s3 + $0x2d8] sm:$0xff]   ;;  %15736 = vtanh.f32 %v16950_v9  ;;  %v15052_v9 = vld [vmem:[%s19639_s3 + $0x430] sm:$0xff]  }
 0x102   :  { %v14977_v15 = vld [vmem:[%s19639_s3 + $0x298] sm:$0xff]   ;;  %15738 = vtanh.f32 %v16959_v12 }
 0x103   :  { %13497 = vmatpush3.bf16.msra.mxu1 %v14952_v10  ;;  %v14976_v10 = vld [vmem:[%s19639_s3 + $0x218] sm:$0xff]  }
 0x104   :  { %13519 = vmatpush3.bf16.msra.mxu0 %v14953_v11  ;;  %13498 = vmatprep.subr.bf16.mxu1 %v14954_v16  ;;  %v14978_v16 = vld [vmem:[%s19639_s3 + $0x260] sm:$0xff]   ;;  %v15024_v14 = vld [vmem:[%s19639_s3 + $0x338] sm:$0xff]  }
 0x105   :  { %13520 = vmatprep.subr.bf16.mxu0 %v14955_v17  ;;  %v16987_v27 = vpop.f32.mrb[20].mxu0 }
 0x106   :  { %v16995_v30 = vpop.f32.mrb[20].mxu1  ;;  %v16997_v31 = vpop.f32.mrb[21].mxu0 }
 0x107   :  { %13499 = vmatpush3.bf16.msra.mxu1 %v14956_v21  ;;  %v16999_v33 = vpop.f32.mrb[21].mxu1  ;;  %v1759_v34 = vpop.f32.mrb[22].mxu0  ;;  %15740 = vtanh.f32 %v16997_v31  ;;  %v15055_v31 = vld [vmem:[%s19639_s3 + $0x4f8] sm:$0xff]  }
 0x108   :  { %13521 = vmatpush3.bf16.msra.mxu0 %v14957_v23  ;;  %13500 = vmatprep.subr.bf16.mxu1 %v14958_v24  ;;  %v1800_v37 = vpop.f32.mrb[22].mxu1  ;;  %v1760_v38 = vpop.f32.mrb[23].mxu0  ;;  %v14979_v24 = vld [vmem:[%s19639_s3 + $0x2e0] sm:$0xff]   ;;  %15742 = vtanh.f32 %v16999_v33  ;;  %v15056_v33 = vld [vmem:[%s19639_s3 + $0x438] sm:$0xff]  }
 0x109   :  { %13522 = vmatprep.subr.bf16.mxu0 %v14959_v25  ;;  %v1801_v8 = vpop.f32.mrb[23].mxu1  ;;  %v14985_v37 = vld [vmem:[%s19639_s3 + $0x2a8] sm:$0xff]   ;;  %15744 = vtanh.f32 %v16987_v27  ;;  %v15084_v27 = vld [vmem:[%s19639_s3 + $0x530] sm:$0xff]  }
 0x10a   :  { %15746 = vtanh.f32 %v16995_v30  ;;  %v15086_v30 = vld [vmem:[%s19639_s3 + $0x578] sm:$0xff]  }
 0x10b   :  { %13501 = vmatpush3.bf16.msra.mxu1 %v14960_v26  ;;  %v14980_v26 = vld [vmem:[%s19639_s3 + $0x220] sm:$0xff]  }
 0x10c   :  { %13523 = vmatpush3.bf16.msra.mxu0 %v14961_v28  ;;  %13530 = vmatprep.subr.bf16.mxu1 %v14962_v29  ;;  %v14981_v28 = vld [vmem:[%s19639_s3 + $0x2a0] sm:$0xff]   ;;  %v14982_v29 = vld [vmem:[%s19639_s3 + $0x268] sm:$0xff]  }
 0x10d   :  { %13552 = vmatprep.subr.bf16.mxu0 %v14963_v40  ;;  %v17016_v49 = vpop.f32.mrb[24].mxu0 }
 0x10e   :  { %9213 = vmatmul.mubr.bf16.vlgmr.msra.gmra.mrb[92].mxu1 %v3250_v42  ;;  %v17024_v53 = vpop.f32.mrb[24].mxu1  ;;  %v17026_v54 = vpop.f32.mrb[25].mxu0  ;;  %v14987_v42 = vld [vmem:[%s19639_s3 + $0x2f0] sm:$0xff]  }
 0x10f   :  { %9253 = vmatmul.mubr.bf16.vlgmr.msra.gmra.mrb[96].mxu0 %v3252_v45  ;;  %13531 = vmatpush3.bf16.msra.mxu1 %v14964_v43  ;;  %v17028_v56 = vpop.f32.mrb[25].mxu1  ;;  %v1841_v57 = vpop.f32.mrb[26].mxu0  ;;  %v14989_v45 = vld [vmem:[%s19639_s3 + $0x2b0] sm:$0xff]   ;;  %15748 = vtanh.f32 %v17026_v54  ;;  %v15087_v54 = vld [vmem:[%s19639_s3 + $0x5f8] sm:$0xff]  }
 0x110   :  { %13553 = vmatpush3.bf16.msra.mxu0 %v14965_v46  ;;  %13532 = vmatprep.subr.bf16.mxu1 %v14966_v19  ;;  %v1882_v63 = vpop.f32.mrb[26].mxu1  ;;  %v1842_v0 = vpop.f32.mrb[27].mxu0  ;;  %v14990_v46 = vld [vmem:[%s19639_s3 + $0x278] sm:$0xff]   ;;  %15750 = vtanh.f32 %v17028_v56 }
 0x111   :  { %13554 = vmatprep.subr.bf16.mxu0 %v14967_v48  ;;  %9332 = vmatprep.mubr.bf16.mxu0 %v3257_v47  ;;  %v1883_v2 = vpop.f32.mrb[27].mxu1  ;;  %v14992_v19 = vld [vmem:[%s19639_s3 + $0x238] sm:$0xff]   ;;  %v15721_v57 = vpop.eup %15720  ;;  %15752 = vtanh.f32 %v17016_v49  ;;  %v15116_v49 = vld [vmem:[%s19639_s3 + $0x630] sm:$0xff]  }
 0x112   :  { %9292 = vmatprep.mubr.bf16.mxu1 %v3255_v52  ;;  %v14993_v48 = vld [vmem:[%s19639_s3 + $0x2b8] sm:$0xff]   ;;  %v14995_v2 = vld [vmem:[%s19639_s3 + $0x3c0] sm:$0xff]  }
 0x113   :  { %13533 = vmatpush3.bf16.msra.mxu1 %v14968_v50  ;;  %v14994_v50 = vld [vmem:[%s19639_s3 + $0x340] sm:$0xff]   ;;  %v15088_v56 = vld [vmem:[%s19639_s3 + $0x538] sm:$0xff]  }
 0x114   :  { %13555 = vmatpush3.bf16.msra.mxu0 %v14969_v51  ;;  %13534 = vmatprep.subr.bf16.mxu1 %v14970_v61 }
 0x115   :  { %13556 = vmatprep.subr.bf16.mxu0 %v14971_v62  ;;  %v17051_v11 = vpop.f32.mrb[28].mxu0 }
 0x116   :  { %v17059_v17 = vpop.f32.mrb[28].mxu1  ;;  %v17061_v18 = vpop.f32.mrb[29].mxu0 }
 0x117   :  { %13535 = vmatpush3.bf16.msra.mxu1 %v14972_v1  ;;  %v17063_v20 = vpop.f32.mrb[29].mxu1  ;;  %v1923_v21 = vpop.f32.mrb[30].mxu0 }
 0x118   :  { %13557 = vmatpush3.bf16.msra.mxu0 %v14973_v3  ;;  %13536 = vmatprep.subr.bf16.mxu1 %v14974_v5  ;;  %v1964_v22 = vpop.f32.mrb[30].mxu1  ;;  %v1924_v23 = vpop.f32.mrb[31].mxu0  ;;  %v14998_v21 = vld [vmem:[%s19639_s3 + $0x348] sm:$0xff]  }
 0x119   :  { %13558 = vmatprep.subr.bf16.mxu0 %v14975_v7  ;;  %v1965_v25 = vpop.f32.mrb[31].mxu1  ;;  %v15723_v1 = vpop.eup %15722  ;;  %v3254_v7 = vpack.c.bf16 %v15721_v57, %v15721_v57  ;;  %v14999_v23 = vld [vmem:[%s19639_s3 + $0x3c8] sm:$0xff]   ;;  %v15010_v57 = vld [vmem:[%s19639_s3 + $0x360] sm:$0xff]   ;;  %15754 = vtanh.f32 %v17024_v53  ;;  %v15118_v53 = vld [vmem:[%s19639_s3 + $0x678] sm:$0xff]  }
 0x11a   :  { %v15725_v5 = vpop.eup %15724  ;;  %v3256_v22 = vpack.c.bf16 %v15723_v1, %v15723_v1  ;;  %15756 = vtanh.f32 %v17061_v18  ;;  %v15119_v18 = vld [vmem:[%s19639_s3 + $0x6f8] sm:$0xff]  }
 0x11b   :  { %13537 = vmatpush3.bf16.msra.mxu1 %v14976_v10  ;;  %v14996_v10 = vld [vmem:[%s19639_s3 + $0x300] sm:$0xff]   ;;  %v3261_v25 = vpack.c.bf16 %v15725_v5, %v15725_v5 }
 0x11c   :  { %13559 = vmatpush3.bf16.msra.mxu0 %v14977_v15  ;;  %13538 = vmatprep.subr.bf16.mxu1 %v14978_v16  ;;  %v15727_v15 = vpop.eup %15726  ;;  %v14997_v16 = vld [vmem:[%s19639_s3 + $0x380] sm:$0xff]   ;;  %15758 = vtanh.f32 %v17063_v20  ;;  %v15120_v20 = vld [vmem:[%s19639_s3 + $0x638] sm:$0xff]  }
 0x11d   :  { %13560 = vmatprep.subr.bf16.mxu0 %v14979_v24  ;;  %v17081_v34 = vpop.f32.mrb[32].mxu0  ;;  %v15011_v5 = vld [vmem:[%s19639_s3 + $0x3e0] sm:$0xff]  }
 0x11e   :  { %v17089_v38 = vpop.f32.mrb[32].mxu1  ;;  %v17091_v40 = vpop.f32.mrb[33].mxu0 }
 0x11f   :  { %13539 = vmatpush3.bf16.msra.mxu1 %v14980_v26  ;;  %v17094_v36 = vpop.f32.mrb[33].mxu1  ;;  %v2005_v8 = vpop.f32.mrb[34].mxu0  ;;  %v3259_v26 = vpack.c.bf16 %v15727_v15, %v15727_v15  ;;  %v15013_v15 = vld [vmem:[%s19639_s3 + $0x3a0] sm:$0xff]  }
 0x120   :  { %13561 = vmatpush3.bf16.msra.mxu0 %v14981_v28  ;;  %13540 = vmatprep.subr.bf16.mxu1 %v14982_v29  ;;  %v2046_v43 = vpop.f32.mrb[34].mxu1  ;;  %v2006_v44 = vpop.f32.mrb[35].mxu0  ;;  %v15000_v28 = vld [vmem:[%s19639_s3 + $0x308] sm:$0xff]  }
 0x121   :  { %13562 = vmatprep.subr.bf16.mxu0 %v14983_v32  ;;  %v2047_v60 = vpop.f32.mrb[35].mxu1  ;;  %v15001_v29 = vld [vmem:[%s19639_s3 + $0x388] sm:$0xff]  }
 0x123   :  { %13541 = vmatpush3.bf16.msra.mxu1 %v14984_v35 }
 0x124   :  { %13563 = vmatpush3.bf16.msra.mxu0 %v14985_v37  ;;  %13542 = vmatprep.subr.bf16.mxu1 %v14986_v41  ;;  %v15002_v41 = vld [vmem:[%s19639_s3 + $0x350] sm:$0xff]  }
 0x125   :  { %13564 = vmatprep.subr.bf16.mxu0 %v14987_v42  ;;  %v17119_v47 = vpop.f32.mrb[36].mxu0  ;;  %v15003_v42 = vld [vmem:[%s19639_s3 + $0x3d0] sm:$0xff]  }
 0x126   :  { %v17127_v51 = vpop.f32.mrb[36].mxu1  ;;  %v17129_v52 = vpop.f32.mrb[37].mxu0 }
 0x127   :  { %13543 = vmatpush3.bf16.msra.mxu1 %v14988_v39  ;;  %v17131_v61 = vpop.f32.mrb[37].mxu1  ;;  %v2087_v62 = vpop.f32.mrb[38].mxu0  ;;  %v15004_v39 = vld [vmem:[%s19639_s3 + $0x310] sm:$0xff]  }
 0x128   :  { %13565 = vmatpush3.bf16.msra.mxu0 %v14989_v45  ;;  %13544 = vmatprep.subr.bf16.mxu1 %v14990_v46  ;;  %v2128_v63 = vpop.f32.mrb[38].mxu1  ;;  %v2088_v0 = vpop.f32.mrb[39].mxu0  ;;  %v15005_v45 = vld [vmem:[%s19639_s3 + $0x390] sm:$0xff]   ;;  %v15006_v46 = vld [vmem:[%s19639_s3 + $0x358] sm:$0xff]  }
 0x129   :  { %13566 = vmatprep.subr.bf16.mxu0 %v14991_v59  ;;  %v2129_v3 = vpop.f32.mrb[39].mxu1  ;;  %v15007_v59 = vld [vmem:[%s19639_s3 + $0x3d8] sm:$0xff]  }
 0x12b   :  { %13545 = vmatpush3.bf16.msra.mxu1 %v14992_v19  ;;  %v15008_v19 = vld [vmem:[%s19639_s3 + $0x318] sm:$0xff]  }
 0x12c   :  { %13567 = vmatpush3.bf16.msra.mxu0 %v14993_v48  ;;  %13574 = vmatprep.subr.bf16.mxu1 %v14994_v50  ;;  %v15009_v50 = vld [vmem:[%s19639_s3 + $0x398] sm:$0xff]  }
 0x12d   :  { %13596 = vmatprep.subr.bf16.mxu0 %v14995_v2  ;;  %v17148_v24 = vpop.f32.mrb[40].mxu0 }
 0x12e   :  { %9293 = vmatmul.mubr.bf16.vlgmr.msra.gmra.mrb[96].mxu1 %v3254_v7  ;;  %v17156_v32 = vpop.f32.mrb[40].mxu1  ;;  %v17158_v35 = vpop.f32.mrb[41].mxu0 }
 0x12f   :  { %9333 = vmatmul.mubr.bf16.vlgmr.msra.gmra.mrb[100].mxu0 %v3256_v22  ;;  %13575 = vmatpush3.bf16.msra.mxu1 %v14996_v10  ;;  %v17160_v37 = vpop.f32.mrb[41].mxu1  ;;  %v2169_v8 = vpop.f32.mrb[42].mxu0  ;;  %v15012_v10 = vld [vmem:[%s19639_s3 + $0x320] sm:$0xff]  }
 0x130   :  { %13597 = vmatpush3.bf16.msra.mxu0 %v14997_v16  ;;  %9412 = vmatprep.mubr.bf16.mxu0 %v3261_v25  ;;  %v2210_v43 = vpop.f32.mrb[42].mxu1  ;;  %v2170_v44 = vpop.f32.mrb[43].mxu0  ;;  %v15014_v16 = vld [vmem:[%s19639_s3 + $0x368] sm:$0xff]  }
 0x131   :  { %13576 = vmatprep.subr.bf16.mxu1 %v14998_v21  ;;  %13598 = vmatprep.subr.bf16.mxu0 %v14999_v23  ;;  %v2211_v60 = vpop.f32.mrb[43].mxu1  ;;  %v15015_v21 = vld [vmem:[%s19639_s3 + $0x3e8] sm:$0xff]  }
 0x132   :  { %9372 = vmatprep.mubr.bf16.mxu1 %v3259_v26  ;;  %v15016_v23 = vld [vmem:[%s19639_s3 + $0x328] sm:$0xff]   ;;  %v15022_v60 = vld [vmem:[%s19639_s3 + $0x378] sm:$0xff]  }
 0x133   :  { %13577 = vmatpush3.bf16.msra.mxu1 %v15000_v28  ;;  %v15017_v25 = vld [vmem:[%s19639_s3 + $0x3a8] sm:$0xff]  }
 0x134   :  { %13599 = vmatpush3.bf16.msra.mxu0 %v15001_v29  ;;  %13578 = vmatprep.subr.bf16.mxu1 %v15002_v41  ;;  %v15018_v41 = vld [vmem:[%s19639_s3 + $0x370] sm:$0xff]  }
 0x135   :  { %13600 = vmatprep.subr.bf16.mxu0 %v15003_v42  ;;  %v17183_v48 = vpop.f32.mrb[44].mxu0  ;;  %v15019_v42 = vld [vmem:[%s19639_s3 + $0x3f0] sm:$0xff]  }
 0x136   :  { %v17191_v62 = vpop.f32.mrb[44].mxu1  ;;  %v17193_v63 = vpop.f32.mrb[45].mxu0 }
 0x137   :  { %13579 = vmatpush3.bf16.msra.mxu1 %v15004_v39  ;;  %v17195_v0 = vpop.f32.mrb[45].mxu1  ;;  %v2251_v1 = vpop.f32.mrb[46].mxu0  ;;  %v15021_v39 = vld [vmem:[%s19639_s3 + $0x3b0] sm:$0xff]  }
 0x138   :  { %13601 = vmatpush3.bf16.msra.mxu0 %v15005_v45  ;;  %13580 = vmatprep.subr.bf16.mxu1 %v15006_v46  ;;  %v2292_v2 = vpop.f32.mrb[46].mxu1  ;;  %v2252_v3 = vpop.f32.mrb[47].mxu0  ;;  %v15025_v46 = vld [vmem:[%s19639_s3 + $0x3b8] sm:$0xff]  }
 0x139   :  { %13602 = vmatprep.subr.bf16.mxu0 %v15007_v59  ;;  %v2293_v7 = vpop.f32.mrb[47].mxu1  ;;  %v15026_v59 = vld [vmem:[%s19639_s3 + $0x440] sm:$0xff]  }
 0x13a   :  { %v15027_v7 = vld [vmem:[%s19639_s3 + $0x4c0] sm:$0xff]  }
 0x13b   :  { %13581 = vmatpush3.bf16.msra.mxu1 %v15008_v19 }
 0x13c   :  { %13603 = vmatpush3.bf16.msra.mxu0 %v15009_v50  ;;  %13582 = vmatprep.subr.bf16.mxu1 %v15010_v57 }
 0x13d   :  { %13604 = vmatprep.subr.bf16.mxu0 %v15011_v5  ;;  %v17212_v22 = vpop.f32.mrb[48].mxu0  ;;  %v15729_v5 = vpop.eup %15728  ;;  %15760 = vtanh.f32 %v17051_v11  ;;  %v15148_v11 = vld [vmem:[%s19639_s3 + $0x730] sm:$0xff]  }
 0x13e   :  { %v17220_v26 = vpop.f32.mrb[48].mxu1  ;;  %v17222_v28 = vpop.f32.mrb[49].mxu0 }
 0x13f   :  { %13583 = vmatpush3.bf16.msra.mxu1 %v15012_v10  ;;  %v17225_v29 = vpop.f32.mrb[49].mxu1  ;;  %v2333_v8 = vpop.f32.mrb[50].mxu0 }
 0x140   :  { %13605 = vmatpush3.bf16.msra.mxu0 %v15013_v15  ;;  %13584 = vmatprep.subr.bf16.mxu1 %v15014_v16  ;;  %v2374_v43 = vpop.f32.mrb[50].mxu1  ;;  %v2334_v44 = vpop.f32.mrb[51].mxu0  ;;  %v15028_v16 = vld [vmem:[%s19639_s3 + $0x400] sm:$0xff]   ;;  %v3258_v8 = vpack.c.bf16 %v15729_v5, %v15729_v5 }
 0x141   :  { %13606 = vmatprep.subr.bf16.mxu0 %v15015_v21  ;;  %v2375_v58 = vpop.f32.mrb[51].mxu1  ;;  %v15731_v15 = vpop.eup %15730  ;;  %v15031_v43 = vld [vmem:[%s19639_s3 + $0x4c8] sm:$0xff]   ;;  %15762 = vtanh.f32 %v17059_v17  ;;  %v15149_v17 = vld [vmem:[%s19639_s3 + $0x7b0] sm:$0xff]  }
 0x142   :  { %v15733_v21 = vpop.eup %15732  ;;  %v15032_v58 = vld [vmem:[%s19639_s3 + $0x408] sm:$0xff]   ;;  %15764 = vtanh.f32 %v17091_v40 }
 0x143   :  { %13585 = vmatpush3.bf16.msra.mxu1 %v15016_v23  ;;  %v15029_v23 = vld [vmem:[%s19639_s3 + $0x480] sm:$0xff]  }
 0x144   :  { %13607 = vmatpush3.bf16.msra.mxu0 %v15017_v25  ;;  %13586 = vmatprep.subr.bf16.mxu1 %v15018_v41  ;;  %v15735_v25 = vpop.eup %15734  ;;  %v15030_v41 = vld [vmem:[%s19639_s3 + $0x448] sm:$0xff]   ;;  %15766 = vtanh.f32 %v17094_v36 }
 0x145   :  { %13608 = vmatprep.subr.bf16.mxu0 %v15019_v42  ;;  %v17251_v45 = vpop.f32.mrb[52].mxu0  ;;  %v3260_v42 = vpack.c.bf16 %v15731_v15, %v15731_v15  ;;  %v15037_v15 = vld [vmem:[%s19639_s3 + $0x490] sm:$0xff]  }
 0x146   :  { %v17259_v19 = vpop.f32.mrb[52].mxu1  ;;  %v17261_v50 = vpop.f32.mrb[53].mxu0 }
 0x147   :  { %13587 = vmatpush3.bf16.msra.mxu1 %v15020_v55  ;;  %v17263_v57 = vpop.f32.mrb[53].mxu1  ;;  %v2415_v1 = vpop.f32.mrb[54].mxu0  ;;  %v3263_v55 = vpack.c.bf16 %v15733_v21, %v15733_v21  ;;  %v15039_v21 = vld [vmem:[%s19639_s3 + $0x4d8] sm:$0xff]  }
 0x148   :  { %13609 = vmatpush3.bf16.msra.mxu0 %v15021_v39  ;;  %13588 = vmatprep.subr.bf16.mxu1 %v15022_v60  ;;  %v2456_v2 = vpop.f32.mrb[54].mxu1  ;;  %v2416_v3 = vpop.f32.mrb[55].mxu0  ;;  %v15033_v39 = vld [vmem:[%s19639_s3 + $0x488] sm:$0xff]   ;;  %v15034_v1 = vld [vmem:[%s19639_s3 + $0x450] sm:$0xff]  }
 0x149   :  { %13610 = vmatprep.subr.bf16.mxu0 %v15023_v13  ;;  %v2457_v10 = vpop.f32.mrb[55].mxu1  ;;  %v15035_v2 = vld [vmem:[%s19639_s3 + $0x4d0] sm:$0xff]  }
 0x14b   :  { %13589 = vmatpush3.bf16.msra.mxu1 %v15024_v14  ;;  %v3265_v14 = vpack.c.bf16 %v15735_v25, %v15735_v25 }
 0x14c   :  { %13611 = vmatpush3.bf16.msra.mxu0 %v15025_v46  ;;  %13618 = vmatprep.subr.bf16.mxu1 %v15026_v59 }
 0x14d   :  { %13640 = vmatprep.subr.bf16.mxu0 %v15027_v7  ;;  %v17280_v44 = vpop.f32.mrb[56].mxu0  ;;  %v15036_v7 = vld [vmem:[%s19639_s3 + $0x410] sm:$0xff]  }
 0x14e   :  { %9373 = vmatmul.mubr.bf16.vlgmr.msra.gmra.mrb[100].mxu1 %v3258_v8  ;;  %v17288_v60 = vpop.f32.mrb[56].mxu1  ;;  %v17290_v13 = vpop.f32.mrb[57].mxu0  ;;  %v15041_v8 = vld [vmem:[%s19639_s3 + $0x498] sm:$0xff]  }
 0x14f   :  { %9413 = vmatmul.mubr.bf16.vlgmr.msra.gmra.mrb[104].mxu0 %v3260_v42  ;;  %13619 = vmatpush3.bf16.msra.mxu1 %v15028_v16  ;;  %v17292_v46 = vpop.f32.mrb[57].mxu1  ;;  %v2497_v59 = vpop.f32.mrb[58].mxu0  ;;  %v15038_v16 = vld [vmem:[%s19639_s3 + $0x458] sm:$0xff]  }
 0x150   :  { %9452 = vmatprep.mubr.bf16.mxu1 %v3263_v55  ;;  %13641 = vmatpush3.bf16.msra.mxu0 %v15029_v23  ;;  %v2538_v3 = vpop.f32.mrb[58].mxu1  ;;  %v2498_v5 = vpop.f32.mrb[59].mxu0  ;;  %v15040_v23 = vld [vmem:[%s19639_s3 + $0x418] sm:$0xff]   ;;  %v15043_v59 = vld [vmem:[%s19639_s3 + $0x4e0] sm:$0xff]  }
 0x151   :  { %9492 = vmatprep.mubr.bf16.mxu0 %v3265_v14  ;;  %13620 = vmatprep.subr.bf16.mxu1 %v15030_v41  ;;  %v2539_v10 = vpop.f32.mrb[59].mxu1  ;;  %v15042_v41 = vld [vmem:[%s19639_s3 + $0x460] sm:$0xff]   ;;  %v15046_v5 = vld [vmem:[%s19639_s3 + $0x468] sm:$0xff]  }
 0x152   :  { %13642 = vmatprep.subr.bf16.mxu0 %v15031_v43  ;;  %v15045_v3 = vld [vmem:[%s19639_s3 + $0x4a0] sm:$0xff]  }
 0x153   :  { %13621 = vmatpush3.bf16.msra.mxu1 %v15032_v58 }
 0x154   :  { %13643 = vmatpush3.bf16.msra.mxu0 %v15033_v39  ;;  %13622 = vmatprep.subr.bf16.mxu1 %v15034_v1 }
 0x155   :  { %13644 = vmatprep.subr.bf16.mxu0 %v15035_v2  ;;  %v17315_v25 = vpop.f32.mrb[60].mxu0  ;;  %v15044_v2 = vld [vmem:[%s19639_s3 + $0x420] sm:$0xff]  }
 0x156   :  { %v17323_v42 = vpop.f32.mrb[60].mxu1  ;;  %v17325_v43 = vpop.f32.mrb[61].mxu0 }
 0x157   :  { %13623 = vmatpush3.bf16.msra.mxu1 %v15036_v7  ;;  %v17327_v55 = vpop.f32.mrb[61].mxu1  ;;  %v2579_v58 = vpop.f32.mrb[62].mxu0  ;;  %v15047_v7 = vld [vmem:[%s19639_s3 + $0x4e8] sm:$0xff]  }
 0x158   :  { %13645 = vmatpush3.bf16.msra.mxu0 %v15037_v15  ;;  %13624 = vmatprep.subr.bf16.mxu1 %v15038_v16  ;;  %v2620_v39 = vpop.f32.mrb[62].mxu1  ;;  %v2580_v14 = vpop.f32.mrb[63].mxu0  ;;  %v15048_v15 = vld [vmem:[%s19639_s3 + $0x428] sm:$0xff]   ;;  %v15050_v58 = vld [vmem:[%s19639_s3 + $0x470] sm:$0xff]  }
 0x159   :  { %13646 = vmatprep.subr.bf16.mxu0 %v15039_v21  ;;  %v2621_v1 = vpop.f32.mrb[63].mxu1  ;;  %v15049_v16 = vld [vmem:[%s19639_s3 + $0x4a8] sm:$0xff]   ;;  %v15051_v39 = vld [vmem:[%s19639_s3 + $0x4f0] sm:$0xff]  }
 0x15a   :  { %v15053_v1 = vld [vmem:[%s19639_s3 + $0x4b0] sm:$0xff]  }
 0x15b   :  { %13625 = vmatpush3.bf16.msra.mxu1 %v15040_v23 }
 0x15c   :  { %13647 = vmatpush3.bf16.msra.mxu0 %v15041_v8  ;;  %13626 = vmatprep.subr.bf16.mxu1 %v15042_v41 }
 0x15d   :  { %13648 = vmatprep.subr.bf16.mxu0 %v15043_v59  ;;  %v17344_v10 = vpop.f32.mrb[64].mxu0 }
 0x15e   :  { %v17352_v21 = vpop.f32.mrb[64].mxu1  ;;  %v17354_v23 = vpop.f32.mrb[65].mxu0 }
 0x15f   :  { %13627 = vmatpush3.bf16.msra.mxu1 %v15044_v2  ;;  %v17357_v8 = vpop.f32.mrb[65].mxu1  ;;  %v2661_v41 = vpop.f32.mrb[66].mxu0  ;;  %v15054_v2 = vld [vmem:[%s19639_s3 + $0x478] sm:$0xff]  }
 0x160   :  { %13649 = vmatpush3.bf16.msra.mxu0 %v15045_v3  ;;  %13628 = vmatprep.subr.bf16.mxu1 %v15046_v5  ;;  %v2702_v14 = vpop.f32.mrb[66].mxu1  ;;  %v2662_v59 = vpop.f32.mrb[67].mxu0  ;;  %v15057_v5 = vld [vmem:[%s19639_s3 + $0x4b8] sm:$0xff]  }
 0x161   :  { %13650 = vmatprep.subr.bf16.mxu0 %v15047_v7  ;;  %v2703_v12 = vpop.f32.mrb[67].mxu1  ;;  %v15058_v7 = vld [vmem:[%s19639_s3 + $0x540] sm:$0xff]   ;;  %v15737_v59 = vpop.eup %15736  ;;  %15768 = vtanh.f32 %v17081_v34  ;;  %v15179_v34 = vld [vmem:[%s19639_s3 + $0x8f0] sm:$0xff]  }
 0x162   :  { %v15059_v12 = vld [vmem:[%s19639_s3 + $0x5c0] sm:$0xff]   ;;  %v15739_v6 = vpop.eup %15738  ;;  %15770 = vtanh.f32 %v17089_v38  ;;  %v15180_v38 = vld [vmem:[%s19639_s3 + $0x830] sm:$0xff]  }
 0x163   :  { %13629 = vmatpush3.bf16.msra.mxu1 %v15048_v15 }
 0x164   :  { %13651 = vmatpush3.bf16.msra.mxu0 %v15049_v16  ;;  %13630 = vmatprep.subr.bf16.mxu1 %v15050_v58 }
 0x165   :  { %13652 = vmatprep.subr.bf16.mxu0 %v15051_v39  ;;  %v17383_v3 = vpop.f32.mrb[68].mxu0 }
 0x166   :  { %19651 = vst [vmem:[#allocation5_spill] sm:$0xff] %v17383_v3  ;;  %v17391_v15 = vpop.f32.mrb[68].mxu1  ;;  %v17393_v16 = vpop.f32.mrb[69].mxu0 }
 0x167   :  { %19652 = vst [vmem:[#allocation6_spill] sm:$0xff] %v17391_v15  ;;  %13631 = vmatpush3.bf16.msra.mxu1 %v15052_v9  ;;  %v17395_v41 = vpop.f32.mrb[69].mxu1  ;;  %v2743_v58 = vpop.f32.mrb[70].mxu0  ;;  %v15060_v15 = vld [vmem:[%s19639_s3 + $0x500] sm:$0xff]  }
 0x168   :  { %19653 = vst [vmem:[#allocation7_spill] sm:$0xff] %v17395_v41  ;;  %13653 = vmatpush3.bf16.msra.mxu0 %v15053_v1  ;;  %13632 = vmatprep.subr.bf16.mxu1 %v15054_v2  ;;  %v2784_v39 = vpop.f32.mrb[70].mxu1  ;;  %v2744_v14 = vpop.f32.mrb[71].mxu0  ;;  %v15061_v1 = vld [vmem:[%s19639_s3 + $0x580] sm:$0xff]   ;;  %v3262_v58 = vpack.c.bf16 %v15737_v59, %v15737_v59  ;;  %v15064_v59 = vld [vmem:[%s19639_s3 + $0x508] sm:$0xff]  }
 0x169   :  { %13654 = vmatprep.subr.bf16.mxu0 %v15055_v31  ;;  %v2785_v4 = vpop.f32.mrb[71].mxu1  ;;  %v15741_v9 = vpop.eup %15740  ;;  %v15062_v31 = vld [vmem:[%s19639_s3 + $0x548] sm:$0xff]   ;;  %15772 = vtanh.f32 %v17129_v52 }
 0x16a   :  { %v15743_v2 = vpop.eup %15742  ;;  %v3264_v4 = vpack.c.bf16 %v15739_v6, %v15739_v6  ;;  %v15063_v39 = vld [vmem:[%s19639_s3 + $0x5c8] sm:$0xff]   ;;  %15774 = vtanh.f32 %v17131_v61  ;;  %v15182_v61 = vld [vmem:[%s19639_s3 + $0x878] sm:$0xff]  }
 0x16b   :  { %13633 = vmatpush3.bf16.msra.mxu1 %v15056_v33  ;;  %v3267_v33 = vpack.c.bf16 %v15741_v9, %v15741_v9  ;;  %v15066_v9 = vld [vmem:[%s19639_s3 + $0x550] sm:$0xff]  }
 0x16c   :  { %13655 = vmatpush3.bf16.msra.mxu0 %v15057_v5  ;;  %13662 = vmatprep.subr.bf16.mxu1 %v15058_v7  ;;  %v15065_v5 = vld [vmem:[%s19639_s3 + $0x588] sm:$0xff]  }
 0x16d   :  { %13684 = vmatprep.subr.bf16.mxu0 %v15059_v12  ;;  %v17412_v14 = vpop.f32.mrb[72].mxu0  ;;  %v3269_v12 = vpack.c.bf16 %v15743_v2, %v15743_v2 }
 0x16e   :  { %19654 = vst [vmem:[#allocation8_spill] sm:$0xff] %v17412_v14  ;;  %9453 = vmatmul.mubr.bf16.vlgmr.msra.gmra.mrb[104].mxu1 %v3262_v58  ;;  %v17420_v7 = vpop.f32.mrb[72].mxu1  ;;  %v17422_v6 = vpop.f32.mrb[73].mxu0  ;;  %v15067_v58 = vld [vmem:[%s19639_s3 + $0x5d0] sm:$0xff]  }
 0x16f   :  { %19655 = vst [vmem:[#allocation9_spill] sm:$0xff] %v17420_v7  ;;  %9493 = vmatmul.mubr.bf16.vlgmr.msra.gmra.mrb[108].mxu0 %v3264_v4  ;;  %13663 = vmatpush3.bf16.msra.mxu1 %v15060_v15  ;;  %v17424_v3 = vpop.f32.mrb[73].mxu1  ;;  %v2825_v14 = vpop.f32.mrb[74].mxu0  ;;  %v15068_v15 = vld [vmem:[%s19639_s3 + $0x510] sm:$0xff]   ;;  %v15070_v4 = vld [vmem:[%s19639_s3 + $0x558] sm:$0xff]  }
 0x170   :  { %9532 = vmatprep.mubr.bf16.mxu1 %v3267_v33  ;;  %13685 = vmatpush3.bf16.msra.mxu0 %v15061_v1  ;;  %v2866_v41 = vpop.f32.mrb[74].mxu1  ;;  %v2826_v7 = vpop.f32.mrb[75].mxu0  ;;  %v15069_v1 = vld [vmem:[%s19639_s3 + $0x590] sm:$0xff]   ;;  %v15073_v14 = vld [vmem:[%s19639_s3 + $0x598] sm:$0xff]   ;;  %v15074_v33 = vld [vmem:[%s19639_s3 + $0x560] sm:$0xff]  }
 0x171   :  { %9572 = vmatprep.mubr.bf16.mxu0 %v3269_v12  ;;  %13664 = vmatprep.subr.bf16.mxu1 %v15062_v31  ;;  %v2867_v2 = vpop.f32.mrb[75].mxu1  ;;  %v15071_v41 = vld [vmem:[%s19639_s3 + $0x5d8] sm:$0xff]  }
 0x172   :  { %13686 = vmatprep.subr.bf16.mxu0 %v15063_v39  ;;  %v15072_v31 = vld [vmem:[%s19639_s3 + $0x518] sm:$0xff]   ;;  %v15075_v2 = vld [vmem:[%s19639_s3 + $0x5e0] sm:$0xff]  }
 0x173   :  { %13665 = vmatpush3.bf16.msra.mxu1 %v15064_v59 }
 0x174   :  { %13687 = vmatpush3.bf16.msra.mxu0 %v15065_v5  ;;  %13666 = vmatprep.subr.bf16.mxu1 %v15066_v9 }
 0x175   :  { %13688 = vmatprep.subr.bf16.mxu0 %v15067_v58  ;;  %v17447_v39 = vpop.f32.mrb[76].mxu0 }
 0x176   :  { %19656 = vst [vmem:[#allocation10_spill] sm:$0xff] %v17447_v39  ;;  %v17455_v59 = vpop.f32.mrb[76].mxu1  ;;  %v17457_v5 = vpop.f32.mrb[77].mxu0 }
 0x177   :  { %19657 = vst [vmem:[#allocation11_spill] sm:$0xff] %v17455_v59  ;;  %13667 = vmatpush3.bf16.msra.mxu1 %v15068_v15  ;;  %v17459_v7 = vpop.f32.mrb[77].mxu1  ;;  %v2907_v12 = vpop.f32.mrb[78].mxu0  ;;  %v15076_v59 = vld [vmem:[%s19639_s3 + $0x520] sm:$0xff]  }
 0x178   :  { %13689 = vmatpush3.bf16.msra.mxu0 %v15069_v1  ;;  %13668 = vmatprep.subr.bf16.mxu1 %v15070_v4  ;;  %v2948_v9 = vpop.f32.mrb[78].mxu1  ;;  %v2908_v58 = vpop.f32.mrb[79].mxu0  ;;  %v15077_v15 = vld [vmem:[%s19639_s3 + $0x5a0] sm:$0xff]   ;;  %v15078_v1 = vld [vmem:[%s19639_s3 + $0x568] sm:$0xff]   ;;  %v15082_v12 = vld [vmem:[%s19639_s3 + $0x570] sm:$0xff]  }
 0x179   :  { %13690 = vmatprep.subr.bf16.mxu0 %v15071_v41  ;;  %v2949_v39 = vpop.f32.mrb[79].mxu1  ;;  %v15079_v4 = vld [vmem:[%s19639_s3 + $0x5e8] sm:$0xff]   ;;  %v15083_v9 = vld [vmem:[%s19639_s3 + $0x5f0] sm:$0xff]  }
 0x17a   :  { %v15081_v39 = vld [vmem:[%s19639_s3 + $0x5a8] sm:$0xff]  }
 0x17b   :  { %13669 = vmatpush3.bf16.msra.mxu1 %v15072_v31  ;;  %v15080_v31 = vld [vmem:[%s19639_s3 + $0x528] sm:$0xff]  }
 0x17c   :  { %13691 = vmatpush3.bf16.msra.mxu0 %v15073_v14  ;;  %13670 = vmatprep.subr.bf16.mxu1 %v15074_v33 }
 0x17d   :  { %13692 = vmatprep.subr.bf16.mxu0 %v15075_v2  ;;  %v17476_v41 = vpop.f32.mrb[80].mxu0 }
 0x17e   :  { %19658 = vst [vmem:[#allocation12_spill] sm:$0xff] %v17476_v41  ;;  %v17484_v14 = vpop.f32.mrb[80].mxu1  ;;  %v17486_v33 = vpop.f32.mrb[81].mxu0 }
 0x17f   :  { %19659 = vst [vmem:[#allocation13_spill] sm:$0xff] %v17484_v14  ;;  %19660 = vst [vmem:[#allocation14_spill] sm:$0xff] %v17486_v33  ;;  %13671 = vmatpush3.bf16.msra.mxu1 %v15076_v59  ;;  %v17495_v58 = vpop.f32.mrb[81].mxu1  ;;  %v2989_v2 = vpop.f32.mrb[82].mxu0 }
 0x180   :  { %19661 = vst [vmem:[#allocation15_spill] sm:$0xff] %v17495_v58  ;;  %13693 = vmatpush3.bf16.msra.mxu0 %v15077_v15  ;;  %13672 = vmatprep.subr.bf16.mxu1 %v15078_v1  ;;  %v3030_v14 = vpop.f32.mrb[82].mxu1  ;;  %v2990_v41 = vpop.f32.mrb[83].mxu0  ;;  %v15085_v2 = vld [vmem:[%s19639_s3 + $0x5b0] sm:$0xff]   ;;  %v15089_v1 = vld [vmem:[%s19639_s3 + $0x5b8] sm:$0xff]   ;;  %v15093_v58 = vld [vmem:[%s19639_s3 + $0x680] sm:$0xff]  }
 0x181   :  { %13694 = vmatprep.subr.bf16.mxu0 %v15079_v4  ;;  %v3031_v59 = vpop.f32.mrb[83].mxu1 }
 0x183   :  { %13673 = vmatpush3.bf16.msra.mxu1 %v15080_v31  ;;  %v15090_v31 = vld [vmem:[%s19639_s3 + $0x640] sm:$0xff]  }
 0x184   :  { %13695 = vmatpush3.bf16.msra.mxu0 %v15081_v39  ;;  %13674 = vmatprep.subr.bf16.mxu1 %v15082_v12  ;;  %v15091_v39 = vld [vmem:[%s19639_s3 + $0x6c0] sm:$0xff]  }
 0x185   :  { %13696 = vmatprep.subr.bf16.mxu0 %v15083_v9  ;;  %v17515_v15 = vpop.f32.mrb[84].mxu0 }
 0x186   :  { %19662 = vst [vmem:[#allocation16_spill] sm:$0xff] %v17515_v15  ;;  %v17520_v4 = vpop.f32.mrb[84].mxu1  ;;  %v17522_v41 = vpop.f32.mrb[85].mxu0 }
 0x187   :  { %19663 = vst [vmem:[#allocation17_spill] sm:$0xff] %v17520_v4  ;;  %19664 = vst [vmem:[#allocation18_spill] sm:$0xff] %v17522_v41  ;;  %13675 = vmatpush3.bf16.msra.mxu1 %v15084_v27  ;;  %v17530_v14 = vpop.f32.mrb[85].mxu1  ;;  %v3071_v12 = vpop.f32.mrb[86].mxu0  ;;  %v15092_v27 = vld [vmem:[%s19639_s3 + $0x600] sm:$0xff]  }
 0x188   :  { %13697 = vmatpush3.bf16.msra.mxu0 %v15085_v2  ;;  %13676 = vmatprep.subr.bf16.mxu1 %v15086_v30  ;;  %v3112_v9 = vpop.f32.mrb[86].mxu1  ;;  %v3072_v59 = vpop.f32.mrb[87].mxu0  ;;  %v15094_v2 = vld [vmem:[%s19639_s3 + $0x648] sm:$0xff]  }
 0x189   :  { %v15745_v15 = vpop.eup %15744  ;;  %13698 = vmatprep.subr.bf16.mxu0 %v15087_v54  ;;  %v3113_v4 = vpop.f32.mrb[87].mxu1  ;;  %v15095_v54 = vld [vmem:[%s19639_s3 + $0x6c8] sm:$0xff]   ;;  %15776 = vtanh.f32 %v17119_v47  ;;  %v15212_v47 = vld [vmem:[%s19639_s3 + $0x930] sm:$0xff]  }
 0x18a   :  { %v15747_v41 = vpop.eup %15746  ;;  %v3266_v12 = vpack.c.bf16 %v15745_v15, %v15745_v15  ;;  %v15096_v9 = vld [vmem:[%s19639_s3 + $0x608] sm:$0xff]   ;;  %15778 = vtanh.f32 %v17127_v51  ;;  %v15213_v51 = vld [vmem:[%s19639_s3 + $0x9b0] sm:$0xff]  }
 0x18b   :  { %v15749_v33 = vpop.eup %15748  ;;  %13677 = vmatpush3.bf16.msra.mxu1 %v15088_v56  ;;  %v3268_v4 = vpack.c.bf16 %v15747_v41, %v15747_v41  ;;  %v15097_v15 = vld [vmem:[%s19639_s3 + $0x688] sm:$0xff]   ;;  %v15098_v41 = vld [vmem:[%s19639_s3 + $0x650] sm:$0xff]   ;;  %15780 = vtanh.f32 %v17158_v35 }
 0x18c   :  { %v15751_v30 = vpop.eup %15750  ;;  %13699 = vmatpush3.bf16.msra.mxu0 %v15089_v1  ;;  %13706 = vmatprep.subr.bf16.mxu1 %v15090_v31  ;;  %v3271_v56 = vpack.c.bf16 %v15749_v33, %v15749_v33  ;;  %v15099_v33 = vld [vmem:[%s19639_s3 + $0x6d0] sm:$0xff]   ;;  %15782 = vtanh.f32 %v17160_v37 }
 0x18d   :  { %13728 = vmatprep.subr.bf16.mxu0 %v15091_v39  ;;  %v17547_v59 = vpop.f32.mrb[88].mxu0  ;;  %v3273_v31 = vpack.c.bf16 %v15751_v30, %v15751_v30  ;;  %v15100_v30 = vld [vmem:[%s19639_s3 + $0x610] sm:$0xff]  }
 0x18e   :  { %9533 = vmatmul.mubr.bf16.vlgmr.msra.gmra.mrb[108].mxu1 %v3266_v12  ;;  %v17552_v1 = vpop.f32.mrb[89].mxu0 }
 0x18f   :  { %9573 = vmatmul.mubr.bf16.vlgmr.msra.gmra.mrb[112].mxu0 %v3268_v4  ;;  %13707 = vmatpush3.bf16.msra.mxu1 %v15092_v27  ;;  %v3153_v39 = vpop.f32.mrb[90].mxu0  ;;  %v15101_v27 = vld [vmem:[%s19639_s3 + $0x690] sm:$0xff]   ;;  %v15105_v4 = vld [vmem:[%s19639_s3 + $0x698] sm:$0xff]  }
 0x190   :  { %9612 = vmatprep.mubr.bf16.mxu1 %v3271_v56  ;;  %13729 = vmatpush3.bf16.msra.mxu0 %v15093_v58  ;;  %v3154_v12 = vpop.f32.mrb[91].mxu0  ;;  %v15102_v58 = vld [vmem:[%s19639_s3 + $0x658] sm:$0xff]   ;;  %v15107_v56 = vld [vmem:[%s19639_s3 + $0x6e0] sm:$0xff]   ;;  %v15111_v39 = vld [vmem:[%s19639_s3 + $0x6e8] sm:$0xff]  }
 0x191   :  { %9652 = vmatprep.mubr.bf16.mxu0 %v3273_v31  ;;  %13708 = vmatprep.subr.bf16.mxu1 %v15094_v2  ;;  %v15103_v2 = vld [vmem:[%s19639_s3 + $0x6d8] sm:$0xff]   ;;  %v15109_v31 = vld [vmem:[%s19639_s3 + $0x6a0] sm:$0xff]   ;;  %v15113_v12 = vld [vmem:[%s19639_s3 + $0x6a8] sm:$0xff]  }
 0x192   :  { %13730 = vmatprep.subr.bf16.mxu0 %v15095_v54  ;;  %v15104_v54 = vld [vmem:[%s19639_s3 + $0x618] sm:$0xff]  }
 0x193   :  { %13709 = vmatpush3.bf16.msra.mxu1 %v15096_v9  ;;  %v15106_v9 = vld [vmem:[%s19639_s3 + $0x660] sm:$0xff]  }
 0x194   :  { %13731 = vmatpush3.bf16.msra.mxu0 %v15097_v15  ;;  %13710 = vmatprep.subr.bf16.mxu1 %v15098_v41  ;;  %v15108_v15 = vld [vmem:[%s19639_s3 + $0x620] sm:$0xff]   ;;  %v15110_v41 = vld [vmem:[%s19639_s3 + $0x668] sm:$0xff]  }
 0x195   :  { %13732 = vmatprep.subr.bf16.mxu0 %v15099_v33  ;;  %v15112_v33 = vld [vmem:[%s19639_s3 + $0x628] sm:$0xff]  }
 0x197   :  { %13711 = vmatpush3.bf16.msra.mxu1 %v15100_v30  ;;  %v15114_v30 = vld [vmem:[%s19639_s3 + $0x670] sm:$0xff]  }
 0x198   :  { %13733 = vmatpush3.bf16.msra.mxu0 %v15101_v27  ;;  %13712 = vmatprep.subr.bf16.mxu1 %v15102_v58  ;;  %v15115_v27 = vld [vmem:[%s19639_s3 + $0x6f0] sm:$0xff]  }
 0x199   :  { %13734 = vmatprep.subr.bf16.mxu0 %v15103_v2  ;;  %v15117_v58 = vld [vmem:[%s19639_s3 + $0x6b0] sm:$0xff]   ;;  %v15121_v2 = vld [vmem:[%s19639_s3 + $0x6b8] sm:$0xff]  }
 0x19b   :  { %13713 = vmatpush3.bf16.msra.mxu1 %v15104_v54  ;;  %v15122_v54 = vld [vmem:[%s19639_s3 + $0x740] sm:$0xff]  }
 0x19c   :  { %13735 = vmatpush3.bf16.msra.mxu0 %v15105_v4  ;;  %13714 = vmatprep.subr.bf16.mxu1 %v15106_v9  ;;  %v15123_v4 = vld [vmem:[%s19639_s3 + $0x7c0] sm:$0xff]   ;;  %v15753_v9 = vpop.eup %15752  ;;  %15784 = vtanh.f32 %v17148_v24  ;;  %v15243_v24 = vld [vmem:[%s19639_s3 + $0xaf0] sm:$0xff]  }
 0x19d   :  { %13736 = vmatprep.subr.bf16.mxu0 %v15107_v56  ;;  %v15124_v56 = vld [vmem:[%s19639_s3 + $0x700] sm:$0xff]  }
 0x19f   :  { %13715 = vmatpush3.bf16.msra.mxu1 %v15108_v15  ;;  %v15755_v15 = vpop.eup %15754  ;;  %15786 = vtanh.f32 %v17156_v32  ;;  %v15244_v32 = vld [vmem:[%s19639_s3 + $0xa30] sm:$0xff]  }
 0x1a0   :  { %13737 = vmatpush3.bf16.msra.mxu0 %v15109_v31  ;;  %13716 = vmatprep.subr.bf16.mxu1 %v15110_v41  ;;  %v15125_v31 = vld [vmem:[%s19639_s3 + $0x780] sm:$0xff]   ;;  %v15757_v41 = vpop.eup %15756  ;;  %15788 = vtanh.f32 %v17193_v63 }
 0x1a1   :  { %13738 = vmatprep.subr.bf16.mxu0 %v15111_v39  ;;  %v15126_v39 = vld [vmem:[%s19639_s3 + $0x748] sm:$0xff]  }
 0x1a3   :  { %13717 = vmatpush3.bf16.msra.mxu1 %v15112_v33  ;;  %v15759_v33 = vpop.eup %15758  ;;  %15790 = vtanh.f32 %v17195_v0  ;;  %v15246_v0 = vld [vmem:[%s19639_s3 + $0xa78] sm:$0xff]  }
 0x1a4   :  { %13739 = vmatpush3.bf16.msra.mxu0 %v15113_v12  ;;  %13718 = vmatprep.subr.bf16.mxu1 %v15114_v30  ;;  %v3270_v12 = vpack.c.bf16 %v15753_v9, %v15753_v9  ;;  %v15127_v30 = vld [vmem:[%s19639_s3 + $0x7c8] sm:$0xff]   ;;  %v15134_v9 = vld [vmem:[%s19639_s3 + $0x758] sm:$0xff]  }
 0x1a5   :  { %13740 = vmatprep.subr.bf16.mxu0 %v15115_v27  ;;  %v3272_v27 = vpack.c.bf16 %v15755_v15, %v15755_v15  ;;  %v15136_v15 = vld [vmem:[%s19639_s3 + $0x718] sm:$0xff]  }
 0x1a7   :  { %13719 = vmatpush3.bf16.msra.mxu1 %v15116_v49  ;;  %v15128_v49 = vld [vmem:[%s19639_s3 + $0x708] sm:$0xff]  }
 0x1a8   :  { %13741 = vmatpush3.bf16.msra.mxu0 %v15117_v58  ;;  %13720 = vmatprep.subr.bf16.mxu1 %v15118_v53  ;;  %v3275_v58 = vpack.c.bf16 %v15757_v41, %v15757_v41  ;;  %v15129_v53 = vld [vmem:[%s19639_s3 + $0x788] sm:$0xff]   ;;  %v15137_v41 = vld [vmem:[%s19639_s3 + $0x798] sm:$0xff]  }
 0x1a9   :  { %13742 = vmatprep.subr.bf16.mxu0 %v15119_v18  ;;  %v3277_v18 = vpack.c.bf16 %v15759_v33, %v15759_v33  ;;  %v15139_v33 = vld [vmem:[%s19639_s3 + $0x7e0] sm:$0xff]  }
 0x1ab   :  { %13721 = vmatpush3.bf16.msra.mxu1 %v15120_v20  ;;  %v15130_v20 = vld [vmem:[%s19639_s3 + $0x750] sm:$0xff]  }
 0x1ac   :  { %13743 = vmatpush3.bf16.msra.mxu0 %v15121_v2  ;;  %13750 = vmatprep.subr.bf16.mxu1 %v15122_v54  ;;  %v15131_v2 = vld [vmem:[%s19639_s3 + $0x7d0] sm:$0xff]  }
 0x1ad   :  { %13772 = vmatprep.subr.bf16.mxu0 %v15123_v4  ;;  %v15132_v54 = vld [vmem:[%s19639_s3 + $0x710] sm:$0xff]  }
 0x1ae   :  { %9613 = vmatmul.mubr.bf16.vlgmr.msra.gmra.mrb[112].mxu1 %v3270_v12  ;;  %v15133_v4 = vld [vmem:[%s19639_s3 + $0x790] sm:$0xff]   ;;  %v15140_v12 = vld [vmem:[%s19639_s3 + $0x720] sm:$0xff]  }
 0x1af   :  { %9653 = vmatmul.mubr.bf16.vlgmr.msra.gmra.mrb[116].mxu0 %v3272_v27  ;;  %13751 = vmatpush3.bf16.msra.mxu1 %v15124_v56  ;;  %v15135_v56 = vld [vmem:[%s19639_s3 + $0x7d8] sm:$0xff]   ;;  %v15141_v27 = vld [vmem:[%s19639_s3 + $0x7a0] sm:$0xff]  }
 0x1b0   :  { %9692 = vmatprep.mubr.bf16.mxu1 %v3275_v58  ;;  %13773 = vmatpush3.bf16.msra.mxu0 %v15125_v31  ;;  %v4776_v31 = vlaneseq  ;;  %v15143_v58 = vld [vmem:[%s19639_s3 + $0x7e8] sm:$0xff]  }
 0x1b1   :  { %9732 = vmatprep.mubr.bf16.mxu0 %v3277_v18  ;;  %13752 = vmatprep.subr.bf16.mxu1 %v15126_v39  ;;  %v15138_v39 = vld [vmem:[%s19639_s3 + $0x760] sm:$0xff]  }
 0x1b2   :  { %13774 = vmatprep.subr.bf16.mxu0 %v15127_v30  ;;  %v17687_v30 = vshrl.u32 %v4776_v31, 7 }
 0x1b3   :  { %13753 = vmatpush3.bf16.msra.mxu1 %v15128_v49  ;;  %v15142_v49 = vld [vmem:[%s19639_s3 + $0x768] sm:$0xff]  }
 0x1b4   :  { %13775 = vmatpush3.bf16.msra.mxu0 %v15129_v53  ;;  %13754 = vmatprep.subr.bf16.mxu1 %v15130_v20  ;;  %v40_v53 = vld [vmem:[%s19646_s10] sm:$0xff]  ;;  %v4778_v18 = vsub.s32 0, %v17687_v30  ;;  %v15144_v20 = vld [vmem:[%s19639_s3 + $0x728] sm:$0xff]  }
 0x1b5   :  { %13776 = vmatprep.subr.bf16.mxu0 %v15131_v2  ;;  %v15145_v2 = vld [vmem:[%s19639_s3 + $0x7a8] sm:$0xff]  }
 0x1b7   :  { %13755 = vmatpush3.bf16.msra.mxu1 %v15132_v54  ;;  %v15146_v54 = vld [vmem:[%s19639_s3 + $0x770] sm:$0xff]  }
 0x1b8   :  { %13777 = vmatpush3.bf16.msra.mxu0 %v15133_v4  ;;  %13756 = vmatprep.subr.bf16.mxu1 %v15134_v9  ;;  %v15147_v4 = vld [vmem:[%s19639_s3 + $0x7f0] sm:$0xff]  }
 0x1b9   :  { %13778 = vmatprep.subr.bf16.mxu0 %v15135_v56  ;;  %v4779_v56 = vrot.slane %v40_v53, %v4778_v18  ;;  %v15152_v18 = vld [vmem:[%s19639_s3 + $0x738] sm:$0xff]  }
 0x1bb   :  { %13757 = vmatpush3.bf16.msra.mxu1 %v15136_v15 }
 0x1bc   :  { %13779 = vmatpush3.bf16.msra.mxu0 %v15137_v41  ;;  %13758 = vmatprep.subr.bf16.mxu1 %v15138_v39  ;;  %v15150_v41 = vld [vmem:[%s19639_s3 + $0x778] sm:$0xff]  }
 0x1bd   :  { %13780 = vmatprep.subr.bf16.mxu0 %v15139_v33 }
 0x1bf   :  { %13759 = vmatpush3.bf16.msra.mxu1 %v15140_v12 }
 0x1c0   :  { %13781 = vmatpush3.bf16.msra.mxu0 %v15141_v27  ;;  %13760 = vmatprep.subr.bf16.mxu1 %v15142_v49 }
 0x1c1   :  { %v13458_v9 = vpop.f32.mrb[88].mxu1  ;;  %13782 = vmatprep.subr.bf16.mxu0 %v15143_v58  ;;  %v15151_v58 = vld [vmem:[%s19639_s3 + $0x7f8] sm:$0xff]  }
 0x1c2   :  { %v13459_v15 = vpop.f32.mrb[89].mxu1  ;;  %v13480_v31 = vpop.f32.mrb[92].mxu0 }
 0x1c3   :  { %v13460_v40 = vadd.f32 %v13459_v15, %v13458_v9  ;;  %13761 = vmatpush3.bf16.msra.mxu1 %v15144_v20  ;;  %v13461_v39 = vpop.f32.mrb[90].mxu1  ;;  %v13481_v33 = vpop.f32.mrb[93].mxu0  ;;  %v15153_v20 = vld [vmem:[%s19639_s3 + $0x7b8] sm:$0xff]  }
 0x1c4   :  { %13783 = vmatpush3.bf16.msra.mxu0 %v15145_v2  ;;  %v13462_v12 = vpop.f32.mrb[91].mxu1  ;;  %v13482_v27 = vadd.f32 %v13481_v33, %v13480_v31  ;;  %13762 = vmatprep.subr.bf16.mxu1 %v15146_v54  ;;  %v13483_v49 = vpop.f32.mrb[94].mxu0  ;;  %v15154_v2 = vld [vmem:[%s19639_s3 + $0x840] sm:$0xff]   ;;  %v15159_v33 = vld [vmem:[%s19639_s3 + $0x8c8] sm:$0xff]  }
 0x1c5   :  { %v9135_v36 = vadd.f32 %v13460_v40, %v4779_v56  ;;  %13784 = vmatprep.subr.bf16.mxu0 %v15147_v4  ;;  %v13484_v53 = vpop.f32.mrb[95].mxu0  ;;  %v15761_v54 = vpop.eup %15760  ;;  %v15155_v4 = vld [vmem:[%s19639_s3 + $0x8c0] sm:$0xff]   ;;  %v15158_v40 = vld [vmem:[%s19639_s3 + $0x848] sm:$0xff]   ;;  %15792 = vtanh.f32 %v17183_v48  ;;  %v15276_v48 = vld [vmem:[%s19639_s3 + $0xb30] sm:$0xff]  }
 0x1c6   :  { %v15763_v56 = vpop.eup %15762  ;;  %v15157_v31 = vld [vmem:[%s19639_s3 + $0x880] sm:$0xff]   ;;  %v15163_v53 = vld [vmem:[%s19639_s3 + $0x8d0] sm:$0xff]   ;;  %15794 = vtanh.f32 %v17191_v62 }
 0x1c7   :  { %v17733_v9 = vadd.f32 %v13482_v27, %v9135_v36  ;;  %13763 = vmatpush3.bf16.msra.mxu1 %v15148_v11  ;;  %v15156_v11 = vld [vmem:[%s19639_s3 + $0x800] sm:$0xff]   ;;  %v15765_v15 = vpop.eup %15764  ;;  %v3276_v39 = vpack.c.bf16 %v15763_v56, %v15763_v56  ;;  %v15160_v27 = vld [vmem:[%s19639_s3 + $0x808] sm:$0xff]   ;;  %v15169_v56 = vld [vmem:[%s19639_s3 + $0x898] sm:$0xff]   ;;  %15796 = vtanh.f32 %v17222_v28 }
 0x1c8   :  { %13785 = vmatpush3.bf16.msra.mxu0 %v15149_v17  ;;  %13764 = vmatprep.subr.bf16.mxu1 %v15150_v41  ;;  %v15767_v17 = vpop.eup %15766  ;;  %v3274_v41 = vpack.c.bf16 %v15761_v54, %v15761_v54  ;;  %v3279_v12 = vpack.c.bf16 %v15765_v15, %v15765_v15  ;;  %v15161_v36 = vld [vmem:[%s19639_s3 + $0x888] sm:$0xff]   ;;  %v15167_v54 = vld [vmem:[%s19639_s3 + $0x8d8] sm:$0xff]   ;;  %v15171_v15 = vld [vmem:[%s19639_s3 + $0x8e0] sm:$0xff]   ;;  %15798 = vtanh.f32 %v17225_v29 }
 0x1c9   :  { %13786 = vmatprep.subr.bf16.mxu0 %v15151_v58  ;;  %v3281_v49 = vpack.c.bf16 %v15767_v17, %v15767_v17  ;;  %v15162_v58 = vld [vmem:[%s19639_s3 + $0x850] sm:$0xff]   ;;  %v15173_v17 = vld [vmem:[%s19639_s3 + $0x8a0] sm:$0xff]  }
 0x1ca   :  { %v15277_v62 = vld [vmem:[%s19639_s3 + $0xbb0] sm:$0xff]  }
 0x1cb   :  { %13765 = vmatpush3.bf16.msra.mxu1 %v15152_v18  ;;  %v15164_v18 = vld [vmem:[%s19639_s3 + $0x810] sm:$0xff]  }
 0x1cc   :  { %13787 = vmatpush3.bf16.msra.mxu0 %v15153_v20  ;;  %13794 = vmatprep.subr.bf16.mxu1 %v15154_v2  ;;  %v15165_v20 = vld [vmem:[%s19639_s3 + $0x890] sm:$0xff]   ;;  %v15166_v2 = vld [vmem:[%s19639_s3 + $0x858] sm:$0xff]  }
 0x1cd   :  { %13816 = vmatprep.subr.bf16.mxu0 %v15155_v4  ;;  %v15168_v4 = vld [vmem:[%s19639_s3 + $0x818] sm:$0xff]  }
 0x1ce   :  { %9693 = vmatmul.mubr.bf16.vlgmr.msra.gmra.mrb[116].mxu1 %v3274_v41  ;;  %v15174_v41 = vld [vmem:[%s19639_s3 + $0x868] sm:$0xff]  }
 0x1cf   :  { %9733 = vmatmul.mubr.bf16.vlgmr.msra.gmra.mrb[120].mxu0 %v3276_v39  ;;  %13795 = vmatpush3.bf16.msra.mxu1 %v15156_v11  ;;  %v15170_v11 = vld [vmem:[%s19639_s3 + $0x860] sm:$0xff]   ;;  %v15176_v39 = vld [vmem:[%s19639_s3 + $0x828] sm:$0xff]  }
 0x1d0   :  { %9772 = vmatprep.mubr.bf16.mxu1 %v3279_v12  ;;  %13817 = vmatpush3.bf16.msra.mxu0 %v15157_v31  ;;  %v15172_v31 = vld [vmem:[%s19639_s3 + $0x820] sm:$0xff]   ;;  %v15178_v12 = vld [vmem:[%s19639_s3 + $0x870] sm:$0xff]  }
 0x1d1   :  { %9812 = vmatprep.mubr.bf16.mxu0 %v3281_v49  ;;  %13796 = vmatprep.subr.bf16.mxu1 %v15158_v40  ;;  %v15175_v40 = vld [vmem:[%s19639_s3 + $0x8e8] sm:$0xff]  }
 0x1d2   :  { %13818 = vmatprep.subr.bf16.mxu0 %v15159_v33  ;;  %v15177_v33 = vld [vmem:[%s19639_s3 + $0x8a8] sm:$0xff]  }
 0x1d3   :  { %13797 = vmatpush3.bf16.msra.mxu1 %v15160_v27 }
 0x1d4   :  { %13819 = vmatpush3.bf16.msra.mxu0 %v15161_v36  ;;  %13798 = vmatprep.subr.bf16.mxu1 %v15162_v58  ;;  %v15181_v58 = vld [vmem:[%s19639_s3 + $0x8b0] sm:$0xff]  }
 0x1d5   :  { %13820 = vmatprep.subr.bf16.mxu0 %v15163_v53 }
 0x1d7   :  { %13799 = vmatpush3.bf16.msra.mxu1 %v15164_v18 }
 0x1d8   :  { %13821 = vmatpush3.bf16.msra.mxu0 %v15165_v20  ;;  %13800 = vmatprep.subr.bf16.mxu1 %v15166_v2 }
 0x1d9   :  { %13822 = vmatprep.subr.bf16.mxu0 %v15167_v54 }
 0x1db   :  { %13801 = vmatpush3.bf16.msra.mxu1 %v15168_v4  ;;  %v15183_v4 = vld [vmem:[%s19639_s3 + $0x8f8] sm:$0xff]  }
 0x1dc   :  { %13823 = vmatpush3.bf16.msra.mxu0 %v15169_v56  ;;  %13802 = vmatprep.subr.bf16.mxu1 %v15170_v11 }
 0x1dd   :  { %13824 = vmatprep.subr.bf16.mxu0 %v15171_v15  ;;  %v15184_v15 = vld [vmem:[%s19639_s3 + $0x838] sm:$0xff]  }
 0x1df   :  { %13803 = vmatpush3.bf16.msra.mxu1 %v15172_v31  ;;  %v15185_v31 = vld [vmem:[%s19639_s3 + $0x8b8] sm:$0xff]  }
 0x1e0   :  { %13825 = vmatpush3.bf16.msra.mxu0 %v15173_v17  ;;  %13804 = vmatprep.subr.bf16.mxu1 %v15174_v41  ;;  %v15186_v41 = vld [vmem:[%s19639_s3 + $0x940] sm:$0xff]  }
 0x1e1   :  { %v13502_v27 = vpop.f32.mrb[92].mxu1  ;;  %13826 = vmatprep.subr.bf16.mxu0 %v15175_v40  ;;  %v15769_v40 = vpop.eup %15768  ;;  %15800 = vtanh.f32 %v17212_v22  ;;  %v15307_v22 = vld [vmem:[%s19639_s3 + $0xcf0] sm:$0xff]  }
 0x1e2   :  { %v13524_v49 = vpop.f32.mrb[96].mxu0  ;;  %v13503_v36 = vpop.f32.mrb[93].mxu1 }
 0x1e3   :  { %v13504_v53 = vadd.f32 %v13503_v36, %v13502_v27  ;;  %v13525_v52 = vpop.f32.mrb[97].mxu0  ;;  %v13505_v18 = vpop.f32.mrb[94].mxu1  ;;  %13805 = vmatpush3.bf16.msra.mxu1 %v15176_v39  ;;  %v15188_v39 = vld [vmem:[%s19639_s3 + $0x900] sm:$0xff]   ;;  %v3278_v36 = vpack.c.bf16 %v15769_v40, %v15769_v40 }
 0x1e4   :  { %v13526_v20 = vadd.f32 %v13525_v52, %v13524_v49  ;;  %v13527_v2 = vpop.f32.mrb[98].mxu0  ;;  %13827 = vmatpush3.bf16.msra.mxu0 %v15177_v33  ;;  %v13506_v54 = vpop.f32.mrb[95].mxu1  ;;  %13806 = vmatprep.subr.bf16.mxu1 %v15178_v12  ;;  %v15189_v12 = vld [vmem:[%s19639_s3 + $0x980] sm:$0xff]   ;;  %v15193_v18 = vld [vmem:[%s19639_s3 + $0x988] sm:$0xff]  }
 0x1e5   :  { %v9215_v56 = vadd.f32 %v13504_v53, %v17733_v9  ;;  %v13528_v11 = vpop.f32.mrb[99].mxu0  ;;  %13828 = vmatprep.subr.bf16.mxu0 %v15179_v34  ;;  %v15187_v9 = vld [vmem:[%s19639_s3 + $0x9c0] sm:$0xff]   ;;  %v15771_v33 = vpop.eup %15770  ;;  %v15190_v34 = vld [vmem:[%s19639_s3 + $0x948] sm:$0xff]   ;;  %v15194_v2 = vld [vmem:[%s19639_s3 + $0x950] sm:$0xff]   ;;  %15802 = vtanh.f32 %v17220_v26 }
 0x1e6   :  { %v15773_v27 = vpop.eup %15772  ;;  %v15192_v53 = vld [vmem:[%s19639_s3 + $0x908] sm:$0xff]   ;;  %v15195_v54 = vld [vmem:[%s19639_s3 + $0x9d0] sm:$0xff]   ;;  %v15199_v11 = vld [vmem:[%s19639_s3 + $0x9d8] sm:$0xff]   ;;  %15804 = vtanh.f32 %v17261_v50 }
 0x1e7   :  { %v17839_v17 = vadd.f32 %v13526_v20, %v9215_v56  ;;  %13807 = vmatpush3.bf16.msra.mxu1 %v15180_v38  ;;  %v15775_v49 = vpop.eup %15774  ;;  %v15191_v38 = vld [vmem:[%s19639_s3 + $0x9c8] sm:$0xff]   ;;  %v3283_v52 = vpack.c.bf16 %v15773_v27, %v15773_v27  ;;  %v15198_v56 = vld [vmem:[%s19639_s3 + $0x958] sm:$0xff]   ;;  %v15204_v40 = vld [vmem:[%s19639_s3 + $0x920] sm:$0xff]   ;;  %15806 = vtanh.f32 %v17263_v57 }
 0x1e8   :  { %13829 = vmatpush3.bf16.msra.mxu0 %v15181_v58  ;;  %13808 = vmatprep.subr.bf16.mxu1 %v15182_v61  ;;  %v3280_v58 = vpack.c.bf16 %v15771_v33, %v15771_v33  ;;  %v3285_v20 = vpack.c.bf16 %v15775_v49, %v15775_v49  ;;  %v15196_v61 = vld [vmem:[%s19639_s3 + $0x910] sm:$0xff]   ;;  %v15206_v33 = vld [vmem:[%s19639_s3 + $0x968] sm:$0xff]   ;;  %v15310_v57 = vld [vmem:[%s19639_s3 + $0xc78] sm:$0xff]  }
 0x1e9   :  { %13830 = vmatprep.subr.bf16.mxu0 %v15183_v4  ;;  %v15197_v4 = vld [vmem:[%s19639_s3 + $0x990] sm:$0xff]   ;;  %v15208_v27 = vld [vmem:[%s19639_s3 + $0x928] sm:$0xff]  }
 0x1ea   :  { %v15210_v49 = vld [vmem:[%s19639_s3 + $0x970] sm:$0xff]  }
 0x1eb   :  { %13809 = vmatpush3.bf16.msra.mxu1 %v15184_v15  ;;  %v15200_v15 = vld [vmem:[%s19639_s3 + $0x918] sm:$0xff]   ;;  %v15308_v26 = vld [vmem:[%s19639_s3 + $0xc30] sm:$0xff]  }
 0x1ec   :  { %13831 = vmatpush3.bf16.msra.mxu0 %v15185_v31  ;;  %13838 = vmatprep.subr.bf16.mxu1 %v15186_v41  ;;  %v15201_v31 = vld [vmem:[%s19639_s3 + $0x998] sm:$0xff]   ;;  %v15202_v41 = vld [vmem:[%s19639_s3 + $0x960] sm:$0xff]  }
 0x1ed   :  { %13860 = vmatprep.subr.bf16.mxu0 %v15187_v9  ;;  %v15203_v9 = vld [vmem:[%s19639_s3 + $0x9e0] sm:$0xff]  }
 0x1ee   :  { %9773 = vmatmul.mubr.bf16.vlgmr.msra.gmra.mrb[120].mxu1 %v3278_v36  ;;  %v15211_v36 = vld [vmem:[%s19639_s3 + $0x9f0] sm:$0xff]  }
 0x1ef   :  { %9813 = vmatmul.mubr.bf16.vlgmr.msra.gmra.mrb[124].mxu0 %v3280_v58  ;;  %13839 = vmatpush3.bf16.msra.mxu1 %v15188_v39  ;;  %v15205_v39 = vld [vmem:[%s19639_s3 + $0x9a0] sm:$0xff]  }
 0x1f0   :  { %9852 = vmatprep.mubr.bf16.mxu1 %v3283_v52  ;;  %13861 = vmatpush3.bf16.msra.mxu0 %v15189_v12  ;;  %v15207_v12 = vld [vmem:[%s19639_s3 + $0x9e8] sm:$0xff]   ;;  %v15214_v52 = vld [vmem:[%s19639_s3 + $0x978] sm:$0xff]  }
 0x1f1   :  { %9892 = vmatprep.mubr.bf16.mxu0 %v3285_v20  ;;  %13840 = vmatprep.subr.bf16.mxu1 %v15190_v34  ;;  %v15209_v34 = vld [vmem:[%s19639_s3 + $0x9a8] sm:$0xff]  }
 0x1f2   :  { %13862 = vmatprep.subr.bf16.mxu0 %v15191_v38 }
 0x1f3   :  { %13841 = vmatpush3.bf16.msra.mxu1 %v15192_v53 }
 0x1f4   :  { %13863 = vmatpush3.bf16.msra.mxu0 %v15193_v18  ;;  %13842 = vmatprep.subr.bf16.mxu1 %v15194_v2 }
 0x1f5   :  { %13864 = vmatprep.subr.bf16.mxu0 %v15195_v54 }
 0x1f7   :  { %13843 = vmatpush3.bf16.msra.mxu1 %v15196_v61 }
 0x1f8   :  { %13865 = vmatpush3.bf16.msra.mxu0 %v15197_v4  ;;  %13844 = vmatprep.subr.bf16.mxu1 %v15198_v56  ;;  %v15215_v56 = vld [vmem:[%s19639_s3 + $0x9f8] sm:$0xff]  }
 0x1f9   :  { %13866 = vmatprep.subr.bf16.mxu0 %v15199_v11  ;;  %v15216_v11 = vld [vmem:[%s19639_s3 + $0x938] sm:$0xff]  }
 0x1fb   :  { %13845 = vmatpush3.bf16.msra.mxu1 %v15200_v15 }
 0x1fc   :  { %13867 = vmatpush3.bf16.msra.mxu0 %v15201_v31  ;;  %13846 = vmatprep.subr.bf16.mxu1 %v15202_v41  ;;  %v15217_v31 = vld [vmem:[%s19639_s3 + $0x9b8] sm:$0xff]   ;;  %v15777_v41 = vpop.eup %15776  ;;  %15808 = vtanh.f32 %v17251_v45  ;;  %v15340_v45 = vld [vmem:[%s19639_s3 + $0xd30] sm:$0xff]  }
 0x1fd   :  { %13868 = vmatprep.subr.bf16.mxu0 %v15203_v9  ;;  %v15219_v9 = vld [vmem:[%s19639_s3 + $0xac0] sm:$0xff]  }
 0x1ff   :  { %13847 = vmatpush3.bf16.msra.mxu1 %v15204_v40  ;;  %v15779_v40 = vpop.eup %15778  ;;  %15810 = vtanh.f32 %v17259_v19  ;;  %v15341_v19 = vld [vmem:[%s19639_s3 + $0xdb0] sm:$0xff]  }
 0x200   :  { %13869 = vmatpush3.bf16.msra.mxu0 %v15205_v39  ;;  %13848 = vmatprep.subr.bf16.mxu1 %v15206_v33  ;;  %v15220_v39 = vld [vmem:[%s19639_s3 + $0xa00] sm:$0xff]   ;;  %v15781_v33 = vpop.eup %15780  ;;  %15812 = vtanh.f32 %v17290_v13 }
 0x201   :  { %v13546_v38 = vpop.f32.mrb[96].mxu1  ;;  %13870 = vmatprep.subr.bf16.mxu0 %v15207_v12  ;;  %v15221_v12 = vld [vmem:[%s19639_s3 + $0xa80] sm:$0xff]  }
 0x202   :  { %v13568_v58 = vpop.f32.mrb[100].mxu0  ;;  %v13547_v53 = vpop.f32.mrb[97].mxu1 }
 0x203   :  { %v13548_v18 = vadd.f32 %v13547_v53, %v13546_v38  ;;  %v13569_v35 = vpop.f32.mrb[101].mxu0  ;;  %v13549_v20 = vpop.f32.mrb[98].mxu1  ;;  %13849 = vmatpush3.bf16.msra.mxu1 %v15208_v27  ;;  %v15223_v38 = vld [vmem:[%s19639_s3 + $0xac8] sm:$0xff]  }
 0x204   :  { %v13570_v2 = vadd.f32 %v13569_v35, %v13568_v58  ;;  %v13571_v54 = vpop.f32.mrb[102].mxu0  ;;  %13871 = vmatpush3.bf16.msra.mxu0 %v15209_v34  ;;  %v13550_v61 = vpop.f32.mrb[99].mxu1  ;;  %13850 = vmatprep.subr.bf16.mxu1 %v15210_v49  ;;  %v3282_v34 = vpack.c.bf16 %v15777_v41, %v15777_v41  ;;  %v15222_v49 = vld [vmem:[%s19639_s3 + $0xa48] sm:$0xff]   ;;  %v15228_v35 = vld [vmem:[%s19639_s3 + $0xa10] sm:$0xff]  }
 0x205   :  { %v9295_v37 = vadd.f32 %v13548_v18, %v17839_v17  ;;  %v13572_v4 = vpop.f32.mrb[103].mxu0  ;;  %13872 = vmatprep.subr.bf16.mxu0 %v15211_v36  ;;  %v15218_v17 = vld [vmem:[%s19639_s3 + $0xa40] sm:$0xff]   ;;  %v15783_v27 = vpop.eup %15782  ;;  %v3284_v36 = vpack.c.bf16 %v15779_v40, %v15779_v40  ;;  %v15224_v58 = vld [vmem:[%s19639_s3 + $0xa08] sm:$0xff]   ;;  %v15227_v18 = vld [vmem:[%s19639_s3 + $0xad0] sm:$0xff]   ;;  %15814 = vtanh.f32 %v17292_v46 }
 0x206   :  { %v3289_v53 = vpack.c.bf16 %v15783_v27, %v15783_v27  ;;  %v15229_v20 = vld [vmem:[%s19639_s3 + $0xa90] sm:$0xff]   ;;  %v15231_v54 = vld [vmem:[%s19639_s3 + $0xad8] sm:$0xff]   ;;  %v15234_v4 = vld [vmem:[%s19639_s3 + $0xa60] sm:$0xff]  }
 0x207   :  { %v17939_v15 = vadd.f32 %v13570_v2, %v9295_v37  ;;  %13851 = vmatpush3.bf16.msra.mxu1 %v15212_v47  ;;  %v3287_v47 = vpack.c.bf16 %v15781_v33, %v15781_v33  ;;  %v15230_v2 = vld [vmem:[%s19639_s3 + $0xa58] sm:$0xff]   ;;  %v15239_v41 = vld [vmem:[%s19639_s3 + $0xae8] sm:$0xff]  }
 0x208   :  { %13873 = vmatpush3.bf16.msra.mxu0 %v15213_v51  ;;  %13852 = vmatprep.subr.bf16.mxu1 %v15214_v52  ;;  %v15225_v51 = vld [vmem:[%s19639_s3 + $0xa88] sm:$0xff]   ;;  %v15226_v52 = vld [vmem:[%s19639_s3 + $0xa50] sm:$0xff]   ;;  %v15232_v61 = vld [vmem:[%s19639_s3 + $0xa18] sm:$0xff]  }
 0x209   :  { %13874 = vmatprep.subr.bf16.mxu0 %v15215_v56  ;;  %v15233_v37 = vld [vmem:[%s19639_s3 + $0xa98] sm:$0xff]   ;;  %v15235_v56 = vld [vmem:[%s19639_s3 + $0xae0] sm:$0xff]   ;;  %v15241_v40 = vld [vmem:[%s19639_s3 + $0xaa8] sm:$0xff]  }
 0x20b   :  { %13853 = vmatpush3.bf16.msra.mxu1 %v15216_v11  ;;  %v15236_v11 = vld [vmem:[%s19639_s3 + $0xa20] sm:$0xff]  }
 0x20c   :  { %13875 = vmatpush3.bf16.msra.mxu0 %v15217_v31  ;;  %13882 = vmatprep.subr.bf16.mxu1 %v15218_v17  ;;  %v15237_v31 = vld [vmem:[%s19639_s3 + $0xaa0] sm:$0xff]   ;;  %v15238_v17 = vld [vmem:[%s19639_s3 + $0xa68] sm:$0xff]  }
 0x20d   :  { %13904 = vmatprep.subr.bf16.mxu0 %v15219_v9  ;;  %v15240_v9 = vld [vmem:[%s19639_s3 + $0xa28] sm:$0xff]  }
 0x20e   :  { %9853 = vmatmul.mubr.bf16.vlgmr.msra.gmra.mrb[124].mxu1 %v3282_v34  ;;  %v15245_v34 = vld [vmem:[%s19639_s3 + $0xab0] sm:$0xff]  }
 0x20f   :  { %9893 = vmatmul.mubr.bf16.vlgmr.msra.gmra.mrb[128].mxu0 %v3284_v36  ;;  %13883 = vmatpush3.bf16.msra.mxu1 %v15220_v39  ;;  %v15242_v39 = vld [vmem:[%s19639_s3 + $0xa70] sm:$0xff]  }
 0x210   :  { %9932 = vmatprep.mubr.bf16.mxu1 %v3287_v47  ;;  %13905 = vmatpush3.bf16.msra.mxu0 %v15221_v12 }
 0x211   :  { %9972 = vmatprep.mubr.bf16.mxu0 %v3289_v53  ;;  %13884 = vmatprep.subr.bf16.mxu1 %v15222_v49  ;;  %v15247_v53 = vld [vmem:[%s19639_s3 + $0xaf8] sm:$0xff]  }
 0x212   :  { %13906 = vmatprep.subr.bf16.mxu0 %v15223_v38 }
 0x213   :  { %13885 = vmatpush3.bf16.msra.mxu1 %v15224_v58 }
 0x214   :  { %13907 = vmatpush3.bf16.msra.mxu0 %v15225_v51  ;;  %13886 = vmatprep.subr.bf16.mxu1 %v15226_v52 }
 0x215   :  { %13908 = vmatprep.subr.bf16.mxu0 %v15227_v18  ;;  %v15248_v18 = vld [vmem:[%s19639_s3 + $0xa38] sm:$0xff]  }
 0x217   :  { %13887 = vmatpush3.bf16.msra.mxu1 %v15228_v35  ;;  %v15249_v35 = vld [vmem:[%s19639_s3 + $0xab8] sm:$0xff]  }
 0x218   :  { %13909 = vmatpush3.bf16.msra.mxu0 %v15229_v20  ;;  %13888 = vmatprep.subr.bf16.mxu1 %v15230_v2  ;;  %v15250_v2 = vld [vmem:[%s19639_s3 + $0xb40] sm:$0xff]  }
 0x219   :  { %13910 = vmatprep.subr.bf16.mxu0 %v15231_v54  ;;  %v15785_v54 = vpop.eup %15784  ;;  %15816 = vtanh.f32 %v17280_v44  ;;  %v15371_v44 = vld [vmem:[%s19639_s3 + $0xef0] sm:$0xff]  }
 0x21b   :  { %13889 = vmatpush3.bf16.msra.mxu1 %v15232_v61  ;;  %v15252_v61 = vld [vmem:[%s19639_s3 + $0xb00] sm:$0xff]  }
 0x21c   :  { %13911 = vmatpush3.bf16.msra.mxu0 %v15233_v37  ;;  %13890 = vmatprep.subr.bf16.mxu1 %v15234_v4  ;;  %v15787_v37 = vpop.eup %15786  ;;  %v15253_v4 = vld [vmem:[%s19639_s3 + $0xb80] sm:$0xff]   ;;  %15818 = vtanh.f32 %v17288_v60  ;;  %v15372_v60 = vld [vmem:[%s19639_s3 + $0xe30] sm:$0xff]  }
 0x21d   :  { %13912 = vmatprep.subr.bf16.mxu0 %v15235_v56  ;;  %v15789_v56 = vpop.eup %15788  ;;  %15820 = vtanh.f32 %v17325_v43 }
 0x21f   :  { %13891 = vmatpush3.bf16.msra.mxu1 %v15236_v11  ;;  %v15254_v11 = vld [vmem:[%s19639_s3 + $0xb48] sm:$0xff]  }
 0x220   :  { %13913 = vmatpush3.bf16.msra.mxu0 %v15237_v31  ;;  %13892 = vmatprep.subr.bf16.mxu1 %v15238_v17  ;;  %v15791_v31 = vpop.eup %15790  ;;  %v3286_v17 = vpack.c.bf16 %v15785_v54, %v15785_v54  ;;  %15822 = vtanh.f32 %v17327_v55  ;;  %v15374_v55 = vld [vmem:[%s19639_s3 + $0xe78] sm:$0xff]  }
 0x221   :  { %v13590_v33 = vpop.f32.mrb[100].mxu1  ;;  %13914 = vmatprep.subr.bf16.mxu0 %v15239_v41  ;;  %v15255_v41 = vld [vmem:[%s19639_s3 + $0xbc8] sm:$0xff]  }
 0x222   :  { %v13612_v12 = vpop.f32.mrb[104].mxu0  ;;  %v13591_v27 = vpop.f32.mrb[101].mxu1 }
 0x223   :  { %v13592_v49 = vadd.f32 %v13591_v27, %v13590_v33  ;;  %v13613_v63 = vpop.f32.mrb[105].mxu0  ;;  %v13593_v36 = vpop.f32.mrb[102].mxu1  ;;  %13893 = vmatpush3.bf16.msra.mxu1 %v15240_v9  ;;  %v3288_v9 = vpack.c.bf16 %v15787_v37, %v15787_v37  ;;  %v15257_v33 = vld [vmem:[%s19639_s3 + $0xb88] sm:$0xff]   ;;  %v15259_v27 = vld [vmem:[%s19639_s3 + $0xbd0] sm:$0xff]  }
 0x224   :  { %v13614_v38 = vadd.f32 %v13613_v63, %v13612_v12  ;;  %v13615_v47 = vpop.f32.mrb[106].mxu0  ;;  %13915 = vmatpush3.bf16.msra.mxu0 %v15241_v40  ;;  %v13594_v58 = vpop.f32.mrb[103].mxu1  ;;  %13894 = vmatprep.subr.bf16.mxu1 %v15242_v39  ;;  %v15256_v40 = vld [vmem:[%s19639_s3 + $0xb08] sm:$0xff]   ;;  %v3291_v39 = vpack.c.bf16 %v15789_v56, %v15789_v56  ;;  %v15258_v12 = vld [vmem:[%s19639_s3 + $0xb50] sm:$0xff]   ;;  %v15263_v63 = vld [vmem:[%s19639_s3 + $0xbd8] sm:$0xff]  }
 0x225   :  { %v9375_v51 = vadd.f32 %v13592_v49, %v17939_v15  ;;  %v13616_v52 = vpop.f32.mrb[107].mxu0  ;;  %13916 = vmatprep.subr.bf16.mxu0 %v15243_v24  ;;  %v15251_v15 = vld [vmem:[%s19639_s3 + $0xbc0] sm:$0xff]   ;;  %v3293_v24 = vpack.c.bf16 %v15791_v31, %v15791_v31  ;;  %v15262_v49 = vld [vmem:[%s19639_s3 + $0xb58] sm:$0xff]  }
 0x226   :  { %v15264_v36 = vld [vmem:[%s19639_s3 + $0xb18] sm:$0xff]   ;;  %v15266_v47 = vld [vmem:[%s19639_s3 + $0xb60] sm:$0xff]   ;;  %v15271_v52 = vld [vmem:[%s19639_s3 + $0xbe8] sm:$0xff]  }
 0x227   :  { %v18045_v20 = vadd.f32 %v13614_v38, %v9375_v51  ;;  %13895 = vmatpush3.bf16.msra.mxu1 %v15244_v32  ;;  %v15260_v32 = vld [vmem:[%s19639_s3 + $0xb10] sm:$0xff]   ;;  %v15265_v38 = vld [vmem:[%s19639_s3 + $0xb98] sm:$0xff]   ;;  %v15267_v58 = vld [vmem:[%s19639_s3 + $0xbe0] sm:$0xff]  }
 0x228   :  { %13917 = vmatpush3.bf16.msra.mxu0 %v15245_v34  ;;  %13896 = vmatprep.subr.bf16.mxu1 %v15246_v0  ;;  %v15261_v34 = vld [vmem:[%s19639_s3 + $0xb90] sm:$0xff]   ;;  %v15268_v0 = vld [vmem:[%s19639_s3 + $0xb20] sm:$0xff]   ;;  %v15270_v51 = vld [vmem:[%s19639_s3 + $0xb68] sm:$0xff]  }
 0x229   :  { %13918 = vmatprep.subr.bf16.mxu0 %v15247_v53  ;;  %v15269_v53 = vld [vmem:[%s19639_s3 + $0xba0] sm:$0xff]  }
 0x22b   :  { %13897 = vmatpush3.bf16.msra.mxu1 %v15248_v18  ;;  %v15272_v18 = vld [vmem:[%s19639_s3 + $0xb28] sm:$0xff]  }
 0x22c   :  { %13919 = vmatpush3.bf16.msra.mxu0 %v15249_v35  ;;  %13926 = vmatprep.subr.bf16.mxu1 %v15250_v2  ;;  %v15273_v35 = vld [vmem:[%s19639_s3 + $0xba8] sm:$0xff]   ;;  %v15274_v2 = vld [vmem:[%s19639_s3 + $0xb70] sm:$0xff]  }
 0x22d   :  { %13948 = vmatprep.subr.bf16.mxu0 %v15251_v15  ;;  %v15275_v15 = vld [vmem:[%s19639_s3 + $0xbf0] sm:$0xff]  }
 0x22e   :  { %9933 = vmatmul.mubr.bf16.vlgmr.msra.gmra.mrb[128].mxu1 %v3286_v17 }
 0x22f   :  { %9973 = vmatmul.mubr.bf16.vlgmr.msra.gmra.mrb[132].mxu0 %v3288_v9  ;;  %13927 = vmatpush3.bf16.msra.mxu1 %v15252_v61 }
 0x230   :  { %10012 = vmatprep.mubr.bf16.mxu1 %v3291_v39  ;;  %13949 = vmatpush3.bf16.msra.mxu0 %v15253_v4  ;;  %v15278_v4 = vld [vmem:[%s19639_s3 + $0xb78] sm:$0xff]  }
 0x231   :  { %10052 = vmatprep.mubr.bf16.mxu0 %v3293_v24  ;;  %13928 = vmatprep.subr.bf16.mxu1 %v15254_v11  ;;  %v15280_v39 = vld [vmem:[%s19639_s3 + $0xb38] sm:$0xff]  }
 0x232   :  { %13950 = vmatprep.subr.bf16.mxu0 %v15255_v41  ;;  %v15281_v24 = vld [vmem:[%s19639_s3 + $0xbb8] sm:$0xff]  }
 0x233   :  { %13929 = vmatpush3.bf16.msra.mxu1 %v15256_v40  ;;  %v15279_v40 = vld [vmem:[%s19639_s3 + $0xbf8] sm:$0xff]  }
 0x234   :  { %13951 = vmatpush3.bf16.msra.mxu0 %v15257_v33  ;;  %13930 = vmatprep.subr.bf16.mxu1 %v15258_v12  ;;  %v15793_v12 = vpop.eup %15792  ;;  %15824 = vtanh.f32 %v17315_v25  ;;  %v15404_v25 = vld [vmem:[%s19639_s3 + $0xf30] sm:$0xff]  }
 0x235   :  { %13952 = vmatprep.subr.bf16.mxu0 %v15259_v27  ;;  %v15283_v27 = vld [vmem:[%s19639_s3 + $0xcc0] sm:$0xff]  }
 0x237   :  { %13931 = vmatpush3.bf16.msra.mxu1 %v15260_v32  ;;  %v15795_v32 = vpop.eup %15794  ;;  %15826 = vtanh.f32 %v17323_v42  ;;  %v15405_v42 = vld [vmem:[%s19639_s3 + $0xfb0] sm:$0xff]  }
 0x238   :  { %13953 = vmatpush3.bf16.msra.mxu0 %v15261_v34  ;;  %13932 = vmatprep.subr.bf16.mxu1 %v15262_v49  ;;  %v15284_v34 = vld [vmem:[%s19639_s3 + $0xc00] sm:$0xff]   ;;  %v15797_v49 = vpop.eup %15796  ;;  %15828 = vtanh.f32 %v17354_v23 }
 0x239   :  { %13954 = vmatprep.subr.bf16.mxu0 %v15263_v63  ;;  %v15285_v63 = vld [vmem:[%s19639_s3 + $0xc80] sm:$0xff]  }
 0x23b   :  { %13933 = vmatpush3.bf16.msra.mxu1 %v15264_v36  ;;  %v15799_v36 = vpop.eup %15798  ;;  %15830 = vtanh.f32 %v17357_v8 }
 0x23c   :  { %13955 = vmatpush3.bf16.msra.mxu0 %v15265_v38  ;;  %13934 = vmatprep.subr.bf16.mxu1 %v15266_v47  ;;  %v3290_v38 = vpack.c.bf16 %v15793_v12, %v15793_v12  ;;  %v15286_v47 = vld [vmem:[%s19639_s3 + $0xc48] sm:$0xff]  }
 0x23d   :  { %13956 = vmatprep.subr.bf16.mxu0 %v15267_v58  ;;  %v3292_v58 = vpack.c.bf16 %v15795_v32, %v15795_v32 }
 0x23f   :  { %13935 = vmatpush3.bf16.msra.mxu1 %v15268_v0  ;;  %v15287_v0 = vld [vmem:[%s19639_s3 + $0xcc8] sm:$0xff]  }
 0x240   :  { %13957 = vmatpush3.bf16.msra.mxu0 %v15269_v53  ;;  %13936 = vmatprep.subr.bf16.mxu1 %v15270_v51  ;;  %v3295_v53 = vpack.c.bf16 %v15797_v49, %v15797_v49  ;;  %v15288_v51 = vld [vmem:[%s19639_s3 + $0xc08] sm:$0xff]  }
 0x241   :  { %v13634_v54 = vpop.f32.mrb[104].mxu1  ;;  %13958 = vmatprep.subr.bf16.mxu0 %v15271_v52  ;;  %v3297_v52 = vpack.c.bf16 %v15799_v36, %v15799_v36 }
 0x242   :  { %v13656_v61 = vpop.f32.mrb[108].mxu0  ;;  %v13635_v37 = vpop.f32.mrb[105].mxu1 }
 0x243   :  { %v13636_v56 = vadd.f32 %v13635_v37, %v13634_v54  ;;  %v13657_v28 = vpop.f32.mrb[109].mxu0  ;;  %v13637_v11 = vpop.f32.mrb[106].mxu1  ;;  %13937 = vmatpush3.bf16.msra.mxu1 %v15272_v18  ;;  %v15289_v18 = vld [vmem:[%s19639_s3 + $0xc88] sm:$0xff]   ;;  %v15293_v54 = vld [vmem:[%s19639_s3 + $0xc90] sm:$0xff]   ;;  %v15296_v37 = vld [vmem:[%s19639_s3 + $0xc18] sm:$0xff]  }
 0x244   :  { %v13658_v31 = vadd.f32 %v13657_v28, %v13656_v61  ;;  %v13659_v17 = vpop.f32.mrb[110].mxu0  ;;  %13959 = vmatpush3.bf16.msra.mxu0 %v15273_v35  ;;  %v13638_v41 = vpop.f32.mrb[107].mxu1  ;;  %13938 = vmatprep.subr.bf16.mxu1 %v15274_v2  ;;  %v15290_v35 = vld [vmem:[%s19639_s3 + $0xc50] sm:$0xff]   ;;  %v15295_v61 = vld [vmem:[%s19639_s3 + $0xcd8] sm:$0xff]   ;;  %v15300_v28 = vld [vmem:[%s19639_s3 + $0xc20] sm:$0xff]  }
 0x245   :  { %v9455_v29 = vadd.f32 %v13636_v56, %v18045_v20  ;;  %v13660_v9 = vpop.f32.mrb[111].mxu0  ;;  %13960 = vmatprep.subr.bf16.mxu0 %v15275_v15  ;;  %v15282_v20 = vld [vmem:[%s19639_s3 + $0xc40] sm:$0xff]   ;;  %v15291_v2 = vld [vmem:[%s19639_s3 + $0xcd0] sm:$0xff]   ;;  %v15303_v17 = vld [vmem:[%s19639_s3 + $0xce8] sm:$0xff]  }
 0x246   :  { %v15292_v15 = vld [vmem:[%s19639_s3 + $0xc10] sm:$0xff]   ;;  %v15299_v56 = vld [vmem:[%s19639_s3 + $0xce0] sm:$0xff]   ;;  %v15304_v41 = vld [vmem:[%s19639_s3 + $0xc28] sm:$0xff]  }
 0x247   :  { %v18145_v33 = vadd.f32 %v13658_v31, %v9455_v29  ;;  %13939 = vmatpush3.bf16.msra.mxu1 %v15276_v48  ;;  %v15294_v48 = vld [vmem:[%s19639_s3 + $0xc58] sm:$0xff]   ;;  %v15301_v11 = vld [vmem:[%s19639_s3 + $0xca0] sm:$0xff]   ;;  %v15302_v31 = vld [vmem:[%s19639_s3 + $0xc68] sm:$0xff]  }
 0x248   :  { %13961 = vmatpush3.bf16.msra.mxu0 %v15277_v62  ;;  %13940 = vmatprep.subr.bf16.mxu1 %v15278_v4  ;;  %v15297_v62 = vld [vmem:[%s19639_s3 + $0xc98] sm:$0xff]   ;;  %v15298_v4 = vld [vmem:[%s19639_s3 + $0xc60] sm:$0xff]   ;;  %v15305_v29 = vld [vmem:[%s19639_s3 + $0xca8] sm:$0xff]  }
 0x249   :  { %13962 = vmatprep.subr.bf16.mxu0 %v15279_v40  ;;  %v15306_v9 = vld [vmem:[%s19639_s3 + $0xc70] sm:$0xff]  }
 0x24b   :  { %13941 = vmatpush3.bf16.msra.mxu1 %v15280_v39 }
 0x24c   :  { %13963 = vmatpush3.bf16.msra.mxu0 %v15281_v24  ;;  %13970 = vmatprep.subr.bf16.mxu1 %v15282_v20  ;;  %v15309_v20 = vld [vmem:[%s19639_s3 + $0xcb0] sm:$0xff]  }
 0x24d   :  { %13992 = vmatprep.subr.bf16.mxu0 %v15283_v27 }
 0x24e   :  { %10013 = vmatmul.mubr.bf16.vlgmr.msra.gmra.mrb[132].mxu1 %v3290_v38 }
 0x24f   :  { %10053 = vmatmul.mubr.bf16.vlgmr.msra.gmra.mrb[136].mxu0 %v3292_v58  ;;  %13971 = vmatpush3.bf16.msra.mxu1 %v15284_v34  ;;  %v15313_v58 = vld [vmem:[%s19639_s3 + $0xcb8] sm:$0xff]  }
 0x250   :  { %10092 = vmatprep.mubr.bf16.mxu1 %v3295_v53  ;;  %13993 = vmatpush3.bf16.msra.mxu0 %v15285_v63  ;;  %v15311_v63 = vld [vmem:[%s19639_s3 + $0xcf8] sm:$0xff]   ;;  %v15314_v53 = vld [vmem:[%s19639_s3 + $0xd40] sm:$0xff]  }
 0x251   :  { %10132 = vmatprep.mubr.bf16.mxu0 %v3297_v52  ;;  %13972 = vmatprep.subr.bf16.mxu1 %v15286_v47  ;;  %v15312_v47 = vld [vmem:[%s19639_s3 + $0xc38] sm:$0xff]   ;;  %v15316_v52 = vld [vmem:[%s19639_s3 + $0xd00] sm:$0xff]  }
 0x252   :  { %13994 = vmatprep.subr.bf16.mxu0 %v15287_v0 }
 0x253   :  { %13973 = vmatpush3.bf16.msra.mxu1 %v15288_v51  ;;  %v15801_v51 = vpop.eup %15800  ;;  %15832 = vtanh.f32 %v17344_v10  ;;  %v15435_v10 = vld [vmem:[%s19639_s3 + $0x10f0] sm:$0xff]  }
 0x254   :  { %13995 = vmatpush3.bf16.msra.mxu0 %v15289_v18  ;;  %13974 = vmatprep.subr.bf16.mxu1 %v15290_v35  ;;  %v15803_v18 = vpop.eup %15802  ;;  %v15317_v35 = vld [vmem:[%s19639_s3 + $0xd80] sm:$0xff]   ;;  %15834 = vtanh.f32 %v17352_v21  ;;  %v15436_v21 = vld [vmem:[%s19639_s3 + $0x1030] sm:$0xff]  }
 0x255   :  { %13996 = vmatprep.subr.bf16.mxu0 %v15291_v2  ;;  %v15805_v2 = vpop.eup %15804  ;;  %15836 = vtanh.f32 %v17393_v16 }
 0x257   :  { %13975 = vmatpush3.bf16.msra.mxu1 %v15292_v15  ;;  %v15318_v15 = vld [vmem:[%s19639_s3 + $0xd48] sm:$0xff]  }
 0x258   :  { %13997 = vmatpush3.bf16.msra.mxu0 %v15293_v54  ;;  %13976 = vmatprep.subr.bf16.mxu1 %v15294_v48  ;;  %v15807_v54 = vpop.eup %15806  ;;  %v3294_v48 = vpack.c.bf16 %v15801_v51, %v15801_v51 }
 0x259   :  { %13998 = vmatprep.subr.bf16.mxu0 %v15295_v61  ;;  %v15319_v61 = vld [vmem:[%s19639_s3 + $0xdc8] sm:$0xff]  }
 0x25b   :  { %13977 = vmatpush3.bf16.msra.mxu1 %v15296_v37  ;;  %v3296_v37 = vpack.c.bf16 %v15803_v18, %v15803_v18  ;;  %v15343_v18 = vld [vmem:[%s19639_s3 + $0xdf8] sm:$0xff]  }
 0x25c   :  { %13999 = vmatpush3.bf16.msra.mxu0 %v15297_v62  ;;  %13978 = vmatprep.subr.bf16.mxu1 %v15298_v4  ;;  %v15320_v62 = vld [vmem:[%s19639_s3 + $0xd08] sm:$0xff]   ;;  %v3299_v4 = vpack.c.bf16 %v15805_v2, %v15805_v2 }
 0x25d   :  { %14000 = vmatprep.subr.bf16.mxu0 %v15299_v56  ;;  %v15321_v56 = vld [vmem:[%s19639_s3 + $0xd88] sm:$0xff]  }
 0x25f   :  { %13979 = vmatpush3.bf16.msra.mxu1 %v15300_v28  ;;  %v3301_v28 = vpack.c.bf16 %v15807_v54, %v15807_v54  ;;  %v15809_v54 = vpop.eup %15808 }
 0x260   :  { %14001 = vmatpush3.bf16.msra.mxu0 %v15301_v11  ;;  %13980 = vmatprep.subr.bf16.mxu1 %v15302_v31  ;;  %v15322_v11 = vld [vmem:[%s19639_s3 + $0xd50] sm:$0xff]  }
 0x261   :  { %v13678_v40 = vpop.f32.mrb[108].mxu1  ;;  %14002 = vmatprep.subr.bf16.mxu0 %v15303_v17  ;;  %v15323_v31 = vld [vmem:[%s19639_s3 + $0xdd0] sm:$0xff]  }
 0x262   :  { %v13700_v39 = vpop.f32.mrb[112].mxu0  ;;  %v13679_v24 = vpop.f32.mrb[109].mxu1  ;;  %v15324_v17 = vld [vmem:[%s19639_s3 + $0xd10] sm:$0xff]  }
 0x263   :  { %v13680_v12 = vadd.f32 %v13679_v24, %v13678_v40  ;;  %v13701_v50 = vpop.f32.mrb[113].mxu0  ;;  %v13681_v27 = vpop.f32.mrb[110].mxu1  ;;  %13981 = vmatpush3.bf16.msra.mxu1 %v15304_v41  ;;  %v15325_v41 = vld [vmem:[%s19639_s3 + $0xd90] sm:$0xff]   ;;  %v15328_v40 = vld [vmem:[%s19639_s3 + $0xd18] sm:$0xff]   ;;  %v15331_v24 = vld [vmem:[%s19639_s3 + $0xde0] sm:$0xff]  }
 0x264   :  { %v13702_v32 = vadd.f32 %v13701_v50, %v13700_v39  ;;  %v13703_v34 = vpop.f32.mrb[114].mxu0  ;;  %14003 = vmatpush3.bf16.msra.mxu0 %v15305_v29  ;;  %v13682_v49 = vpop.f32.mrb[111].mxu1  ;;  %13982 = vmatprep.subr.bf16.mxu1 %v15306_v9  ;;  %v15326_v29 = vld [vmem:[%s19639_s3 + $0xd58] sm:$0xff]   ;;  %v15330_v39 = vld [vmem:[%s19639_s3 + $0xd60] sm:$0xff]   ;;  %v15335_v50 = vld [vmem:[%s19639_s3 + $0xde8] sm:$0xff]  }
 0x265   :  { %v9535_v36 = vadd.f32 %v13680_v12, %v18145_v33  ;;  %v13704_v38 = vpop.f32.mrb[115].mxu0  ;;  %14004 = vmatprep.subr.bf16.mxu0 %v15307_v22  ;;  %v15315_v33 = vld [vmem:[%s19639_s3 + $0xdc0] sm:$0xff]   ;;  %v15327_v9 = vld [vmem:[%s19639_s3 + $0xdd8] sm:$0xff]   ;;  %v15334_v12 = vld [vmem:[%s19639_s3 + $0xd68] sm:$0xff]  }
 0x266   :  { %v15329_v22 = vld [vmem:[%s19639_s3 + $0xd98] sm:$0xff]   ;;  %v15336_v27 = vld [vmem:[%s19639_s3 + $0xd28] sm:$0xff]   ;;  %v15338_v34 = vld [vmem:[%s19639_s3 + $0xd70] sm:$0xff]  }
 0x267   :  { %v18251_v0 = vadd.f32 %v13702_v32, %v9535_v36  ;;  %13983 = vmatpush3.bf16.msra.mxu1 %v15308_v26  ;;  %v15332_v26 = vld [vmem:[%s19639_s3 + $0xd20] sm:$0xff]   ;;  %v15337_v32 = vld [vmem:[%s19639_s3 + $0xda8] sm:$0xff]   ;;  %v15339_v49 = vld [vmem:[%s19639_s3 + $0xdf0] sm:$0xff]  }
 0x268   :  { %14005 = vmatpush3.bf16.msra.mxu0 %v15309_v20  ;;  %13984 = vmatprep.subr.bf16.mxu1 %v15310_v57  ;;  %v15333_v20 = vld [vmem:[%s19639_s3 + $0xda0] sm:$0xff]   ;;  %v15342_v38 = vld [vmem:[%s19639_s3 + $0xd78] sm:$0xff]  }
 0x269   :  { %14006 = vmatprep.subr.bf16.mxu0 %v15311_v63 }
 0x26b   :  { %13985 = vmatpush3.bf16.msra.mxu1 %v15312_v47 }
 0x26c   :  { %14007 = vmatpush3.bf16.msra.mxu0 %v15313_v58  ;;  %14014 = vmatprep.subr.bf16.mxu1 %v15314_v53 }
 0x26d   :  { %14036 = vmatprep.subr.bf16.mxu0 %v15315_v33 }
 0x26e   :  { %10093 = vmatmul.mubr.bf16.vlgmr.msra.gmra.mrb[136].mxu1 %v3294_v48  ;;  %v15347_v48 = vld [vmem:[%s19639_s3 + $0xec0] sm:$0xff]  }
 0x26f   :  { %10133 = vmatmul.mubr.bf16.vlgmr.msra.gmra.mrb[140].mxu0 %v3296_v37  ;;  %14015 = vmatpush3.bf16.msra.mxu1 %v15316_v52  ;;  %v15348_v37 = vld [vmem:[%s19639_s3 + $0xe00] sm:$0xff]  }
 0x270   :  { %10172 = vmatprep.mubr.bf16.mxu1 %v3299_v4  ;;  %14037 = vmatpush3.bf16.msra.mxu0 %v15317_v35  ;;  %v15344_v35 = vld [vmem:[%s19639_s3 + $0xd38] sm:$0xff]   ;;  %v15349_v4 = vld [vmem:[%s19639_s3 + $0xe80] sm:$0xff]  }
 0x271   :  { %10212 = vmatprep.mubr.bf16.mxu0 %v3301_v28  ;;  %14016 = vmatprep.subr.bf16.mxu1 %v15318_v15  ;;  %v15345_v15 = vld [vmem:[%s19639_s3 + $0xdb8] sm:$0xff]   ;;  %v3298_v28 = vpack.c.bf16 %v15809_v54, %v15809_v54 }
 0x272   :  { %14038 = vmatprep.subr.bf16.mxu0 %v15319_v61  ;;  %v15811_v61 = vpop.eup %15810  ;;  %v15376_v54 = vld [vmem:[%s19639_s3 + $0xe38] sm:$0xff]  }
 0x273   :  { %14017 = vmatpush3.bf16.msra.mxu1 %v15320_v62  ;;  %v15813_v62 = vpop.eup %15812 }
 0x274   :  { %14039 = vmatpush3.bf16.msra.mxu0 %v15321_v56  ;;  %14018 = vmatprep.subr.bf16.mxu1 %v15322_v11  ;;  %v15815_v56 = vpop.eup %15814  ;;  %v15350_v11 = vld [vmem:[%s19639_s3 + $0xe48] sm:$0xff]  }
 0x275   :  { %14040 = vmatprep.subr.bf16.mxu0 %v15323_v31  ;;  %v3300_v31 = vpack.c.bf16 %v15811_v61, %v15811_v61 }
 0x277   :  { %14019 = vmatpush3.bf16.msra.mxu1 %v15324_v17  ;;  %v15351_v17 = vld [vmem:[%s19639_s3 + $0xec8] sm:$0xff]  }
 0x278   :  { %14041 = vmatpush3.bf16.msra.mxu0 %v15325_v41  ;;  %14020 = vmatprep.subr.bf16.mxu1 %v15326_v29  ;;  %v3303_v41 = vpack.c.bf16 %v15813_v62, %v15813_v62  ;;  %v15352_v29 = vld [vmem:[%s19639_s3 + $0xe08] sm:$0xff]   ;;  %v15817_v62 = vpop.eup %15816 }
 0x279   :  { %14042 = vmatprep.subr.bf16.mxu0 %v15327_v9  ;;  %v3305_v9 = vpack.c.bf16 %v15815_v56, %v15815_v56  ;;  %v15819_v56 = vpop.eup %15818 }
 0x27b   :  { %14021 = vmatpush3.bf16.msra.mxu1 %v15328_v40  ;;  %v15353_v40 = vld [vmem:[%s19639_s3 + $0xe88] sm:$0xff]  }
 0x27c   :  { %14043 = vmatpush3.bf16.msra.mxu0 %v15329_v22  ;;  %14022 = vmatprep.subr.bf16.mxu1 %v15330_v39  ;;  %v15354_v22 = vld [vmem:[%s19639_s3 + $0xe50] sm:$0xff]  }
 0x27d   :  { %14044 = vmatprep.subr.bf16.mxu0 %v15331_v24  ;;  %v15355_v39 = vld [vmem:[%s19639_s3 + $0xed0] sm:$0xff]  }
 0x27e   :  { %v15356_v24 = vld [vmem:[%s19639_s3 + $0xe10] sm:$0xff]  }
 0x27f   :  { %14023 = vmatpush3.bf16.msra.mxu1 %v15332_v26  ;;  %v15357_v26 = vld [vmem:[%s19639_s3 + $0xe90] sm:$0xff]  }
 0x280   :  { %14045 = vmatpush3.bf16.msra.mxu0 %v15333_v20  ;;  %14024 = vmatprep.subr.bf16.mxu1 %v15334_v12  ;;  %v15358_v20 = vld [vmem:[%s19639_s3 + $0xe58] sm:$0xff]  }
 0x281   :  { %v13722_v57 = vpop.f32.mrb[112].mxu1  ;;  %14046 = vmatprep.subr.bf16.mxu0 %v15335_v50  ;;  %v15359_v12 = vld [vmem:[%s19639_s3 + $0xed8] sm:$0xff]  }
 0x282   :  { %v13744_v63 = vpop.f32.mrb[116].mxu0  ;;  %v13723_v36 = vpop.f32.mrb[113].mxu1  ;;  %v15360_v50 = vld [vmem:[%s19639_s3 + $0xe18] sm:$0xff]  }
 0x283   :  { %v13724_v47 = vadd.f32 %v13723_v36, %v13722_v57  ;;  %v13745_v13 = vpop.f32.mrb[117].mxu0  ;;  %v13725_v58 = vpop.f32.mrb[114].mxu1  ;;  %14025 = vmatpush3.bf16.msra.mxu1 %v15336_v27  ;;  %v15361_v27 = vld [vmem:[%s19639_s3 + $0xe98] sm:$0xff]   ;;  %v15365_v57 = vld [vmem:[%s19639_s3 + $0xea0] sm:$0xff]   ;;  %v15368_v36 = vld [vmem:[%s19639_s3 + $0xe28] sm:$0xff]  }
 0x284   :  { %v13746_v53 = vadd.f32 %v13745_v13, %v13744_v63  ;;  %v13747_v33 = vpop.f32.mrb[118].mxu0  ;;  %14047 = vmatpush3.bf16.msra.mxu0 %v15337_v32  ;;  %v13726_v51 = vpop.f32.mrb[115].mxu1  ;;  %14026 = vmatprep.subr.bf16.mxu1 %v15338_v34  ;;  %v15362_v32 = vld [vmem:[%s19639_s3 + $0xe60] sm:$0xff]   ;;  %v15367_v63 = vld [vmem:[%s19639_s3 + $0xee8] sm:$0xff]  }
 0x285   :  { %v9615_v46 = vadd.f32 %v13724_v47, %v18251_v0  ;;  %v13748_v52 = vpop.f32.mrb[119].mxu0  ;;  %14048 = vmatprep.subr.bf16.mxu0 %v15339_v49  ;;  %v15346_v0 = vld [vmem:[%s19639_s3 + $0xe40] sm:$0xff]  }
 0x286   :  { %v15363_v34 = vld [vmem:[%s19639_s3 + $0xee0] sm:$0xff]  }
 0x287   :  { %v18351_v2 = vadd.f32 %v13746_v53, %v9615_v46  ;;  %14027 = vmatpush3.bf16.msra.mxu1 %v15340_v45  ;;  %v15364_v49 = vld [vmem:[%s19639_s3 + $0xe20] sm:$0xff]   ;;  %v15366_v45 = vld [vmem:[%s19639_s3 + $0xe68] sm:$0xff]   ;;  %v15373_v53 = vld [vmem:[%s19639_s3 + $0xeb0] sm:$0xff]  }
 0x288   :  { %14049 = vmatpush3.bf16.msra.mxu0 %v15341_v19  ;;  %14028 = vmatprep.subr.bf16.mxu1 %v15342_v38  ;;  %v15369_v19 = vld [vmem:[%s19639_s3 + $0xea8] sm:$0xff]   ;;  %v15370_v38 = vld [vmem:[%s19639_s3 + $0xe70] sm:$0xff]  }
 0x289   :  { %14050 = vmatprep.subr.bf16.mxu0 %v15343_v18 }
 0x28b   :  { %14029 = vmatpush3.bf16.msra.mxu1 %v15344_v35  ;;  %v15375_v35 = vld [vmem:[%s19639_s3 + $0xef8] sm:$0xff]  }
 0x28c   :  { %14051 = vmatpush3.bf16.msra.mxu0 %v15345_v15  ;;  %14058 = vmatprep.subr.bf16.mxu1 %v15346_v0 }
 0x28d   :  { %14080 = vmatprep.subr.bf16.mxu0 %v15347_v48  ;;  %v15377_v48 = vld [vmem:[%s19639_s3 + $0xeb8] sm:$0xff]  }
 0x28e   :  { %10173 = vmatmul.mubr.bf16.vlgmr.msra.gmra.mrb[140].mxu1 %v3298_v28  ;;  %v15381_v28 = vld [vmem:[%s19639_s3 + $0xf80] sm:$0xff]  }
 0x28f   :  { %10213 = vmatmul.mubr.bf16.vlgmr.msra.gmra.mrb[144].mxu0 %v3300_v31  ;;  %14059 = vmatpush3.bf16.msra.mxu1 %v15348_v37  ;;  %v15378_v37 = vld [vmem:[%s19639_s3 + $0xf40] sm:$0xff]   ;;  %v15382_v31 = vld [vmem:[%s19639_s3 + $0xf48] sm:$0xff]  }
 0x290   :  { %10252 = vmatprep.mubr.bf16.mxu1 %v3303_v41  ;;  %14081 = vmatpush3.bf16.msra.mxu0 %v15349_v4  ;;  %v15380_v4 = vld [vmem:[%s19639_s3 + $0xf00] sm:$0xff]   ;;  %v3302_v41 = vpack.c.bf16 %v15817_v62, %v15817_v62 }
 0x291   :  { %10292 = vmatprep.mubr.bf16.mxu0 %v3305_v9  ;;  %14060 = vmatprep.subr.bf16.mxu1 %v15350_v11  ;;  %v15821_v11 = vpop.eup %15820  ;;  %v3304_v9 = vpack.c.bf16 %v15819_v56, %v15819_v56 }
 0x292   :  { %14082 = vmatprep.subr.bf16.mxu0 %v15351_v17  ;;  %v15823_v17 = vpop.eup %15822 }
 0x293   :  { %14061 = vmatpush3.bf16.msra.mxu1 %v15352_v29  ;;  %v15383_v29 = vld [vmem:[%s19639_s3 + $0xfc8] sm:$0xff]  }
 0x294   :  { %14083 = vmatpush3.bf16.msra.mxu0 %v15353_v40  ;;  %14062 = vmatprep.subr.bf16.mxu1 %v15354_v22  ;;  %v15384_v40 = vld [vmem:[%s19639_s3 + $0xf08] sm:$0xff]   ;;  %v3307_v22 = vpack.c.bf16 %v15821_v11, %v15821_v11 }
 0x295   :  { %14084 = vmatprep.subr.bf16.mxu0 %v15355_v39  ;;  %v15385_v39 = vld [vmem:[%s19639_s3 + $0xf88] sm:$0xff]  }
 0x297   :  { %14063 = vmatpush3.bf16.msra.mxu1 %v15356_v24  ;;  %v3309_v24 = vpack.c.bf16 %v15823_v17, %v15823_v17  ;;  %v15414_v17 = vld [vmem:[%s19639_s3 + $0x1048] sm:$0xff]  }
 0x298   :  { %14085 = vmatpush3.bf16.msra.mxu0 %v15357_v26  ;;  %14064 = vmatprep.subr.bf16.mxu1 %v15358_v20  ;;  %v15386_v26 = vld [vmem:[%s19639_s3 + $0xf50] sm:$0xff]  }
 0x299   :  { %14086 = vmatprep.subr.bf16.mxu0 %v15359_v12  ;;  %v15387_v20 = vld [vmem:[%s19639_s3 + $0xfd0] sm:$0xff]  }
 0x29a   :  { %v15388_v12 = vld [vmem:[%s19639_s3 + $0xf10] sm:$0xff]  }
 0x29b   :  { %14065 = vmatpush3.bf16.msra.mxu1 %v15360_v50  ;;  %v15389_v50 = vld [vmem:[%s19639_s3 + $0xf90] sm:$0xff]  }
 0x29c   :  { %14087 = vmatpush3.bf16.msra.mxu0 %v15361_v27  ;;  %14066 = vmatprep.subr.bf16.mxu1 %v15362_v32  ;;  %v15390_v27 = vld [vmem:[%s19639_s3 + $0xf58] sm:$0xff]  }
 0x29d   :  { %14088 = vmatprep.subr.bf16.mxu0 %v15363_v34  ;;  %v15391_v32 = vld [vmem:[%s19639_s3 + $0xfd8] sm:$0xff]  }
 0x29e   :  { %v15392_v34 = vld [vmem:[%s19639_s3 + $0xf18] sm:$0xff]  }
 0x29f   :  { %14067 = vmatpush3.bf16.msra.mxu1 %v15364_v49  ;;  %v15393_v49 = vld [vmem:[%s19639_s3 + $0xf98] sm:$0xff]  }
 0x2a0   :  { %14089 = vmatpush3.bf16.msra.mxu0 %v15365_v57  ;;  %14068 = vmatprep.subr.bf16.mxu1 %v15366_v45  ;;  %v15394_v57 = vld [vmem:[%s19639_s3 + $0xf60] sm:$0xff]  }
 0x2a1   :  { %v13766_v47 = vpop.f32.mrb[116].mxu1  ;;  %14090 = vmatprep.subr.bf16.mxu0 %v15367_v63  ;;  %v15395_v45 = vld [vmem:[%s19639_s3 + $0xfe0] sm:$0xff]  }
 0x2a2   :  { %v13788_v13 = vpop.f32.mrb[120].mxu0  ;;  %v13767_v58 = vpop.f32.mrb[117].mxu1  ;;  %v15396_v63 = vld [vmem:[%s19639_s3 + $0xf20] sm:$0xff]  }
 0x2a3   :  { %v13768_v33 = vadd.f32 %v13767_v58, %v13766_v47  ;;  %v13789_v43 = vpop.f32.mrb[121].mxu0  ;;  %v13769_v51 = vpop.f32.mrb[118].mxu1  ;;  %14069 = vmatpush3.bf16.msra.mxu1 %v15368_v36  ;;  %v15397_v36 = vld [vmem:[%s19639_s3 + $0xfa0] sm:$0xff]   ;;  %v15400_v47 = vld [vmem:[%s19639_s3 + $0xf28] sm:$0xff]   ;;  %v15403_v58 = vld [vmem:[%s19639_s3 + $0xff0] sm:$0xff]  }
 0x2a4   :  { %v13790_v46 = vadd.f32 %v13789_v43, %v13788_v13  ;;  %v13791_v52 = vpop.f32.mrb[122].mxu0  ;;  %14091 = vmatpush3.bf16.msra.mxu0 %v15369_v19  ;;  %v13770_v18 = vpop.f32.mrb[119].mxu1  ;;  %14070 = vmatprep.subr.bf16.mxu1 %v15370_v38  ;;  %v15398_v19 = vld [vmem:[%s19639_s3 + $0xf68] sm:$0xff]   ;;  %v15402_v13 = vld [vmem:[%s19639_s3 + $0xf70] sm:$0xff]   ;;  %v15406_v43 = vld [vmem:[%s19639_s3 + $0xf78] sm:$0xff]  }
 0x2a5   :  { %v9695_v15 = vadd.f32 %v13768_v33, %v18351_v2  ;;  %v13792_v0 = vpop.f32.mrb[123].mxu0  ;;  %14092 = vmatprep.subr.bf16.mxu0 %v15371_v44  ;;  %v15379_v2 = vld [vmem:[%s19639_s3 + $0xfc0] sm:$0xff]   ;;  %v15399_v38 = vld [vmem:[%s19639_s3 + $0xfe8] sm:$0xff]  }
 0x2a6   :  { %v15401_v44 = vld [vmem:[%s19639_s3 + $0xfa8] sm:$0xff]   ;;  %v15408_v0 = vld [vmem:[%s19639_s3 + $0xf38] sm:$0xff]  }
 0x2a7   :  { %v18457_v61 = vadd.f32 %v13790_v46, %v9695_v15  ;;  %14071 = vmatpush3.bf16.msra.mxu1 %v15372_v60  ;;  %v15407_v15 = vld [vmem:[%s19639_s3 + $0xff8] sm:$0xff]  }
 0x2a8   :  { %14093 = vmatpush3.bf16.msra.mxu0 %v15373_v53  ;;  %14072 = vmatprep.subr.bf16.mxu1 %v15374_v55 }
 0x2a9   :  { %14094 = vmatprep.subr.bf16.mxu0 %v15375_v35 }
 0x2ab   :  { %14073 = vmatpush3.bf16.msra.mxu1 %v15376_v54 }
 0x2ac   :  { %14095 = vmatpush3.bf16.msra.mxu0 %v15377_v48  ;;  %14102 = vmatprep.subr.bf16.mxu1 %v15378_v37  ;;  %v15409_v48 = vld [vmem:[%s19639_s3 + $0xfb8] sm:$0xff]   ;;  %v15825_v37 = vpop.eup %15824 }
 0x2ad   :  { %14124 = vmatprep.subr.bf16.mxu0 %v15379_v2  ;;  %v15411_v2 = vld [vmem:[%s19639_s3 + $0x10c0] sm:$0xff]   ;;  %v15827_v62 = vpop.eup %15826 }
 0x2ae   :  { %10253 = vmatmul.mubr.bf16.vlgmr.msra.gmra.mrb[144].mxu1 %v3302_v41  ;;  %v15829_v56 = vpop.eup %15828  ;;  %v3308_v41 = vpack.c.bf16 %v15827_v62, %v15827_v62 }
 0x2af   :  { %10293 = vmatmul.mubr.bf16.vlgmr.msra.gmra.mrb[148].mxu0 %v3304_v9  ;;  %14103 = vmatpush3.bf16.msra.mxu1 %v15380_v4  ;;  %v15412_v4 = vld [vmem:[%s19639_s3 + $0x1000] sm:$0xff]   ;;  %v15831_v11 = vpop.eup %15830  ;;  %v3311_v9 = vpack.c.bf16 %v15829_v56, %v15829_v56 }
 0x2b0   :  { %10332 = vmatprep.mubr.bf16.mxu1 %v3307_v22  ;;  %14125 = vmatpush3.bf16.msra.mxu0 %v15381_v28  ;;  %v15413_v28 = vld [vmem:[%s19639_s3 + $0x1080] sm:$0xff]   ;;  %v3313_v22 = vpack.c.bf16 %v15831_v11, %v15831_v11  ;;  %v15447_v11 = vld [vmem:[%s19639_s3 + $0x11c8] sm:$0xff]  }
 0x2b1   :  { %10372 = vmatprep.mubr.bf16.mxu0 %v3309_v24  ;;  %14104 = vmatprep.subr.bf16.mxu1 %v15382_v31  ;;  %v3306_v31 = vpack.c.bf16 %v15825_v37, %v15825_v37  ;;  %v15418_v24 = vld [vmem:[%s19639_s3 + $0x1050] sm:$0xff]  }
 0x2b2   :  { %14126 = vmatprep.subr.bf16.mxu0 %v15383_v29  ;;  %v15415_v29 = vld [vmem:[%s19639_s3 + $0x10c8] sm:$0xff]  }
 0x2b3   :  { %14105 = vmatpush3.bf16.msra.mxu1 %v15384_v40  ;;  %v15416_v40 = vld [vmem:[%s19639_s3 + $0x1008] sm:$0xff]  }
 0x2b4   :  { %14127 = vmatpush3.bf16.msra.mxu0 %v15385_v39  ;;  %14106 = vmatprep.subr.bf16.mxu1 %v15386_v26  ;;  %v15417_v39 = vld [vmem:[%s19639_s3 + $0x1088] sm:$0xff]   ;;  %v15419_v26 = vld [vmem:[%s19639_s3 + $0x10d0] sm:$0xff]  }
 0x2b5   :  { %14128 = vmatprep.subr.bf16.mxu0 %v15387_v20  ;;  %v15420_v20 = vld [vmem:[%s19639_s3 + $0x1010] sm:$0xff]  }
 0x2b7   :  { %14107 = vmatpush3.bf16.msra.mxu1 %v15388_v12  ;;  %v15421_v12 = vld [vmem:[%s19639_s3 + $0x1090] sm:$0xff]  }
 0x2b8   :  { %14129 = vmatpush3.bf16.msra.mxu0 %v15389_v50  ;;  %14108 = vmatprep.subr.bf16.mxu1 %v15390_v27  ;;  %v15422_v50 = vld [vmem:[%s19639_s3 + $0x1058] sm:$0xff]  }
 0x2b9   :  { %14130 = vmatprep.subr.bf16.mxu0 %v15391_v32  ;;  %v15423_v27 = vld [vmem:[%s19639_s3 + $0x10d8] sm:$0xff]  }
 0x2ba   :  { %v15424_v32 = vld [vmem:[%s19639_s3 + $0x1018] sm:$0xff]  }
 0x2bb   :  { %14109 = vmatpush3.bf16.msra.mxu1 %v15392_v34  ;;  %v15425_v34 = vld [vmem:[%s19639_s3 + $0x1098] sm:$0xff]  }
 0x2bc   :  { %14131 = vmatpush3.bf16.msra.mxu0 %v15393_v49  ;;  %14110 = vmatprep.subr.bf16.mxu1 %v15394_v57  ;;  %v15426_v49 = vld [vmem:[%s19639_s3 + $0x1060] sm:$0xff]  }
 0x2bd   :  { %14132 = vmatprep.subr.bf16.mxu0 %v15395_v45  ;;  %v15427_v57 = vld [vmem:[%s19639_s3 + $0x10e0] sm:$0xff]  }
 0x2be   :  { %v15428_v45 = vld [vmem:[%s19639_s3 + $0x1020] sm:$0xff]  }
 0x2bf   :  { %14111 = vmatpush3.bf16.msra.mxu1 %v15396_v63  ;;  %v15429_v63 = vld [vmem:[%s19639_s3 + $0x10a0] sm:$0xff]  }
 0x2c0   :  { %14133 = vmatpush3.bf16.msra.mxu0 %v15397_v36  ;;  %14112 = vmatprep.subr.bf16.mxu1 %v15398_v19  ;;  %v15430_v36 = vld [vmem:[%s19639_s3 + $0x1068] sm:$0xff]  }
 0x2c1   :  { %v13810_v60 = vpop.f32.mrb[120].mxu1  ;;  %14134 = vmatprep.subr.bf16.mxu0 %v15399_v38  ;;  %v15431_v19 = vld [vmem:[%s19639_s3 + $0x10e8] sm:$0xff]  }
 0x2c2   :  { %v13832_v53 = vpop.f32.mrb[124].mxu0  ;;  %v13811_v33 = vpop.f32.mrb[121].mxu1  ;;  %v15432_v38 = vld [vmem:[%s19639_s3 + $0x1028] sm:$0xff]  }
 0x2c3   :  { %v13812_v51 = vadd.f32 %v13811_v33, %v13810_v60  ;;  %v13833_v23 = vpop.f32.mrb[125].mxu0  ;;  %v13813_v46 = vpop.f32.mrb[122].mxu1  ;;  %14113 = vmatpush3.bf16.msra.mxu1 %v15400_v47  ;;  %v15433_v47 = vld [vmem:[%s19639_s3 + $0x10a8] sm:$0xff]  }
 0x2c4   :  { %v13834_v52 = vadd.f32 %v13833_v23, %v13832_v53  ;;  %v13835_v18 = vpop.f32.mrb[126].mxu0  ;;  %14135 = vmatpush3.bf16.msra.mxu0 %v15401_v44  ;;  %v13814_v55 = vpop.f32.mrb[123].mxu1  ;;  %14114 = vmatprep.subr.bf16.mxu1 %v15402_v13  ;;  %v15434_v44 = vld [vmem:[%s19639_s3 + $0x1070] sm:$0xff]   ;;  %v15438_v46 = vld [vmem:[%s19639_s3 + $0x1078] sm:$0xff]  }
 0x2c5   :  { %v9775_v8 = vadd.f32 %v13812_v51, %v18457_v61  ;;  %v13836_v35 = vpop.f32.mrb[127].mxu0  ;;  %14136 = vmatprep.subr.bf16.mxu0 %v15403_v58  ;;  %v15410_v61 = vld [vmem:[%s19639_s3 + $0x1040] sm:$0xff]   ;;  %v19665_v58 = vld [vmem:[#allocation7_spill] sm:$0xff] }
 0x2c6   :  { %15838 = vtanh.f32 %v19665_v58  ;;  %v15437_v53 = vld [vmem:[%s19639_s3 + $0x10b0] sm:$0xff]   ;;  %v15441_v35 = vld [vmem:[%s19639_s3 + $0x10b8] sm:$0xff]  }
 0x2c7   :  { %v18557_v54 = vadd.f32 %v13834_v52, %v9775_v8  ;;  %14115 = vmatpush3.bf16.msra.mxu1 %v15404_v25  ;;  %v15439_v52 = vld [vmem:[%s19639_s3 + $0x10f8] sm:$0xff]  }
 0x2c8   :  { %14137 = vmatpush3.bf16.msra.mxu0 %v15405_v42  ;;  %14116 = vmatprep.subr.bf16.mxu1 %v15406_v43  ;;  %v15440_v8 = vld [vmem:[%s19639_s3 + $0x1038] sm:$0xff]  }
 0x2c9   :  { %14138 = vmatprep.subr.bf16.mxu0 %v15407_v15 }
 0x2cb   :  { %14117 = vmatpush3.bf16.msra.mxu1 %v15408_v0  ;;  %v15442_v0 = vld [vmem:[%s19639_s3 + $0x1140] sm:$0xff]  }
 0x2cc   :  { %14139 = vmatpush3.bf16.msra.mxu0 %v15409_v48  ;;  %14146 = vmatprep.subr.bf16.mxu1 %v15410_v61  ;;  %v15833_v48 = vpop.eup %15832  ;;  %v15444_v61 = vld [vmem:[%s19639_s3 + $0x1100] sm:$0xff]  }
 0x2cd   :  { %14168 = vmatprep.subr.bf16.mxu0 %v15411_v2  ;;  %v15835_v37 = vpop.eup %15834  ;;  %v15445_v2 = vld [vmem:[%s19639_s3 + $0x1180] sm:$0xff]  }
 0x2ce   :  { %10333 = vmatmul.mubr.bf16.vlgmr.msra.gmra.mrb[148].mxu1 %v3306_v31  ;;  %v15837_v62 = vpop.eup %15836  ;;  %v3312_v31 = vpack.c.bf16 %v15835_v37, %v15835_v37 }
 0x2cf   :  { %10373 = vmatmul.mubr.bf16.vlgmr.msra.gmra.mrb[152].mxu0 %v3308_v41  ;;  %14147 = vmatpush3.bf16.msra.mxu1 %v15412_v4  ;;  %v15446_v4 = vld [vmem:[%s19639_s3 + $0x1148] sm:$0xff]   ;;  %v3315_v41 = vpack.c.bf16 %v15837_v62, %v15837_v62 }
 0x2d0   :  { %10412 = vmatprep.mubr.bf16.mxu1 %v3311_v9  ;;  %14169 = vmatpush3.bf16.msra.mxu0 %v15413_v28  ;;  %v15839_v56 = vpop.eup %15838  ;;  %v3310_v28 = vpack.c.bf16 %v15833_v48, %v15833_v48  ;;  %v15477_v48 = vld [vmem:[%s19639_s3 + $0x1280] sm:$0xff]  }
 0x2d1   :  { %10452 = vmatprep.mubr.bf16.mxu0 %v3313_v22  ;;  %14148 = vmatprep.subr.bf16.mxu1 %v15414_v17  ;;  %v15448_v17 = vld [vmem:[%s19639_s3 + $0x1108] sm:$0xff]   ;;  %v3317_v9 = vpack.c.bf16 %v15839_v56, %v15839_v56  ;;  %v15451_v22 = vld [vmem:[%s19639_s3 + $0x11d0] sm:$0xff]  }
 0x2d2   :  { %14170 = vmatprep.subr.bf16.mxu0 %v15415_v29  ;;  %v15449_v29 = vld [vmem:[%s19639_s3 + $0x1188] sm:$0xff]  }
 0x2d3   :  { %14149 = vmatpush3.bf16.msra.mxu1 %v15416_v40  ;;  %v15450_v40 = vld [vmem:[%s19639_s3 + $0x1150] sm:$0xff]  }
 0x2d4   :  { %14171 = vmatpush3.bf16.msra.mxu0 %v15417_v39  ;;  %14150 = vmatprep.subr.bf16.mxu1 %v15418_v24  ;;  %v15452_v39 = vld [vmem:[%s19639_s3 + $0x1110] sm:$0xff]  }
 0x2d5   :  { %14172 = vmatprep.subr.bf16.mxu0 %v15419_v26  ;;  %v15453_v24 = vld [vmem:[%s19639_s3 + $0x1190] sm:$0xff]   ;;  %v15454_v26 = vld [vmem:[%s19639_s3 + $0x1158] sm:$0xff]  }
 0x2d7   :  { %14151 = vmatpush3.bf16.msra.mxu1 %v15420_v20  ;;  %v15455_v20 = vld [vmem:[%s19639_s3 + $0x11d8] sm:$0xff]  }
 0x2d8   :  { %14173 = vmatpush3.bf16.msra.mxu0 %v15421_v12  ;;  %14152 = vmatprep.subr.bf16.mxu1 %v15422_v50  ;;  %v15456_v12 = vld [vmem:[%s19639_s3 + $0x1118] sm:$0xff]  }
 0x2d9   :  { %14174 = vmatprep.subr.bf16.mxu0 %v15423_v27  ;;  %v15457_v50 = vld [vmem:[%s19639_s3 + $0x1198] sm:$0xff]   ;;  %v15458_v27 = vld [vmem:[%s19639_s3 + $0x1160] sm:$0xff]  }
 0x2db   :  { %14153 = vmatpush3.bf16.msra.mxu1 %v15424_v32  ;;  %v15459_v32 = vld [vmem:[%s19639_s3 + $0x11e0] sm:$0xff]  }
 0x2dc   :  { %14175 = vmatpush3.bf16.msra.mxu0 %v15425_v34  ;;  %14154 = vmatprep.subr.bf16.mxu1 %v15426_v49  ;;  %v15460_v34 = vld [vmem:[%s19639_s3 + $0x1120] sm:$0xff]  }
 0x2dd   :  { %14176 = vmatprep.subr.bf16.mxu0 %v15427_v57  ;;  %v15461_v49 = vld [vmem:[%s19639_s3 + $0x11a0] sm:$0xff]   ;;  %v15462_v57 = vld [vmem:[%s19639_s3 + $0x1168] sm:$0xff]  }
 0x2df   :  { %14155 = vmatpush3.bf16.msra.mxu1 %v15428_v45  ;;  %v15463_v45 = vld [vmem:[%s19639_s3 + $0x11e8] sm:$0xff]  }
 0x2e0   :  { %14177 = vmatpush3.bf16.msra.mxu0 %v15429_v63  ;;  %14156 = vmatprep.subr.bf16.mxu1 %v15430_v36  ;;  %v15464_v63 = vld [vmem:[%s19639_s3 + $0x1128] sm:$0xff]  }
 0x2e1   :  { %v13854_v13 = vpop.f32.mrb[124].mxu1  ;;  %14178 = vmatprep.subr.bf16.mxu0 %v15431_v19  ;;  %v15465_v36 = vld [vmem:[%s19639_s3 + $0x11a8] sm:$0xff]  }
 0x2e2   :  { %v13876_v60 = vpop.f32.mrb[128].mxu0  ;;  %v13855_v25 = vpop.f32.mrb[125].mxu1  ;;  %v19666_v19 = vld [vmem:[#allocation5_spill] sm:$0xff] }
 0x2e3   :  { %v13856_v33 = vadd.f32 %v13855_v25, %v13854_v13  ;;  %v13877_v16 = vpop.f32.mrb[129].mxu0  ;;  %v13857_v42 = vpop.f32.mrb[126].mxu1  ;;  %14157 = vmatpush3.bf16.msra.mxu1 %v15432_v38  ;;  %15840 = vtanh.f32 %v19666_v19  ;;  %v15466_v38 = vld [vmem:[%s19639_s3 + $0x1170] sm:$0xff]  }
 0x2e4   :  { %v13878_v43 = vadd.f32 %v13877_v16, %v13876_v60  ;;  %v13879_v51 = vpop.f32.mrb[130].mxu0  ;;  %14179 = vmatpush3.bf16.msra.mxu0 %v15433_v47  ;;  %v13858_v23 = vpop.f32.mrb[127].mxu1  ;;  %14158 = vmatprep.subr.bf16.mxu1 %v15434_v44  ;;  %v19667_v47 = vld [vmem:[#allocation6_spill] sm:$0xff] }
 0x2e5   :  { %v9855_v18 = vadd.f32 %v13856_v33, %v18557_v54  ;;  %v13880_v55 = vpop.f32.mrb[131].mxu0  ;;  %14180 = vmatprep.subr.bf16.mxu0 %v15435_v10  ;;  %v15443_v54 = vld [vmem:[%s19639_s3 + $0x11c0] sm:$0xff]   ;;  %15842 = vtanh.f32 %v19667_v47  ;;  %v15467_v44 = vld [vmem:[%s19639_s3 + $0x11f0] sm:$0xff]   ;;  %v15471_v23 = vld [vmem:[%s19639_s3 + $0x11f8] sm:$0xff]  }
 0x2e6   :  { %15844 = vtanh.f32 %v17422_v6  ;;  %v15468_v10 = vld [vmem:[%s19639_s3 + $0x1130] sm:$0xff]   ;;  %v15474_v55 = vld [vmem:[%s19639_s3 + $0x1240] sm:$0xff]  }
 0x2e7   :  { %v18663_v15 = vadd.f32 %v13878_v43, %v9855_v18  ;;  %14159 = vmatpush3.bf16.msra.mxu1 %v15436_v21  ;;  %15846 = vtanh.f32 %v17424_v3  ;;  %v15469_v25 = vld [vmem:[%s19639_s3 + $0x11b0] sm:$0xff]   ;;  %v15470_v21 = vld [vmem:[%s19639_s3 + $0x1178] sm:$0xff]  }
 0x2e8   :  { %14181 = vmatpush3.bf16.msra.mxu0 %v15437_v53  ;;  %14160 = vmatprep.subr.bf16.mxu1 %v15438_v46  ;;  %v15472_v46 = vld [vmem:[%s19639_s3 + $0x1138] sm:$0xff]   ;;  %v15499_v19 = vld [vmem:[%s19639_s3 + $0x12f0] sm:$0xff]  }
 0x2e9   :  { %14182 = vmatprep.subr.bf16.mxu0 %v15439_v52  ;;  %v15473_v18 = vld [vmem:[%s19639_s3 + $0x11b8] sm:$0xff]  }
 0x2eb   :  { %14161 = vmatpush3.bf16.msra.mxu1 %v15440_v8 }
 0x2ec   :  { %14183 = vmatpush3.bf16.msra.mxu0 %v15441_v35  ;;  %14190 = vmatprep.subr.bf16.mxu1 %v15442_v0  ;;  %v15475_v35 = vld [vmem:[%s19639_s3 + $0x12c0] sm:$0xff]  }
 0x2ed   :  { %14212 = vmatprep.subr.bf16.mxu0 %v15443_v54  ;;  %v15841_v8 = vpop.eup %15840  ;;  %v15476_v0 = vld [vmem:[%s19639_s3 + $0x1200] sm:$0xff]  }
 0x2ee   :  { %10413 = vmatmul.mubr.bf16.vlgmr.msra.gmra.mrb[152].mxu1 %v3310_v28  ;;  %v3314_v37 = vpack.c.bf16 %v15841_v8, %v15841_v8  ;;  %v15480_v28 = vld [vmem:[%s19639_s3 + $0x1208] sm:$0xff]  }
 0x2ef   :  { %10453 = vmatmul.mubr.bf16.vlgmr.msra.gmra.mrb[156].mxu0 %v3312_v31  ;;  %14191 = vmatpush3.bf16.msra.mxu1 %v15444_v61  ;;  %v15481_v31 = vld [vmem:[%s19639_s3 + $0x1288] sm:$0xff]  }
 0x2f0   :  { %10492 = vmatprep.mubr.bf16.mxu1 %v3315_v41  ;;  %14213 = vmatpush3.bf16.msra.mxu0 %v15445_v2  ;;  %v15478_v2 = vld [vmem:[%s19639_s3 + $0x1248] sm:$0xff]   ;;  %v15483_v41 = vld [vmem:[%s19639_s3 + $0x12d0] sm:$0xff]  }
 0x2f1   :  { %10532 = vmatprep.mubr.bf16.mxu0 %v3317_v9  ;;  %14192 = vmatprep.subr.bf16.mxu1 %v15446_v4  ;;  %v15479_v4 = vld [vmem:[%s19639_s3 + $0x12c8] sm:$0xff]   ;;  %v15485_v9 = vld [vmem:[%s19639_s3 + $0x1290] sm:$0xff]  }
 0x2f2   :  { %14214 = vmatprep.subr.bf16.mxu0 %v15447_v11  ;;  %v15510_v8 = vld [vmem:[%s19639_s3 + $0x1348] sm:$0xff]  }
 0x2f3   :  { %14193 = vmatpush3.bf16.msra.mxu1 %v15448_v17  ;;  %v15482_v17 = vld [vmem:[%s19639_s3 + $0x1250] sm:$0xff]  }
 0x2f4   :  { %14215 = vmatpush3.bf16.msra.mxu0 %v15449_v29  ;;  %14194 = vmatprep.subr.bf16.mxu1 %v15450_v40  ;;  %v15484_v29 = vld [vmem:[%s19639_s3 + $0x1210] sm:$0xff]   ;;  %v15486_v40 = vld [vmem:[%s19639_s3 + $0x1258] sm:$0xff]  }
 0x2f5   :  { %14216 = vmatprep.subr.bf16.mxu0 %v15451_v22  ;;  %v15487_v22 = vld [vmem:[%s19639_s3 + $0x12d8] sm:$0xff]  }
 0x2f7   :  { %14195 = vmatpush3.bf16.msra.mxu1 %v15452_v39  ;;  %v15488_v39 = vld [vmem:[%s19639_s3 + $0x1218] sm:$0xff]  }
 0x2f8   :  { %14217 = vmatpush3.bf16.msra.mxu0 %v15453_v24  ;;  %14196 = vmatprep.subr.bf16.mxu1 %v15454_v26  ;;  %v15489_v24 = vld [vmem:[%s19639_s3 + $0x1298] sm:$0xff]   ;;  %v15490_v26 = vld [vmem:[%s19639_s3 + $0x1260] sm:$0xff]  }
 0x2f9   :  { %14218 = vmatprep.subr.bf16.mxu0 %v15455_v20  ;;  %v15491_v20 = vld [vmem:[%s19639_s3 + $0x12e0] sm:$0xff]  }
 0x2fb   :  { %14197 = vmatpush3.bf16.msra.mxu1 %v15456_v12  ;;  %v15492_v12 = vld [vmem:[%s19639_s3 + $0x1220] sm:$0xff]  }
 0x2fc   :  { %14219 = vmatpush3.bf16.msra.mxu0 %v15457_v50  ;;  %14198 = vmatprep.subr.bf16.mxu1 %v15458_v27  ;;  %v15493_v50 = vld [vmem:[%s19639_s3 + $0x12a0] sm:$0xff]   ;;  %v15494_v27 = vld [vmem:[%s19639_s3 + $0x1268] sm:$0xff]  }
 0x2fd   :  { %14220 = vmatprep.subr.bf16.mxu0 %v15459_v32  ;;  %v15495_v32 = vld [vmem:[%s19639_s3 + $0x12e8] sm:$0xff]  }
 0x2ff   :  { %14199 = vmatpush3.bf16.msra.mxu1 %v15460_v34  ;;  %v15496_v34 = vld [vmem:[%s19639_s3 + $0x1228] sm:$0xff]  }
 0x300   :  { %14221 = vmatpush3.bf16.msra.mxu0 %v15461_v49  ;;  %14200 = vmatprep.subr.bf16.mxu1 %v15462_v57  ;;  %v19668_v49 = vld [vmem:[#allocation8_spill] sm:$0xff]  ;;  %v15497_v57 = vld [vmem:[%s19639_s3 + $0x12a8] sm:$0xff]  }
 0x301   :  { %v13898_v13 = vpop.f32.mrb[128].mxu1  ;;  %14222 = vmatprep.subr.bf16.mxu0 %v15463_v45  ;;  %15848 = vtanh.f32 %v19668_v49  ;;  %v19669_v45 = vld [vmem:[#allocation9_spill] sm:$0xff] }
 0x302   :  { %v13920_v58 = vpop.f32.mrb[132].mxu0  ;;  %v13899_v60 = vpop.f32.mrb[129].mxu1  ;;  %15850 = vtanh.f32 %v19669_v45  ;;  %v19673_v45 = vld [vmem:[#allocation15_spill] sm:$0xff] }
 0x303   :  { %v13900_v53 = vadd.f32 %v13899_v60, %v13898_v13  ;;  %v13921_v6 = vpop.f32.mrb[133].mxu0  ;;  %v13901_v33 = vpop.f32.mrb[130].mxu1  ;;  %14201 = vmatpush3.bf16.msra.mxu1 %v15464_v63  ;;  %v15498_v63 = vld [vmem:[%s19639_s3 + $0x1270] sm:$0xff]   ;;  %15852 = vtanh.f32 %v17457_v5 }
 0x304   :  { %v13922_v16 = vadd.f32 %v13921_v6, %v13920_v58  ;;  %v13923_v42 = vpop.f32.mrb[134].mxu0  ;;  %14223 = vmatpush3.bf16.msra.mxu0 %v15465_v36  ;;  %v13902_v43 = vpop.f32.mrb[131].mxu1  ;;  %14202 = vmatprep.subr.bf16.mxu1 %v15466_v38  ;;  %15854 = vtanh.f32 %v17459_v7  ;;  %v15501_v13 = vld [vmem:[%s19639_s3 + $0x12b0] sm:$0xff]   ;;  %v15502_v7 = vld [vmem:[%s19639_s3 + $0x1278] sm:$0xff]  }
 0x305   :  { %v9935_v3 = vadd.f32 %v13900_v53, %v18663_v15  ;;  %v13924_v51 = vpop.f32.mrb[135].mxu0  ;;  %14224 = vmatprep.subr.bf16.mxu0 %v15467_v44  ;;  %v15843_v15 = vpop.eup %15842  ;;  %v15500_v44 = vld [vmem:[%s19639_s3 + $0x1230] sm:$0xff]   ;;  %v15503_v53 = vld [vmem:[%s19639_s3 + $0x12f8] sm:$0xff]  }
 0x306   :  { %v15845_v54 = vpop.eup %15844  ;;  %v3316_v62 = vpack.c.bf16 %v15843_v15, %v15843_v15  ;;  %v15505_v42 = vld [vmem:[%s19639_s3 + $0x12b8] sm:$0xff]   ;;  %v15507_v51 = vld [vmem:[%s19639_s3 + $0x13c0] sm:$0xff]  }
 0x307   :  { %v18763_v52 = vadd.f32 %v13922_v16, %v9935_v3  ;;  %14203 = vmatpush3.bf16.msra.mxu1 %v15468_v10  ;;  %v15847_v61 = vpop.eup %15846  ;;  %v3319_v56 = vpack.c.bf16 %v15845_v54, %v15845_v54  ;;  %v15504_v16 = vld [vmem:[%s19639_s3 + $0x1238] sm:$0xff]   ;;  %v15506_v3 = vld [vmem:[%s19639_s3 + $0x1340] sm:$0xff]  }
 0x308   :  { %14225 = vmatpush3.bf16.msra.mxu0 %v15469_v25  ;;  %14204 = vmatprep.subr.bf16.mxu1 %v15470_v21  ;;  %v3321_v11 = vpack.c.bf16 %v15847_v61, %v15847_v61 }
 0x309   :  { %14226 = vmatprep.subr.bf16.mxu0 %v15471_v23 }
 0x30b   :  { %14205 = vmatpush3.bf16.msra.mxu1 %v15472_v46  ;;  %v15849_v23 = vpop.eup %15848  ;;  %v15508_v46 = vld [vmem:[%s19639_s3 + $0x1300] sm:$0xff]  }
 0x30c   :  { %14227 = vmatpush3.bf16.msra.mxu0 %v15473_v18  ;;  %14234 = vmatprep.subr.bf16.mxu1 %v15474_v55  ;;  %v15509_v18 = vld [vmem:[%s19639_s3 + $0x1380] sm:$0xff]   ;;  %v3318_v15 = vpack.c.bf16 %v15849_v23, %v15849_v23 }
 0x30d   :  { %14256 = vmatprep.subr.bf16.mxu0 %v15475_v35 }
 0x30e   :  { %10493 = vmatmul.mubr.bf16.vlgmr.msra.gmra.mrb[156].mxu1 %v3314_v37  ;;  %v15513_v37 = vld [vmem:[%s19639_s3 + $0x1388] sm:$0xff]  }
 0x30f   :  { %10533 = vmatmul.mubr.bf16.vlgmr.msra.gmra.mrb[160].mxu0 %v3316_v62  ;;  %14235 = vmatpush3.bf16.msra.mxu1 %v15476_v0  ;;  %v15511_v0 = vld [vmem:[%s19639_s3 + $0x13c8] sm:$0xff]   ;;  %v15514_v62 = vld [vmem:[%s19639_s3 + $0x1350] sm:$0xff]  }
 0x310   :  { %10572 = vmatprep.mubr.bf16.mxu1 %v3319_v56  ;;  %14257 = vmatpush3.bf16.msra.mxu0 %v15477_v48  ;;  %v15512_v48 = vld [vmem:[%s19639_s3 + $0x1308] sm:$0xff]   ;;  %v15516_v56 = vld [vmem:[%s19639_s3 + $0x1310] sm:$0xff]  }
 0x311   :  { %10612 = vmatprep.mubr.bf16.mxu0 %v3321_v11  ;;  %14236 = vmatprep.subr.bf16.mxu1 %v15478_v2  ;;  %v15518_v11 = vld [vmem:[%s19639_s3 + $0x1358] sm:$0xff]  }
 0x312   :  { %14258 = vmatprep.subr.bf16.mxu0 %v15479_v4  ;;  %v15515_v4 = vld [vmem:[%s19639_s3 + $0x13d0] sm:$0xff]  }
 0x313   :  { %14237 = vmatpush3.bf16.msra.mxu1 %v15480_v28  ;;  %v15517_v28 = vld [vmem:[%s19639_s3 + $0x1390] sm:$0xff]  }
 0x314   :  { %14259 = vmatpush3.bf16.msra.mxu0 %v15481_v31  ;;  %14238 = vmatprep.subr.bf16.mxu1 %v15482_v17  ;;  %v15519_v31 = vld [vmem:[%s19639_s3 + $0x13d8] sm:$0xff]  }
 0x315   :  { %14260 = vmatprep.subr.bf16.mxu0 %v15483_v41  ;;  %v15520_v17 = vld [vmem:[%s19639_s3 + $0x1318] sm:$0xff]  }
 0x316   :  { %v15521_v41 = vld [vmem:[%s19639_s3 + $0x1398] sm:$0xff]  }
 0x317   :  { %14239 = vmatpush3.bf16.msra.mxu1 %v15484_v29  ;;  %v15522_v29 = vld [vmem:[%s19639_s3 + $0x1360] sm:$0xff]  }
 0x318   :  { %14261 = vmatpush3.bf16.msra.mxu0 %v15485_v9  ;;  %14240 = vmatprep.subr.bf16.mxu1 %v15486_v40  ;;  %v15523_v9 = vld [vmem:[%s19639_s3 + $0x13e0] sm:$0xff]  }
 0x319   :  { %14262 = vmatprep.subr.bf16.mxu0 %v15487_v22  ;;  %v15524_v40 = vld [vmem:[%s19639_s3 + $0x1320] sm:$0xff]  }
 0x31a   :  { %v15525_v22 = vld [vmem:[%s19639_s3 + $0x13a0] sm:$0xff]  }
 0x31b   :  { %14241 = vmatpush3.bf16.msra.mxu1 %v15488_v39  ;;  %v15526_v39 = vld [vmem:[%s19639_s3 + $0x1368] sm:$0xff]  }
 0x31c   :  { %14263 = vmatpush3.bf16.msra.mxu0 %v15489_v24  ;;  %14242 = vmatprep.subr.bf16.mxu1 %v15490_v26  ;;  %v15527_v24 = vld [vmem:[%s19639_s3 + $0x13e8] sm:$0xff]  }
 0x31d   :  { %14264 = vmatprep.subr.bf16.mxu0 %v15491_v20  ;;  %v15528_v26 = vld [vmem:[%s19639_s3 + $0x1328] sm:$0xff]  }
 0x31e   :  { %v15529_v20 = vld [vmem:[%s19639_s3 + $0x13a8] sm:$0xff]  }
 0x31f   :  { %14243 = vmatpush3.bf16.msra.mxu1 %v15492_v12  ;;  %v19670_v12 = vld [vmem:[#allocation10_spill] sm:$0xff] }
 0x320   :  { %14265 = vmatpush3.bf16.msra.mxu0 %v15493_v50  ;;  %14244 = vmatprep.subr.bf16.mxu1 %v15494_v27  ;;  %15856 = vtanh.f32 %v19670_v12  ;;  %v15530_v50 = vld [vmem:[%s19639_s3 + $0x1370] sm:$0xff]  }
 0x321   :  { %v13942_v36 = vpop.f32.mrb[132].mxu1  ;;  %14266 = vmatprep.subr.bf16.mxu0 %v15495_v32  ;;  %v19671_v27 = vld [vmem:[#allocation11_spill] sm:$0xff]  ;;  %v19676_v12 = vld [vmem:[#allocation18_spill] sm:$0xff] }
 0x322   :  { %v13964_v38 = vpop.f32.mrb[136].mxu0  ;;  %v13943_v47 = vpop.f32.mrb[133].mxu1  ;;  %15858 = vtanh.f32 %v19671_v27  ;;  %v15531_v32 = vld [vmem:[%s19639_s3 + $0x13f0] sm:$0xff]  }
 0x323   :  { %v13944_v10 = vadd.f32 %v13943_v47, %v13942_v36  ;;  %v13965_v5 = vpop.f32.mrb[137].mxu0  ;;  %v13945_v58 = vpop.f32.mrb[134].mxu1  ;;  %14245 = vmatpush3.bf16.msra.mxu1 %v15496_v34  ;;  %v19672_v34 = vld [vmem:[#allocation14_spill] sm:$0xff] }
 0x324   :  { %v13966_v60 = vadd.f32 %v13965_v5, %v13964_v38  ;;  %v13967_v25 = vpop.f32.mrb[138].mxu0  ;;  %14267 = vmatpush3.bf16.msra.mxu0 %v15497_v57  ;;  %v13946_v21 = vpop.f32.mrb[135].mxu1  ;;  %14246 = vmatprep.subr.bf16.mxu1 %v15498_v63  ;;  %15860 = vtanh.f32 %v19672_v34  ;;  %v15532_v57 = vld [vmem:[%s19639_s3 + $0x1330] sm:$0xff]   ;;  %v15534_v38 = vld [vmem:[%s19639_s3 + $0x1378] sm:$0xff]  }
 0x325   :  { %v10015_v6 = vadd.f32 %v13944_v10, %v18763_v52  ;;  %v13968_v33 = vpop.f32.mrb[139].mxu0  ;;  %14268 = vmatprep.subr.bf16.mxu0 %v15499_v19  ;;  %v15851_v52 = vpop.eup %15850  ;;  %15862 = vtanh.f32 %v19673_v45  ;;  %v15533_v19 = vld [vmem:[%s19639_s3 + $0x13b0] sm:$0xff]   ;;  %v15535_v10 = vld [vmem:[%s19639_s3 + $0x13f8] sm:$0xff]  }
 0x326   :  { %v15853_v55 = vpop.eup %15852  ;;  %v3320_v54 = vpack.c.bf16 %v15851_v52, %v15851_v52  ;;  %v15538_v33 = vld [vmem:[%s19639_s3 + $0x1440] sm:$0xff]   ;;  %v15564_v27 = vld [vmem:[%s19639_s3 + $0x1430] sm:$0xff]  }
 0x327   :  { %v18869_v43 = vadd.f32 %v13966_v60, %v10015_v6  ;;  %14247 = vmatpush3.bf16.msra.mxu1 %v15500_v44  ;;  %v15855_v35 = vpop.eup %15854  ;;  %v3323_v61 = vpack.c.bf16 %v15853_v55, %v15853_v55  ;;  %v15543_v55 = vld [vmem:[%s19639_s3 + $0x14c8] sm:$0xff]  }
 0x328   :  { %14269 = vmatpush3.bf16.msra.mxu0 %v15501_v13  ;;  %14248 = vmatprep.subr.bf16.mxu1 %v15502_v7  ;;  %v3325_v2 = vpack.c.bf16 %v15855_v35, %v15855_v35  ;;  %v15536_v7 = vld [vmem:[%s19639_s3 + $0x1338] sm:$0xff]   ;;  %v15544_v35 = vld [vmem:[%s19639_s3 + $0x1408] sm:$0xff]  }
 0x329   :  { %14270 = vmatprep.subr.bf16.mxu0 %v15503_v53  ;;  %v15537_v53 = vld [vmem:[%s19639_s3 + $0x13b8] sm:$0xff]  }
 0x32b   :  { %14249 = vmatpush3.bf16.msra.mxu1 %v15504_v16  ;;  %v15539_v16 = vld [vmem:[%s19639_s3 + $0x14c0] sm:$0xff]  }
 0x32c   :  { %14271 = vmatpush3.bf16.msra.mxu0 %v15505_v42  ;;  %14278 = vmatprep.subr.bf16.mxu1 %v15506_v3  ;;  %v15857_v42 = vpop.eup %15856 }
 0x32d   :  { %14300 = vmatprep.subr.bf16.mxu0 %v15507_v51  ;;  %v15859_v3 = vpop.eup %15858  ;;  %v15541_v51 = vld [vmem:[%s19639_s3 + $0x1480] sm:$0xff]  }
 0x32e   :  { %10573 = vmatmul.mubr.bf16.vlgmr.msra.gmra.mrb[160].mxu1 %v3318_v15  ;;  %v15861_v23 = vpop.eup %15860 }
 0x32f   :  { %10613 = vmatmul.mubr.bf16.vlgmr.msra.gmra.mrb[164].mxu0 %v3320_v54  ;;  %14279 = vmatpush3.bf16.msra.mxu1 %v15508_v46  ;;  %v15542_v46 = vld [vmem:[%s19639_s3 + $0x1448] sm:$0xff]   ;;  %v15863_v52 = vpop.eup %15862  ;;  %v3327_v15 = vpack.c.bf16 %v15861_v23, %v15861_v23 }
 0x330   :  { %10652 = vmatprep.mubr.bf16.mxu1 %v3323_v61  ;;  %14301 = vmatpush3.bf16.msra.mxu0 %v15509_v18  ;;  %v3322_v18 = vpack.c.bf16 %v15857_v42, %v15857_v42  ;;  %v3329_v54 = vpack.c.bf16 %v15863_v52, %v15863_v52  ;;  %v15547_v61 = vld [vmem:[%s19639_s3 + $0x14d0] sm:$0xff]   ;;  %v15576_v23 = vld [vmem:[%s19639_s3 + $0x1508] sm:$0xff]  }
 0x331   :  { %10692 = vmatprep.mubr.bf16.mxu0 %v3325_v2  ;;  %14280 = vmatprep.subr.bf16.mxu1 %v15510_v8  ;;  %v3324_v8 = vpack.c.bf16 %v15859_v3, %v15859_v3  ;;  %v15549_v2 = vld [vmem:[%s19639_s3 + $0x1490] sm:$0xff]   ;;  %v15575_v3 = vld [vmem:[%s19639_s3 + $0x15c8] sm:$0xff]  }
 0x332   :  { %14302 = vmatprep.subr.bf16.mxu0 %v15511_v0  ;;  %v15545_v0 = vld [vmem:[%s19639_s3 + $0x1488] sm:$0xff]  }
 0x333   :  { %14281 = vmatpush3.bf16.msra.mxu1 %v15512_v48  ;;  %v15546_v48 = vld [vmem:[%s19639_s3 + $0x1450] sm:$0xff]   ;;  %v15577_v52 = vld [vmem:[%s19639_s3 + $0x1588] sm:$0xff]  }
 0x334   :  { %14303 = vmatpush3.bf16.msra.mxu0 %v15513_v37  ;;  %14282 = vmatprep.subr.bf16.mxu1 %v15514_v62  ;;  %v15548_v37 = vld [vmem:[%s19639_s3 + $0x1410] sm:$0xff]   ;;  %v15550_v62 = vld [vmem:[%s19639_s3 + $0x1458] sm:$0xff]  }
 0x335   :  { %14304 = vmatprep.subr.bf16.mxu0 %v15515_v4  ;;  %v15551_v4 = vld [vmem:[%s19639_s3 + $0x14d8] sm:$0xff]  }
 0x337   :  { %14283 = vmatpush3.bf16.msra.mxu1 %v15516_v56  ;;  %v15552_v56 = vld [vmem:[%s19639_s3 + $0x1418] sm:$0xff]  }
 0x338   :  { %14305 = vmatpush3.bf16.msra.mxu0 %v15517_v28  ;;  %14284 = vmatprep.subr.bf16.mxu1 %v15518_v11  ;;  %v15553_v28 = vld [vmem:[%s19639_s3 + $0x1498] sm:$0xff]   ;;  %v15554_v11 = vld [vmem:[%s19639_s3 + $0x1460] sm:$0xff]  }
 0x339   :  { %14306 = vmatprep.subr.bf16.mxu0 %v15519_v31  ;;  %v15555_v31 = vld [vmem:[%s19639_s3 + $0x14e0] sm:$0xff]  }
 0x33b   :  { %14285 = vmatpush3.bf16.msra.mxu1 %v15520_v17  ;;  %v15556_v17 = vld [vmem:[%s19639_s3 + $0x1420] sm:$0xff]  }
 0x33c   :  { %14307 = vmatpush3.bf16.msra.mxu0 %v15521_v41  ;;  %14286 = vmatprep.subr.bf16.mxu1 %v15522_v29  ;;  %v15557_v41 = vld [vmem:[%s19639_s3 + $0x14a0] sm:$0xff]   ;;  %v15558_v29 = vld [vmem:[%s19639_s3 + $0x1468] sm:$0xff]  }
 0x33d   :  { %14308 = vmatprep.subr.bf16.mxu0 %v15523_v9  ;;  %v15559_v9 = vld [vmem:[%s19639_s3 + $0x14e8] sm:$0xff]  }
 0x33f   :  { %14287 = vmatpush3.bf16.msra.mxu1 %v15524_v40  ;;  %v15560_v40 = vld [vmem:[%s19639_s3 + $0x1428] sm:$0xff]  }
 0x340   :  { %14309 = vmatpush3.bf16.msra.mxu0 %v15525_v22  ;;  %14288 = vmatprep.subr.bf16.mxu1 %v15526_v39  ;;  %v15561_v22 = vld [vmem:[%s19639_s3 + $0x14a8] sm:$0xff]   ;;  %v19674_v39 = vld [vmem:[#allocation12_spill] sm:$0xff] }
 0x341   :  { %v13986_v49 = vpop.f32.mrb[136].mxu1  ;;  %14310 = vmatprep.subr.bf16.mxu0 %v15527_v24  ;;  %15864 = vtanh.f32 %v19674_v39  ;;  %v15562_v24 = vld [vmem:[%s19639_s3 + $0x1470] sm:$0xff]  }
 0x342   :  { %v14008_v63 = vpop.f32.mrb[140].mxu0  ;;  %v13987_v36 = vpop.f32.mrb[137].mxu1 }
 0x343   :  { %v13988_v47 = vadd.f32 %v13987_v36, %v13986_v49  ;;  %v14009_v44 = vpop.f32.mrb[141].mxu0  ;;  %v13989_v13 = vpop.f32.mrb[138].mxu1  ;;  %14289 = vmatpush3.bf16.msra.mxu1 %v15528_v26  ;;  %v19675_v26 = vld [vmem:[#allocation13_spill] sm:$0xff]  ;;  %v15565_v49 = vld [vmem:[%s19639_s3 + $0x14b0] sm:$0xff]  }
 0x344   :  { %v14010_v5 = vadd.f32 %v14009_v44, %v14008_v63  ;;  %v14011_v58 = vpop.f32.mrb[142].mxu0  ;;  %14311 = vmatpush3.bf16.msra.mxu0 %v15529_v20  ;;  %v13990_v60 = vpop.f32.mrb[139].mxu1  ;;  %14290 = vmatprep.subr.bf16.mxu1 %v15530_v50  ;;  %15866 = vtanh.f32 %v19675_v26  ;;  %v15563_v20 = vld [vmem:[%s19639_s3 + $0x14f0] sm:$0xff]  }
 0x345   :  { %v10095_v25 = vadd.f32 %v13988_v47, %v18869_v43  ;;  %v14012_v21 = vpop.f32.mrb[143].mxu0  ;;  %14312 = vmatprep.subr.bf16.mxu0 %v15531_v32  ;;  %v15540_v43 = vld [vmem:[%s19639_s3 + $0x1400] sm:$0xff]   ;;  %15868 = vtanh.f32 %v19676_v12  ;;  %v15597_v26 = vld [vmem:[%s19639_s3 + $0x15b0] sm:$0xff]  }
 0x346   :  { %15870 = vtanh.f32 %v17530_v14  ;;  %v15570_v58 = vld [vmem:[%s19639_s3 + $0x1540] sm:$0xff]  }
 0x347   :  { %v18972_v6 = vadd.f32 %v14010_v5, %v10095_v25  ;;  %14291 = vmatpush3.bf16.msra.mxu1 %v15532_v57  ;;  %v15566_v57 = vld [vmem:[%s19639_s3 + $0x1478] sm:$0xff]   ;;  %v15571_v25 = vld [vmem:[%s19639_s3 + $0x15c0] sm:$0xff]  }
 0x348   :  { %14313 = vmatpush3.bf16.msra.mxu0 %v15533_v19  ;;  %14292 = vmatprep.subr.bf16.mxu1 %v15534_v38  ;;  %v15567_v19 = vld [vmem:[%s19639_s3 + $0x14f8] sm:$0xff]  }
 0x349   :  { %14314 = vmatprep.subr.bf16.mxu0 %v15535_v10  ;;  %v15568_v10 = vld [vmem:[%s19639_s3 + $0x1438] sm:$0xff]  }
 0x34a   :  { %v15569_v5 = vld [vmem:[%s19639_s3 + $0x14b8] sm:$0xff]  }
 0x34b   :  { %14293 = vmatpush3.bf16.msra.mxu1 %v15536_v7  ;;  %v15865_v21 = vpop.eup %15864  ;;  %v15572_v7 = vld [vmem:[%s19639_s3 + $0x1500] sm:$0xff]  }
 0x34c   :  { %14315 = vmatpush3.bf16.msra.mxu0 %v15537_v53  ;;  %14322 = vmatprep.subr.bf16.mxu1 %v15538_v33 }
 0x34d   :  { %14344 = vmatprep.subr.bf16.mxu0 %v15539_v16  ;;  %v15574_v16 = vld [vmem:[%s19639_s3 + $0x1548] sm:$0xff]  }
 0x34e   :  { %10653 = vmatmul.mubr.bf16.vlgmr.msra.gmra.mrb[164].mxu1 %v3322_v18  ;;  %v15867_v53 = vpop.eup %15866  ;;  %v15578_v18 = vld [vmem:[%s19639_s3 + $0x1550] sm:$0xff]  }
 0x34f   :  { %10693 = vmatmul.mubr.bf16.vlgmr.msra.gmra.mrb[168].mxu0 %v3324_v8  ;;  %14323 = vmatpush3.bf16.msra.mxu1 %v15540_v43  ;;  %v15869_v33 = vpop.eup %15868  ;;  %v3326_v43 = vpack.c.bf16 %v15865_v21, %v15865_v21  ;;  %v15579_v8 = vld [vmem:[%s19639_s3 + $0x15d0] sm:$0xff]  }
 0x350   :  { %10732 = vmatprep.mubr.bf16.mxu1 %v3327_v15  ;;  %14345 = vmatpush3.bf16.msra.mxu0 %v15541_v51  ;;  %v15871_v42 = vpop.eup %15870  ;;  %v3328_v51 = vpack.c.bf16 %v15867_v53, %v15867_v53  ;;  %v15581_v15 = vld [vmem:[%s19639_s3 + $0x1590] sm:$0xff]   ;;  %v15608_v53 = vld [vmem:[%s19639_s3 + $0x1658] sm:$0xff]  }
 0x351   :  { %10772 = vmatprep.mubr.bf16.mxu0 %v3329_v54  ;;  %14324 = vmatprep.subr.bf16.mxu1 %v15542_v46  ;;  %v3331_v46 = vpack.c.bf16 %v15869_v33, %v15869_v33  ;;  %v15583_v54 = vld [vmem:[%s19639_s3 + $0x15d8] sm:$0xff]   ;;  %v15606_v21 = vld [vmem:[%s19639_s3 + $0x1650] sm:$0xff]   ;;  %v15610_v33 = vld [vmem:[%s19639_s3 + $0x1660] sm:$0xff]  }
 0x352   :  { %14346 = vmatprep.subr.bf16.mxu0 %v15543_v55  ;;  %v3333_v55 = vpack.c.bf16 %v15871_v42, %v15871_v42 }
 0x353   :  { %14325 = vmatpush3.bf16.msra.mxu1 %v15544_v35  ;;  %v15580_v35 = vld [vmem:[%s19639_s3 + $0x1510] sm:$0xff]  }
 0x354   :  { %14347 = vmatpush3.bf16.msra.mxu0 %v15545_v0  ;;  %14326 = vmatprep.subr.bf16.mxu1 %v15546_v48  ;;  %v15582_v0 = vld [vmem:[%s19639_s3 + $0x1558] sm:$0xff]  }
 0x355   :  { %14348 = vmatprep.subr.bf16.mxu0 %v15547_v61  ;;  %v15584_v48 = vld [vmem:[%s19639_s3 + $0x1518] sm:$0xff]  }
 0x356   :  { %v15585_v61 = vld [vmem:[%s19639_s3 + $0x1598] sm:$0xff]  }
 0x357   :  { %14327 = vmatpush3.bf16.msra.mxu1 %v15548_v37  ;;  %v15586_v37 = vld [vmem:[%s19639_s3 + $0x1560] sm:$0xff]  }
 0x358   :  { %14349 = vmatpush3.bf16.msra.mxu0 %v15549_v2  ;;  %14328 = vmatprep.subr.bf16.mxu1 %v15550_v62  ;;  %v15587_v2 = vld [vmem:[%s19639_s3 + $0x15e0] sm:$0xff]  }
 0x359   :  { %14350 = vmatprep.subr.bf16.mxu0 %v15551_v4  ;;  %v15588_v62 = vld [vmem:[%s19639_s3 + $0x1520] sm:$0xff]  }
 0x35a   :  { %v15589_v4 = vld [vmem:[%s19639_s3 + $0x15a0] sm:$0xff]  }
 0x35b   :  { %14329 = vmatpush3.bf16.msra.mxu1 %v15552_v56  ;;  %v15590_v56 = vld [vmem:[%s19639_s3 + $0x1568] sm:$0xff]  }
 0x35c   :  { %14351 = vmatpush3.bf16.msra.mxu0 %v15553_v28  ;;  %14330 = vmatprep.subr.bf16.mxu1 %v15554_v11  ;;  %v15591_v28 = vld [vmem:[%s19639_s3 + $0x15e8] sm:$0xff]  }
 0x35d   :  { %14352 = vmatprep.subr.bf16.mxu0 %v15555_v31  ;;  %v15592_v11 = vld [vmem:[%s19639_s3 + $0x1528] sm:$0xff]  }
 0x35e   :  { %v15593_v31 = vld [vmem:[%s19639_s3 + $0x15a8] sm:$0xff]  }
 0x35f   :  { %14331 = vmatpush3.bf16.msra.mxu1 %v15556_v17  ;;  %v15594_v17 = vld [vmem:[%s19639_s3 + $0x1570] sm:$0xff]  }
 0x360   :  { %14353 = vmatpush3.bf16.msra.mxu0 %v15557_v41  ;;  %14332 = vmatprep.subr.bf16.mxu1 %v15558_v29  ;;  %v19677_v41 = vld [vmem:[#allocation16_spill] sm:$0xff]  ;;  %v15595_v29 = vld [vmem:[%s19639_s3 + $0x15f0] sm:$0xff]  }
 0x361   :  { %v14030_v50 = vpop.f32.mrb[140].mxu1  ;;  %14354 = vmatprep.subr.bf16.mxu0 %v15559_v9  ;;  %15872 = vtanh.f32 %v19677_v41  ;;  %v19678_v9 = vld [vmem:[#allocation17_spill] sm:$0xff] }
 0x362   :  { %v14052_v32 = vpop.f32.mrb[144].mxu0  ;;  %v14031_v34 = vpop.f32.mrb[141].mxu1  ;;  %15874 = vtanh.f32 %v19678_v9 }
 0x363   :  { %v14032_v45 = vadd.f32 %v14031_v34, %v14030_v50  ;;  %v14053_v63 = vpop.f32.mrb[145].mxu0  ;;  %v14033_v36 = vpop.f32.mrb[142].mxu1  ;;  %14333 = vmatpush3.bf16.msra.mxu1 %v15560_v40  ;;  %15876 = vtanh.f32 %v17552_v1  ;;  %v15599_v1 = vld [vmem:[%s19639_s3 + $0x15f8] sm:$0xff]  }
 0x364   :  { %v14054_v38 = vadd.f32 %v14053_v63, %v14052_v32  ;;  %v14055_v14 = vpop.f32.mrb[146].mxu0  ;;  %14355 = vmatpush3.bf16.msra.mxu0 %v15561_v22  ;;  %v14034_v47 = vpop.f32.mrb[143].mxu1  ;;  %14334 = vmatprep.subr.bf16.mxu1 %v15562_v24  ;;  %v15596_v22 = vld [vmem:[%s19639_s3 + $0x1530] sm:$0xff]   ;;  %v15600_v63 = vld [vmem:[%s19639_s3 + $0x1538] sm:$0xff]  }
 0x365   :  { %v10175_v44 = vadd.f32 %v14032_v45, %v18972_v6  ;;  %v14056_v13 = vpop.f32.mrb[147].mxu0  ;;  %14356 = vmatprep.subr.bf16.mxu0 %v15563_v20  ;;  %v15573_v6 = vld [vmem:[%s19639_s3 + $0x1580] sm:$0xff]   ;;  %v15598_v20 = vld [vmem:[%s19639_s3 + $0x1578] sm:$0xff]  }
 0x366   :  { %v15601_v36 = vld [vmem:[%s19639_s3 + $0x15b8] sm:$0xff]   ;;  %v15603_v47 = vld [vmem:[%s19639_s3 + $0x1600] sm:$0xff]   ;;  %v15604_v13 = vld [vmem:[%s19639_s3 + $0x1648] sm:$0xff]  }
 0x367   :  { %v19078_v60 = vadd.f32 %v14054_v38, %v10175_v44  ;;  %14335 = vmatpush3.bf16.msra.mxu1 %v15564_v27 }
 0x368   :  { %14357 = vmatpush3.bf16.msra.mxu0 %v15565_v49  ;;  %14336 = vmatprep.subr.bf16.mxu1 %v15566_v57 }
 0x369   :  { %14358 = vmatprep.subr.bf16.mxu0 %v15567_v19  ;;  %v15602_v19 = vld [vmem:[%s19639_s3 + $0x1640] sm:$0xff]  }
 0x36b   :  { %14337 = vmatpush3.bf16.msra.mxu1 %v15568_v10  ;;  %v15873_v14 = vpop.eup %15872 }
 0x36c   :  { %14359 = vmatpush3.bf16.msra.mxu0 %v15569_v5  ;;  %14366 = vmatprep.subr.bf16.mxu1 %v15570_v58  ;;  %v15875_v44 = vpop.eup %15874  ;;  %v3330_v5 = vpack.c.bf16 %v15873_v14, %v15873_v14 }
 0x36d   :  { %14388 = vmatprep.subr.bf16.mxu0 %v15571_v25  ;;  %v15877_v10 = vpop.eup %15876  ;;  %v3332_v58 = vpack.c.bf16 %v15875_v44, %v15875_v44 }
 0x36e   :  { %10733 = vmatmul.mubr.bf16.vlgmr.msra.gmra.mrb[168].mxu1 %v3326_v43  ;;  %v3335_v25 = vpack.c.bf16 %v15877_v10, %v15877_v10 }
 0x36f   :  { %10773 = vmatmul.mubr.bf16.vlgmr.msra.gmra.mrb[172].mxu0 %v3328_v51  ;;  %14367 = vmatpush3.bf16.msra.mxu1 %v15572_v7  ;;  %v15607_v7 = vld [vmem:[%s19639_s3 + $0x1610] sm:$0xff]  }
 0x370   :  { %10812 = vmatprep.mubr.bf16.mxu1 %v3331_v46  ;;  %14389 = vmatpush3.bf16.msra.mxu0 %v15573_v6  ;;  %v15609_v6 = vld [vmem:[%s19639_s3 + $0x1618] sm:$0xff]  }
 0x371   :  { %10852 = vmatprep.mubr.bf16.mxu0 %v3333_v55  ;;  %14368 = vmatprep.subr.bf16.mxu1 %v15574_v16 }
 0x372   :  { %14390 = vmatprep.subr.bf16.mxu0 %v15575_v3 }
 0x373   :  { %14369 = vmatpush3.bf16.msra.mxu1 %v15576_v23 }
 0x374   :  { %14391 = vmatpush3.bf16.msra.mxu0 %v15577_v52  ;;  %14370 = vmatprep.subr.bf16.mxu1 %v15578_v18 }
 0x375   :  { %14392 = vmatprep.subr.bf16.mxu0 %v15579_v8 }
 0x377   :  { %14371 = vmatpush3.bf16.msra.mxu1 %v15580_v35 }
 0x378   :  { %14393 = vmatpush3.bf16.msra.mxu0 %v15581_v15  ;;  %14372 = vmatprep.subr.bf16.mxu1 %v15582_v0 }
 0x379   :  { %14394 = vmatprep.subr.bf16.mxu0 %v15583_v54 }
 0x37b   :  { %14373 = vmatpush3.bf16.msra.mxu1 %v15584_v48 }
 0x37c   :  { %14395 = vmatpush3.bf16.msra.mxu0 %v15585_v61  ;;  %14374 = vmatprep.subr.bf16.mxu1 %v15586_v37 }
 0x37d   :  { %14396 = vmatprep.subr.bf16.mxu0 %v15587_v2 }
 0x37f   :  { %14375 = vmatpush3.bf16.msra.mxu1 %v15588_v62 }
 0x380   :  { %14397 = vmatpush3.bf16.msra.mxu0 %v15589_v4  ;;  %14376 = vmatprep.subr.bf16.mxu1 %v15590_v56 }
 0x381   :  { %v14074_v40 = vpop.f32.mrb[144].mxu1  ;;  %14398 = vmatprep.subr.bf16.mxu0 %v15591_v28 }
 0x382   :  { %v14096_v39 = vpop.f32.mrb[148].mxu0  ;;  %v14075_v24 = vpop.f32.mrb[145].mxu1 }
 0x383   :  { %v14076_v12 = vadd.f32 %v14075_v24, %v14074_v40  ;;  %v14097_v50 = vpop.f32.mrb[149].mxu0  ;;  %v14077_v27 = vpop.f32.mrb[146].mxu1  ;;  %14377 = vmatpush3.bf16.msra.mxu1 %v15592_v11 }
 0x384   :  { %v14098_v32 = vadd.f32 %v14097_v50, %v14096_v39  ;;  %v14099_v34 = vpop.f32.mrb[150].mxu0  ;;  %14399 = vmatpush3.bf16.msra.mxu0 %v15593_v31  ;;  %v14078_v49 = vpop.f32.mrb[147].mxu1  ;;  %14378 = vmatprep.subr.bf16.mxu1 %v15594_v17 }
 0x385   :  { %v10255_v57 = vadd.f32 %v14076_v12, %v19078_v60  ;;  %v14100_v45 = vpop.f32.mrb[151].mxu0  ;;  %14400 = vmatprep.subr.bf16.mxu0 %v15595_v29  ;;  %v15605_v60 = vld [vmem:[%s19639_s3 + $0x1608] sm:$0xff]  }
 0x387   :  { %v10295_v38 = vadd.f32 %v14098_v32, %v10255_v57  ;;  %14379 = vmatpush3.bf16.msra.mxu1 %v15596_v22 }
 0x388   :  { %14401 = vmatpush3.bf16.msra.mxu0 %v15597_v26  ;;  %14380 = vmatprep.subr.bf16.mxu1 %v15598_v20 }
 0x389   :  { %14402 = vmatprep.subr.bf16.mxu0 %v15599_v1 }
 0x38b   :  { %14381 = vmatpush3.bf16.msra.mxu1 %v15600_v63 }
 0x38c   :  { %14403 = vmatpush3.bf16.msra.mxu0 %v15601_v36  ;;  %14410 = vmatprep.subr.bf16.mxu1 %v15602_v19 }
 0x38e   :  { %10813 = vmatmul.mubr.bf16.vlgmr.msra.gmra.mrb[172].mxu1 %v3330_v5 }
 0x38f   :  { %10853 = vmatmul.mubr.bf16.vlgmr.msra.gmra.mrb[176].mxu0 %v3332_v58  ;;  %14411 = vmatpush3.bf16.msra.mxu1 %v15603_v47 }
 0x390   :  { %10892 = vmatprep.mubr.bf16.mxu1 %v3335_v25  ;;  %14412 = vmatprep.subr.bf16.mxu1 %v15604_v13 }
 0x393   :  { %14413 = vmatpush3.bf16.msra.mxu1 %v15605_v60 }
 0x394   :  { %14414 = vmatprep.subr.bf16.mxu1 %v15606_v21 }
 0x397   :  { %14415 = vmatpush3.bf16.msra.mxu1 %v15607_v7 }
 0x398   :  { %14416 = vmatprep.subr.bf16.mxu1 %v15608_v53 }
 0x399   :  { %16 = vsyncpa [#allocation3], 0  ;;  %v15611_v16 = vld [vmem:[%s19639_s3 + $0x1620] sm:$0xff]   ;;  %v15612_v42 = vld [vmem:[%s19639_s3 + $0x1668] sm:$0xff]   ;;  %15878 = vtanh.f32 %v17547_v59  ;;  %v19679_v4 = vmov 0   ;;  %v15931_v36 = vmov 0.0|0.0  }
 0x39a   :  { %v15613_v43 = vld [vmem:[%s19639_s3 + $0x1628] sm:$0xff]   ;;  %v15614_v3 = vld [vmem:[%s19639_s3 + $0x1670] sm:$0xff]   ;;  %v15616_v0 = vld [vmem:[%s19639_s3 + $0x1678] sm:$0xff]   ;;  %14600 = vmatprep.subr.bf16.mxu0 %v15931_v36  ;;  %v15932_v19 = vmov 1983009808   ;;  %vm11037_vm3 = vcmask 1040384  }
 0x39b   :  { %14417 = vmatpush3.bf16.msra.mxu1 %v15609_v6  ;;  %v15615_v59 = vld [vmem:[%s19639_s3 + $0x1630] sm:$0xff]   ;;  %v15617_v37 = vld [vmem:[%s19639_s3 + $0x1638] sm:$0xff]   ;;  %v10901_v47 = vld [vmem:[%s19640_s4] sm:$0xff]  ;;  %vm15933_vm4 = vmmov 0   ;;  %vm11038_vm5 = vcmask 1041408   ;;  %vm11033_vm6 = vcmask 23552  }
 0x39c   :  { %14418 = vmatprep.subr.bf16.mxu1 %v15610_v33  ;;  %v10902_v44 = vld [vmem:[%s19640_s4 + $0x8] sm:$0xff]  ;;  %vm10909_vm7 = vcmask 261120   ;;  %vm12146_vm8 = vcmask 130048   ;;  %vm12380_vm9 = vcmask 58368  }
 0x39d   :  { %v14601_v58 = vpack.c.bf16 %v10902_v44, %v10901_v47  ;;  %v15624_v47 = vld [vmem:[%s19642_s6 + $0x50] sm:$0xff]  }
 0x39e   :  { %v15626_v44 = vld [vmem:[%s19642_s6 + $0x10] sm:$0xff]  }
 0x39f   :  { %14419 = vmatpush3.bf16.msra.mxu1 %v15611_v16  ;;  %14602 = vmatpush3.bf16.msra.mxu0 %v14601_v58  ;;  %v10985_v16 = vld [vmem:[%s19641_s5] sm:$0xff] }
 0x3a0   :  { %14420 = vmatprep.subr.bf16.mxu1 %v15612_v42  ;;  %14603 = vmatprep.subr.bf16.mxu0 %v15931_v36 }
 0x3a1   :  { %v14118_v51 = vpop.f32.mrb[148].mxu1 }
 0x3a2   :  { %v14140_v23 = vpop.f32.mrb[152].mxu0  ;;  %v14119_v46 = vpop.f32.mrb[149].mxu1 }
 0x3a3   :  { %v14120_v52 = vadd.f32 %v14119_v46, %v14118_v51  ;;  %v14141_v18 = vpop.f32.mrb[153].mxu0  ;;  %v14121_v55 = vpop.f32.mrb[150].mxu1  ;;  %14421 = vmatpush3.bf16.msra.mxu1 %v15613_v43  ;;  %v10904_v51 = vld [vmem:[%s19640_s4 + $0x18] sm:$0xff] }
 0x3a4   :  { %v14142_v8 = vadd.f32 %v14141_v18, %v14140_v23  ;;  %v14143_v35 = vpop.f32.mrb[154].mxu0  ;;  %v14122_v15 = vpop.f32.mrb[151].mxu1  ;;  %14422 = vmatprep.subr.bf16.mxu1 %v15614_v3  ;;  %v10903_v3 = vld [vmem:[%s19640_s4 + $0x10] sm:$0xff]  ;;  %v15934_v55 = vmov 0.0  }
 0x3a5   :  { %v10335_v54 = vadd.f32 %v14120_v52, %v10295_v38  ;;  %v14144_v48 = vpop.f32.mrb[155].mxu0  ;;  %v15879_v2 = vpop.eup %15878  ;;  %v10993_v38 = vunpack.c.l.s4 %v15932_v19  ;;  %v14604_v46 = vpack.c.bf16 %v10904_v51, %v10903_v3  ;;  %14568 = vmatprep.mubr.msk.f32.mxu0 %vm15933_vm4, %v15934_v55 }
 0x3a6   :  { %v3334_v62 = vpack.c.bf16 %v15879_v2, %v15879_v2 }
 0x3a7   :  { %v10375_v61 = vadd.f32 %v14142_v8, %v10335_v54  ;;  %14423 = vmatpush3.bf16.msra.mxu1 %v15615_v59  ;;  %v10994_v13 = vunpack.c.0.s8 %v10993_v38  ;;  %14605 = vmatpush3.bf16.msra.mxu0 %v14604_v46  ;;  %v19680_v59 = vmov 65535   ;;  %v10991_v54 = vcombine.high %v10985_v16, %v10985_v16  ;;  %v15622_v38 = vld [vmem:[%s19642_s6 + $0x48] sm:$0xff]  }
 0x3a8   :  { %14424 = vmatprep.subr.bf16.mxu1 %v15616_v0  ;;  %v11039_v8 = vsel %vm11037_vm3, 4294967295, %v19680_v59 }
 0x3a9   :  { %v10997_v7 = vsub.s32 %v10994_v13, %v17687_v30  ;;  %v19252_v35 = vsel %vm11038_vm5, %v11039_v8, 0  ;;  %v15628_v13 = vld [vmem:[%s19642_s6 + $0x58] sm:$0xff]  }
 0x3ab   :  { %14425 = vmatpush3.bf16.msra.mxu1 %v15617_v37  ;;  %v19245_v23 = vrot.slane %v10985_v16, %v10997_v7  ;;  %v19257_v48 = vrot.slane %v10991_v54, %v10997_v7 }
 0x3ad   :  { %v11006_v18 = vcombine.high %v19245_v23, %v19245_v23  ;;  %v11042_v0 = vand.u32 %v19252_v35, %v19245_v23  ;;  %v11048_v37 = vand.u32 %v19252_v35, %v19257_v48 }
 0x3ae   :  { %10893 = vmatmul.mubr.bf16.vlgmr.msra.gmra.mrb[176].mxu1 %v3334_v62  ;;  %v10986_v62 = vld [vmem:[%s19641_s5 + $0x8] sm:$0xff] }
 0x3af   :  { %11226 = vmatprep.mubr.bf16.mxu1 %v19679_v4  ;;  %v11045_v15 = vand.u32 %v19252_v35, %v11006_v18 }
 0x3b1   :  { %11071 = vmatprep.subr.bf16.mxu0 %v11045_v15 }
 0x3c1   :  { %v14162_v56 = vpop.f32.mrb[152].mxu1 }
 0x3c2   :  { %v14184_v28 = vpop.f32.mrb[156].mxu0  ;;  %v14163_v11 = vpop.f32.mrb[153].mxu1 }
 0x3c3   :  { %v14164_v31 = vadd.f32 %v14163_v11, %v14162_v56  ;;  %v14185_v17 = vpop.f32.mrb[157].mxu0  ;;  %v14165_v41 = vpop.f32.mrb[154].mxu1  ;;  %v19269_v56 = vrot.slane %v10986_v62, %v10997_v7 }
 0x3c4   :  { %v14186_v29 = vadd.f32 %v14185_v17, %v14184_v28  ;;  %v14187_v9 = vpop.f32.mrb[158].mxu0  ;;  %v14166_v40 = vpop.f32.mrb[155].mxu1  ;;  %v11008_v17 = vcombine.high %v10986_v62, %v10986_v62 }
 0x3c5   :  { %v10415_v22 = vadd.f32 %v14164_v31, %v10375_v61  ;;  %v14188_v39 = vpop.f32.mrb[159].mxu0  ;;  %v11007_v61 = vcombine.high %v19257_v48, %v19257_v48  ;;  %v11023_v28 = vcombine.high %v19269_v56, %v19269_v56  ;;  %v11054_v11 = vand.u32 %v19252_v35, %v19269_v56  ;;  %v15629_v56 = vld [vmem:[%s19642_s6 + $0xc8] sm:$0xff]  }
 0x3c6   :  { %v11022_v41 = vrot.slane %v11008_v17, %v10997_v7 }
 0x3c7   :  { %v10455_v24 = vadd.f32 %v14186_v29, %v10415_v22  ;;  %v19264_v2 = vand.u32 %v19252_v35, %v11007_v61  ;;  %v19276_v31 = vand.u32 %v19252_v35, %v11023_v28 }
 0x3c8   :  { %v11024_v9 = vcombine.high %v11022_v41, %v11022_v41  ;;  %v11060_v39 = vand.u32 %v19252_v35, %v11022_v41 }
 0x3e1   :  { %v14206_v26 = vpop.f32.mrb[156].mxu1 }
 0x3e2   :  { %v14228_v20 = vpop.f32.mrb[160].mxu0  ;;  %v14207_v12 = vpop.f32.mrb[157].mxu1 }
 0x3e3   :  { %v14208_v50 = vadd.f32 %v14207_v12, %v14206_v26  ;;  %v14229_v27 = vpop.f32.mrb[161].mxu0  ;;  %v14209_v1 = vpop.f32.mrb[158].mxu1  ;;  %v11063_v12 = vand.u32 %v19252_v35, %v11024_v9 }
 0x3e4   :  { %v14230_v32 = vadd.f32 %v14229_v27, %v14228_v20  ;;  %v14231_v34 = vpop.f32.mrb[162].mxu0  ;;  %v14210_v49 = vpop.f32.mrb[159].mxu1 }
 0x3e5   :  { %v10495_v57 = vadd.f32 %v14208_v50, %v10455_v24  ;;  %v14232_v45 = vpop.f32.mrb[163].mxu0  ;;  %11194 = vmatprep.subr.bf16.mxu1 %v11063_v12  ;;  %v15637_v12 = vld [vmem:[%s19642_s6 + $0xd8] sm:$0xff]  }
 0x3e6   :  { %11195 = vmatpush1.bf16.msra.mxu1 %v11060_v39  ;;  %v15621_v45 = vld [vmem:[%s19642_s6] sm:$0xff]   ;;  %v13353_v39 = vld.sshfl [vmem:[%s19641_s5 + $0x10] sm:$0x33 pattern:$0x76325410] }
 0x3e7   :  { %v10535_v63 = vadd.f32 %v14230_v32, %v10495_v57  ;;  %v10983_v32 = vld [vmem:[%s19637_s1] sm:$0x3]  ;;  %v11032_v23 = vcombine.high %v13353_v39, %v13353_v39  ;;  %v11066_v48 = vand.u32 %v13353_v39, %v19252_v35 }
 0x3e8   :  { %v15620_v57 = vld [vmem:[%s19642_s6 + $0x40] sm:$0xff]   ;;  %v19289_v19 = vpack.c.bf16 %v10983_v32, %v10983_v32 }
 0x3e9   :  { %14437 = vmatprep.subr.bf16.mxu1 %v15620_v57  ;;  %v15641_v32 = vld [vmem:[%s19642_s6 + $0xe0] sm:$0xff]   ;;  %v15644_v57 = vld [vmem:[%s19642_s6 + $0x78] sm:$0xff]  }
 0x3ea   :  { %13357 = vmatmul.mubr.msk.bf16.vlgmr.msra.gmra.mrb[180].mxu1 %vm11033_vm6, %v19289_v19 }
 0x3eb   :  { %14438 = vmatpush3.bf16.msra.mxu1 %v15621_v45  ;;  %v15645_v45 = vld [vmem:[%s19642_s6 + $0xe8] sm:$0xff]  }
 0x3ec   :  { %14439 = vmatprep.subr.bf16.mxu1 %v15622_v38  ;;  %v15648_v38 = vld [vmem:[%s19642_s6 + $0xf0] sm:$0xff]  }
 0x401   :  { %v14250_v14 = vpop.f32.mrb[160].mxu1 }
 0x402   :  { %v14272_v10 = vpop.f32.mrb[164].mxu0  ;;  %v14251_v5 = vpop.f32.mrb[161].mxu1 }
 0x403   :  { %v14252_v60 = vadd.f32 %v14251_v5, %v14250_v14  ;;  %v14273_v25 = vpop.f32.mrb[165].mxu0  ;;  %v14253_v21 = vpop.f32.mrb[162].mxu1  ;;  %v15623_v14 = vld [vmem:[%s19642_s6 + $0x8] sm:$0xff]  }
 0x404   :  { %v14274_v53 = vadd.f32 %v14273_v25, %v14272_v10  ;;  %v14275_v6 = vpop.f32.mrb[166].mxu0  ;;  %v14254_v33 = vpop.f32.mrb[163].mxu1  ;;  %14440 = vmatpush3.bf16.msra.mxu1 %v15623_v14  ;;  %v15649_v14 = vld [vmem:[%s19642_s6 + $0x140] sm:$0xff]  }
 0x405   :  { %v10575_v42 = vadd.f32 %v14252_v60, %v10535_v63  ;;  %v14276_v43 = vpop.f32.mrb[167].mxu0  ;;  %14441 = vmatprep.subr.bf16.mxu1 %v15624_v47  ;;  %v15650_v47 = vld [vmem:[%s19642_s6 + $0xb0] sm:$0xff]  }
 0x407   :  { %v10615_v52 = vadd.f32 %v14274_v53, %v10575_v42 }
 0x408   :  { %14442 = vmatpush3.bf16.msra.mxu1 %v15626_v44  ;;  %v15652_v44 = vld [vmem:[%s19642_s6 + $0xf8] sm:$0xff]  }
 0x409   :  { %14443 = vmatprep.subr.bf16.mxu1 %v15628_v13  ;;  %v15654_v13 = vld [vmem:[%s19642_s6 + $0xb8] sm:$0xff]  }
 0x421   :  { %v14294_v29 = vpop.f32.mrb[164].mxu1 }
 0x422   :  { %v14316_v40 = vpop.f32.mrb[168].mxu0  ;;  %v14295_v22 = vpop.f32.mrb[165].mxu1 }
 0x423   :  { %v14296_v24 = vadd.f32 %v14295_v22, %v14294_v29  ;;  %v14317_v26 = vpop.f32.mrb[169].mxu0  ;;  %v14297_v20 = vpop.f32.mrb[166].mxu1 }
 0x424   :  { %v14318_v50 = vadd.f32 %v14317_v26, %v14316_v40  ;;  %v14319_v27 = vpop.f32.mrb[170].mxu0  ;;  %v14298_v1 = vpop.f32.mrb[167].mxu1  ;;  %v15635_v26 = vld [vmem:[%s19642_s6 + $0x90] sm:$0xff]   ;;  %v15636_v20 = vld [vmem:[%s19642_s6 + $0x68] sm:$0xff]  }
 0x425   :  { %v10655_v34 = vadd.f32 %v14296_v24, %v10615_v52  ;;  %v14320_v49 = vpop.f32.mrb[171].mxu0  ;;  %v15634_v24 = vld [vmem:[%s19642_s6 + $0x20] sm:$0xff]   ;;  %v15639_v27 = vld [vmem:[%s19642_s6 + $0x98] sm:$0xff]   ;;  %v15640_v1 = vld [vmem:[%s19642_s6 + $0x70] sm:$0xff]  }
 0x426   :  { %v15643_v49 = vld [vmem:[%s19642_s6 + $0xa0] sm:$0xff]  }
 0x427   :  { %v10695_v63 = vadd.f32 %v14318_v50, %v10655_v34  ;;  %v15638_v50 = vld [vmem:[%s19642_s6 + $0x28] sm:$0xff]   ;;  %v15642_v34 = vld [vmem:[%s19642_s6 + $0x30] sm:$0xff]  }
 0x441   :  { %v14338_v10 = vpop.f32.mrb[168].mxu1 }
 0x442   :  { %v14360_v5 = vpop.f32.mrb[172].mxu0  ;;  %v14339_v58 = vpop.f32.mrb[169].mxu1 }
 0x443   :  { %v14340_v60 = vadd.f32 %v14339_v58, %v14338_v10  ;;  %v14361_v25 = vpop.f32.mrb[173].mxu0  ;;  %v14341_v21 = vpop.f32.mrb[170].mxu1  ;;  %v15657_v10 = vld [vmem:[%s19642_s6 + $0x1c0] sm:$0xff]  }
 0x444   :  { %v14362_v7 = vadd.f32 %v14361_v25, %v14360_v5  ;;  %v14363_v53 = vpop.f32.mrb[174].mxu0  ;;  %v14342_v6 = vpop.f32.mrb[171].mxu1 }
 0x445   :  { %v10735_v33 = vadd.f32 %v14340_v60, %v10695_v63  ;;  %v14364_v16 = vpop.f32.mrb[175].mxu0  ;;  %v15646_v63 = vld [vmem:[%s19642_s6 + $0x38] sm:$0xff]  }
 0x447   :  { %v10775_v42 = vadd.f32 %v14362_v7, %v10735_v33 }
 0x461   :  { %v14382_v43 = vpop.f32.mrb[172].mxu1 }
 0x462   :  { %v14404_v3 = vpop.f32.mrb[176].mxu0  ;;  %v14383_v51 = vpop.f32.mrb[173].mxu1 }
 0x463   :  { %v14384_v46 = vadd.f32 %v14383_v51, %v14382_v43  ;;  %v14405_v52 = vpop.f32.mrb[177].mxu0  ;;  %v14385_v18 = vpop.f32.mrb[174].mxu1 }
 0x464   :  { %v14406_v59 = vadd.f32 %v14405_v52, %v14404_v3  ;;  %v14407_v8 = vpop.f32.mrb[178].mxu0  ;;  %v14386_v15 = vpop.f32.mrb[175].mxu1 }
 0x465   :  { %v10815_v54 = vadd.f32 %v14384_v46, %v10775_v42  ;;  %v14408_v61 = vpop.f32.mrb[179].mxu0  ;;  %v15653_v15 = vld [vmem:[%s19642_s6 + $0x148] sm:$0xff]  }
 0x466   :  { %v15655_v61 = vld [vmem:[%s19642_s6 + $0x108] sm:$0xff]  }
 0x467   :  { %v10855_v62 = vadd.f32 %v14406_v59, %v10815_v54  ;;  %v15651_v59 = vld [vmem:[%s19642_s6 + $0x100] sm:$0xff]  }
 0x481   :  { %v14426_v28 = vpop.f32.mrb[176].mxu1 }
 0x482   :  { %v14427_v17 = vpop.f32.mrb[177].mxu1 }
 0x483   :  { %v14428_v41 = vadd.f32 %v14427_v17, %v14426_v28  ;;  %v14429_v29 = vpop.f32.mrb[178].mxu1  ;;  %v15656_v17 = vld [vmem:[%s19642_s6 + $0x150] sm:$0xff]  }
 0x484   :  { %v14430_v9 = vpop.f32.mrb[179].mxu1 }
 0x485   :  { %v10895_v40 = vadd.f32 %v14428_v41, %v10855_v62 }
 0x487   :  { %v10900_v22 = vmax.f32 %v10895_v40, 0.0 }
 0x489   :  { %14569 = vmatmul.mubr.msk.f32.vlgmr.msra.gmra.mrb[180].mxu0 %vm10909_vm7, %v10900_v22 }
 0x48a   :  { %11072 = vmatpush1.bf16.msra.mxu0 %v11042_v0  ;;  %11103 = vmatprep.mubr.bf16.mxu0 %v19679_v4  ;;  %v11069_v0 = vand.u32 %v19252_v35, %v11032_v23  ;;  %v15630_v35 = vld [vmem:[%s19642_s6 + $0x18] sm:$0xff]   ;;  %v15658_v23 = vld [vmem:[%s19642_s6 + $0x110] sm:$0xff]  }
 0x48b   :  { %11112 = vmatprep.subr.bf16.mxu0 %v19264_v2  ;;  %v15627_v2 = vld [vmem:[%s19642_s6 + $0x80] sm:$0xff]   ;;  %14444 = vmatpush3.bf16.msra.mxu1 %v15630_v35  ;;  %v15662_v35 = vld [vmem:[%s19642_s6 + $0x118] sm:$0xff]  }
 0x48d   :  { %13354 = vmatmul.mubr.msk.bf16.vlgmr.msra.gmra.mrb[184].mxu0 %vm11033_vm6, %v19289_v19 }
 0x48e   :  { %11113 = vmatpush1.bf16.msra.mxu0 %v11048_v37  ;;  %11144 = vmatprep.mubr.bf16.mxu0 %v19679_v4  ;;  %v15625_v37 = vld [vmem:[%s19642_s6 + $0xc0] sm:$0xff]  }
 0x48f   :  { %11153 = vmatprep.subr.bf16.mxu0 %v19276_v31  ;;  %v15633_v31 = vld [vmem:[%s19642_s6 + $0xd0] sm:$0xff]  }
 0x495   :  { %13355 = vmatmul.mubr.msk.bf16.vlgmr.msra.gmra.mrb[188].mxu0 %vm11033_vm6, %v19289_v19 }
 0x496   :  { %11154 = vmatpush1.bf16.msra.mxu0 %v11054_v11  ;;  %11185 = vmatprep.mubr.bf16.mxu0 %v19679_v4  ;;  %v15632_v11 = vld [vmem:[%s19642_s6 + $0x60] sm:$0xff]  }
 0x497   :  { %11235 = vmatprep.subr.bf16.mxu0 %v11069_v0  ;;  %14445 = vmatprep.subr.bf16.mxu1 %v15632_v11  ;;  %v15659_v0 = vld [vmem:[%s19642_s6 + $0x180] sm:$0xff]  }
 0x498   :  { %14446 = vmatpush3.bf16.msra.mxu1 %v15634_v24  ;;  %v15665_v24 = vld [vmem:[%s19642_s6 + $0x1d0] sm:$0xff]  }
 0x499   :  { %14447 = vmatprep.subr.bf16.mxu1 %v15636_v20 }
 0x49c   :  { %14448 = vmatpush3.bf16.msra.mxu1 %v15638_v50 }
 0x49d   :  { %13356 = vmatmul.mubr.msk.bf16.vlgmr.msra.gmra.mrb[192].mxu0 %vm11033_vm6, %v19289_v19  ;;  %14449 = vmatprep.subr.bf16.mxu1 %v15640_v1  ;;  %v15667_v1 = vld [vmem:[%s19642_s6 + $0x190] sm:$0xff]  }
 0x49e   :  { %11236 = vmatpush1.bf16.msra.mxu0 %v11066_v48  ;;  %11267 = vmatprep.mubr.bf16.mxu0 %v19679_v4  ;;  %v15631_v4 = vld [vmem:[%s19642_s6 + $0x88] sm:$0xff]   ;;  %v15660_v48 = vld [vmem:[%s19642_s6 + $0x158] sm:$0xff]  }
 0x49f   :  { %14459 = vmatprep.subr.bf16.mxu0 %v15625_v37  ;;  %v15661_v37 = vld [vmem:[%s19642_s6 + $0x1c8] sm:$0xff]  }
 0x4a0   :  { %14450 = vmatpush3.bf16.msra.mxu1 %v15642_v34  ;;  %v15669_v34 = vld [vmem:[%s19642_s6 + $0x1d8] sm:$0xff]  }
 0x4a1   :  { %14451 = vmatprep.subr.bf16.mxu1 %v15644_v57  ;;  %v15671_v57 = vld [vmem:[%s19642_s6 + $0x198] sm:$0xff]  }
 0x4a4   :  { %14452 = vmatpush3.bf16.msra.mxu1 %v15646_v63  ;;  %v15673_v63 = vld [vmem:[%s19642_s6 + $0x1e0] sm:$0xff]  }
 0x4a5   :  { %13358 = vmatmul.mubr.msk.bf16.vlgmr.msra.gmra.mrb[196].mxu0 %vm11033_vm6, %v19289_v19  ;;  %v15647_v19 = vld [vmem:[%s19642_s6 + $0xa8] sm:$0xff]   ;;  %14481 = vmatprep.subr.bf16.mxu1 %v15649_v14  ;;  %v15676_v14 = vld [vmem:[%s19642_s6 + $0x178] sm:$0xff]  }
 0x4a6   :  { %14460 = vmatpush3.bf16.msra.mxu0 %v15627_v2 }
 0x4a7   :  { %14461 = vmatprep.subr.bf16.mxu0 %v15629_v56 }
 0x4aa   :  { %14462 = vmatpush3.bf16.msra.mxu0 %v15631_v4  ;;  %v15663_v4 = vld [vmem:[%s19642_s6 + $0x188] sm:$0xff]  }
 0x4ab   :  { %14463 = vmatprep.subr.bf16.mxu0 %v15633_v31  ;;  %v15664_v31 = vld [vmem:[%s19642_s6 + $0x160] sm:$0xff]  }
 0x4ae   :  { %14464 = vmatpush3.bf16.msra.mxu0 %v15635_v26 }
 0x4af   :  { %14465 = vmatprep.subr.bf16.mxu0 %v15637_v12 }
 0x4b2   :  { %14466 = vmatpush3.bf16.msra.mxu0 %v15639_v27  ;;  %v15666_v27 = vld [vmem:[%s19642_s6 + $0x120] sm:$0xff]  }
 0x4b3   :  { %14467 = vmatprep.subr.bf16.mxu0 %v15641_v32  ;;  %v15668_v32 = vld [vmem:[%s19642_s6 + $0x168] sm:$0xff]  }
 0x4b6   :  { %14468 = vmatpush3.bf16.msra.mxu0 %v15643_v49  ;;  %v15670_v49 = vld [vmem:[%s19642_s6 + $0x128] sm:$0xff]  }
 0x4b7   :  { %14469 = vmatprep.subr.bf16.mxu0 %v15645_v45  ;;  %v15672_v45 = vld [vmem:[%s19642_s6 + $0x170] sm:$0xff]  }
 0x4ba   :  { %14470 = vmatpush3.bf16.msra.mxu0 %v15647_v19  ;;  %v15674_v19 = vld [vmem:[%s19642_s6 + $0x130] sm:$0xff]  }
 0x4bb   :  { %14471 = vmatprep.subr.bf16.mxu0 %v15648_v38  ;;  %v15675_v38 = vld [vmem:[%s19642_s6 + $0x1a0] sm:$0xff]  }
 0x4bd   :  { %v19418_v5 = vpop.f32.mrb[180].mxu1 }
 0x4be   :  { %14472 = vmatpush3.bf16.msra.mxu0 %v15650_v47  ;;  %v11230_v58 = vpop.f32.mrb[181].mxu1  ;;  %v15677_v47 = vld [vmem:[%s19642_s6 + $0x1e8] sm:$0xff]  }
 0x4bf   :  { %14473 = vmatprep.subr.bf16.mxu0 %v15652_v44  ;;  %v11232_v60 = vpop.f32.mrb[182].mxu1 }
 0x4c0   :  { %v11233_v25 = vpop.f32.mrb[183].mxu1 }
 0x4c2   :  { %14474 = vmatpush3.bf16.msra.mxu0 %v15654_v13  ;;  %v15678_v13 = vld [vmem:[%s19642_s6 + $0x138] sm:$0xff]  }
 0x4c3   :  { %14503 = vmatprep.subr.bf16.mxu0 %v15657_v10  ;;  %v15679_v10 = vld [vmem:[%s19642_s6 + $0x1a8] sm:$0xff]  }
 0x55c   :  { %v19420_v21 = vpop.f32.mrb[180].mxu0 }
 0x55d   :  { %v14570_v7 = vpop.f32.mrb[181].mxu0 }
 0x55e   :  { %v15682_v7 = vld [vmem:[%s19642_s6 + $0x1b0] sm:$0xff]  }
 0x560   :  { %v11105_v53 = vpop.f32.mrb[184].mxu0 }
 0x561   :  { %15880 = vtanh.f32 %v11105_v53  ;;  %v11107_v6 = vpop.f32.mrb[185].mxu0  ;;  %v15683_v53 = vld [vmem:[%s19642_s6 + $0x200] sm:$0xff]  }
 0x562   :  { %15882 = vtanh.f32 %v11107_v6  ;;  %v11109_v33 = vpop.f32.mrb[186].mxu0  ;;  %v15684_v6 = vld [vmem:[%s19642_s6 + $0x1f8] sm:$0xff]  }
 0x563   :  { %v11110_v16 = vpop.f32.mrb[187].mxu0  ;;  %15884 = vtanh.f32 %v11230_v58  ;;  %v15680_v58 = vld [vmem:[%s19642_s6 + $0x1f0] sm:$0xff]   ;;  %v15685_v33 = vld [vmem:[%s19642_s6 + $0x248] sm:$0xff]  }
 0x568   :  { %v11146_v42 = vpop.f32.mrb[188].mxu0 }
 0x569   :  { %15886 = vtanh.f32 %v11146_v42  ;;  %v11148_v43 = vpop.f32.mrb[189].mxu0 }
 0x56a   :  { %15888 = vtanh.f32 %v11148_v43  ;;  %v11150_v3 = vpop.f32.mrb[190].mxu0  ;;  %v15686_v43 = vld [vmem:[%s19642_s6 + $0x1b8] sm:$0xff]  }
 0x56b   :  { %v15881_v51 = vpop.eup %15880  ;;  %v11151_v46 = vpop.f32.mrb[191].mxu0  ;;  %v15687_v3 = vld [vmem:[%s19642_s6 + $0x208] sm:$0xff]  }
 0x56c   :  { %v15883_v52 = vpop.eup %15882  ;;  %v11286_v8 = vpack.c.bf16 %v15881_v51, %v15881_v51  ;;  %v15688_v51 = vld [vmem:[%s19642_s6 + $0x250] sm:$0xff]  }
 0x56d   :  { %v11287_v18 = vpack.c.bf16 %v15883_v52, %v15883_v52  ;;  %v15885_v28 = vpop.eup %15884  ;;  %v15689_v52 = vld [vmem:[%s19642_s6 + $0x210] sm:$0xff]  }
 0x56e   :  { %v11293_v2 = vpack.c.bf16 %v15885_v28, %v15885_v28  ;;  %v15697_v28 = vld [vmem:[%s19642_s6 + $0x230] sm:$0xff]  }
 0x56f   :  { %11972 = vmatprep.mubr.bf16.mxu1 %v11287_v18  ;;  %v15690_v18 = vld [vmem:[%s19642_s6 + $0x258] sm:$0xff]  }
 0x570   :  { %11973 = vmatmul.mubr.bf16.vlgmr.msra.gmra.mrb[184].mxu1 %v11286_v8  ;;  %v11187_v54 = vpop.f32.mrb[192].mxu0  ;;  %v15692_v8 = vld [vmem:[%s19642_s6 + $0x260] sm:$0xff]  }
 0x571   :  { %14482 = vmatpush3.bf16.msra.mxu1 %v15651_v59  ;;  %v11189_v62 = vpop.f32.mrb[193].mxu0  ;;  %v15691_v59 = vld [vmem:[%s19642_s6 + $0x218] sm:$0xff]  }
 0x572   :  { %14483 = vmatprep.subr.bf16.mxu1 %v15653_v15  ;;  %15890 = vtanh.f32 %v11189_v62  ;;  %v11191_v41 = vpop.f32.mrb[194].mxu0  ;;  %v15693_v15 = vld [vmem:[%s19642_s6 + $0x220] sm:$0xff]   ;;  %v15696_v62 = vld [vmem:[%s19642_s6 + $0x270] sm:$0xff]  }
 0x573   :  { %v15887_v29 = vpop.eup %15886  ;;  %v11192_v9 = vpop.f32.mrb[195].mxu0  ;;  %15892 = vtanh.f32 %v11187_v54  ;;  %v15694_v54 = vld [vmem:[%s19642_s6 + $0x268] sm:$0xff]   ;;  %v15699_v41 = vld [vmem:[%s19642_s6 + $0x238] sm:$0xff]  }
 0x574   :  { %v15889_v40 = vpop.eup %15888  ;;  %v11288_v22 = vpack.c.bf16 %v15887_v29, %v15887_v29 }
 0x575   :  { %v11289_v39 = vpack.c.bf16 %v15889_v40, %v15889_v40  ;;  %14484 = vmatpush3.bf16.msra.mxu1 %v15655_v61  ;;  %v15695_v61 = vld [vmem:[%s19642_s6 + $0x228] sm:$0xff]   ;;  %v12144_v40 = vld [vmem:[%s19644_s8] sm:$0xff] }
 0x576   :  { %14485 = vmatprep.subr.bf16.mxu1 %v15656_v17  ;;  %v15698_v17 = vld [vmem:[%s19642_s6 + $0x278] sm:$0xff]  }
 0x577   :  { %12012 = vmatprep.mubr.bf16.mxu0 %v11289_v39 }
 0x578   :  { %12013 = vmatmul.mubr.bf16.vlgmr.msra.gmra.mrb[200].mxu0 %v11288_v22  ;;  %v19446_v56 = vpop.f32.mrb[196].mxu0  ;;  %v12145_v22 = vld [vmem:[%s19644_s8 + $0x8] sm:$0xff] }
 0x579   :  { %14486 = vmatpush3.bf16.msra.mxu1 %v15658_v23  ;;  %14504 = vmatpush3.bf16.msra.mxu0 %v15659_v0  ;;  %v11271_v11 = vpop.f32.mrb[197].mxu0  ;;  %v14607_v39 = vpack.c.bf16 %v12145_v22, %v12144_v40 }
 0x57a   :  { %14487 = vmatprep.subr.bf16.mxu1 %v15660_v48  ;;  %14505 = vmatprep.subr.bf16.mxu0 %v15661_v37  ;;  %v11273_v26 = vpop.f32.mrb[198].mxu0  ;;  %15894 = vtanh.f32 %v11271_v11  ;;  %v11458_v48 = vsub.s32 2, %v17687_v30 }
 0x57b   :  { %12092 = vmatprep.mubr.bf16.mxu0 %v11293_v2  ;;  %v11274_v20 = vpop.f32.mrb[199].mxu0  ;;  %15896 = vtanh.f32 %v19418_v5  ;;  %v15681_v5 = vld [vmem:[%s19642_s6 + $0x240] sm:$0xff]  }
 0x57c   :  { %v15891_v12 = vpop.eup %15890  ;;  %15898 = vtanh.f32 %v19446_v56 }
 0x57d   :  { %14488 = vmatpush3.bf16.msra.mxu1 %v15662_v35  ;;  %14506 = vmatpush3.bf16.msra.mxu0 %v15663_v4  ;;  %v11291_v50 = vpack.c.bf16 %v15891_v12, %v15891_v12  ;;  %v15893_v44 = vpop.eup %15892  ;;  %v19578_v35 = vld [vmem:[%s19646_s10] sm:$0xff] }
 0x57e   :  { %14489 = vmatprep.subr.bf16.mxu1 %v15664_v31  ;;  %14507 = vmatprep.subr.bf16.mxu0 %v15665_v24  ;;  %v11290_v25 = vpack.c.bf16 %v15893_v44, %v15893_v44  ;;  %v11459_v4 = vrot.slane %v19578_v35, %v11458_v48 }
 0x57f   :  { %12052 = vmatprep.mubr.bf16.mxu1 %v11291_v50 }
 0x581   :  { %14490 = vmatpush3.bf16.msra.mxu1 %v15666_v27  ;;  %14508 = vmatpush3.bf16.msra.mxu0 %v15667_v1 }
 0x582   :  { %14491 = vmatprep.subr.bf16.mxu1 %v15668_v32  ;;  %14509 = vmatprep.subr.bf16.mxu0 %v15669_v34 }
 0x584   :  { %v15895_v60 = vpop.eup %15894 }
 0x585   :  { %14492 = vmatpush3.bf16.msra.mxu1 %v15670_v49  ;;  %14510 = vmatpush3.bf16.msra.mxu0 %v15671_v57  ;;  %v11295_v16 = vpack.c.bf16 %v15895_v60, %v15895_v60  ;;  %v15897_v42 = vpop.eup %15896 }
 0x586   :  { %14493 = vmatprep.subr.bf16.mxu1 %v15672_v45  ;;  %14511 = vmatprep.subr.bf16.mxu0 %v15673_v63  ;;  %v11292_v46 = vpack.c.bf16 %v15897_v42, %v15897_v42  ;;  %v15899_v29 = vpop.eup %15898 }
 0x587   :  { %v11294_v9 = vpack.c.bf16 %v15899_v29, %v15899_v29 }
 0x589   :  { %14494 = vmatpush3.bf16.msra.mxu1 %v15674_v19  ;;  %14512 = vmatpush3.bf16.msra.mxu0 %v15675_v38 }
 0x58a   :  { %14495 = vmatprep.subr.bf16.mxu1 %v15676_v14  ;;  %14513 = vmatprep.subr.bf16.mxu0 %v15677_v47 }
 0x58d   :  { %14496 = vmatpush3.bf16.msra.mxu1 %v15678_v13  ;;  %14514 = vmatpush3.bf16.msra.mxu0 %v15679_v10  ;;  %v12140_v13 = vld [vmem:[%s19643_s7] sm:$0xff]  ;;  %v12141_v10 = vld [vmem:[%s19643_s7 + $0x8] sm:$0xff] }
 0x58e   :  { %14515 = vmatprep.subr.bf16.mxu0 %v15680_v58  ;;  %14525 = vmatprep.subr.bf16.mxu1 %v15681_v5 }
 0x590   :  { %12053 = vmatmul.mubr.bf16.vlgmr.msra.gmra.mrb[188].mxu1 %v11290_v25 }
 0x591   :  { %14516 = vmatpush3.bf16.msra.mxu0 %v15682_v7  ;;  %14526 = vmatpush3.bf16.msra.mxu1 %v15683_v53  ;;  %v14610_v7 = vpack.c.bf16 %v12141_v10, %v12140_v13  ;;  %v10907_v53 = vsub.s32 1, %v17687_v30 }
 0x592   :  { %14517 = vmatprep.subr.bf16.mxu0 %v15684_v6  ;;  %14527 = vmatprep.subr.bf16.mxu1 %v15685_v33  ;;  %v12142_v33 = vld [vmem:[%s19643_s7 + $0x10] sm:$0xff] }
 0x593   :  { %12132 = vmatprep.mubr.bf16.mxu1 %v11295_v16  ;;  %v12143_v16 = vld [vmem:[%s19643_s7 + $0x18] sm:$0xff] }
 0x594   :  { %v14613_v42 = vpack.c.bf16 %v12143_v16, %v12142_v33 }
 0x595   :  { %14518 = vmatpush3.bf16.msra.mxu0 %v15686_v43  ;;  %14528 = vmatpush3.bf16.msra.mxu1 %v15687_v3  ;;  %v10908_v43 = vrot.slane %v19578_v35, %v10907_v53 }
 0x596   :  { %14529 = vmatprep.subr.bf16.mxu1 %v15688_v51  ;;  %14606 = vmatprep.subr.bf16.mxu0 %v15931_v36  ;;  %v12299_v51 = vld [vmem:[%s19645_s9] sm:$0xff] }
 0x597   :  { %v10980_v3 = vadd.f32 %v19420_v21, %v10908_v43  ;;  %v12301_v21 = vld [vmem:[%s19645_s9 + $0x10] sm:$0xff] }
 0x598   :  { %12093 = vmatmul.mubr.bf16.vlgmr.msra.gmra.mrb[204].mxu0 %v11292_v46  ;;  %v12300_v46 = vld [vmem:[%s19645_s9 + $0x8] sm:$0xff] }
 0x599   :  { %14530 = vmatpush3.bf16.msra.mxu1 %v15689_v52  ;;  %14575 = vmatprep.mubr.msk.f32.mxu0 %vm15933_vm4, %v15934_v55  ;;  %v14616_v52 = vpack.c.bf16 %v12300_v46, %v12299_v51 }
 0x59a   :  { %14531 = vmatprep.subr.bf16.mxu1 %v15690_v18  ;;  %14608 = vmatpush3.bf16.msra.mxu0 %v14607_v39 }
 0x59b   :  { %14609 = vmatprep.subr.bf16.mxu0 %v15931_v36 }
 0x59d   :  { %14532 = vmatpush3.bf16.msra.mxu1 %v15691_v59 }
 0x59e   :  { %14533 = vmatprep.subr.bf16.mxu1 %v15692_v8 }
 0x5a1   :  { %14534 = vmatpush3.bf16.msra.mxu1 %v15693_v15  ;;  %v12295_v15 = vsub.s32 3, %v17687_v30 }
 0x5a2   :  { %14535 = vmatprep.subr.bf16.mxu1 %v15694_v54 }
 0x5a3   :  { %v12296_v54 = vrot.slane %v19578_v35, %v12295_v15 }
 0x5a5   :  { %14536 = vmatpush3.bf16.msra.mxu1 %v15695_v61 }
 0x5a6   :  { %14537 = vmatprep.subr.bf16.mxu1 %v15696_v62 }
 0x5a9   :  { %14538 = vmatpush3.bf16.msra.mxu1 %v15697_v28 }
 0x5aa   :  { %14539 = vmatprep.subr.bf16.mxu1 %v15698_v17 }
 0x5ad   :  { %14540 = vmatpush3.bf16.msra.mxu1 %v15699_v41  ;;  %v12305_v41 = vsub.s32 4, %v17687_v30 }
 0x5af   :  { %v12306_v29 = vrot.slane %v19578_v35, %v12305_v41 }
 0x5b0   :  { %12133 = vmatmul.mubr.bf16.vlgmr.msra.gmra.mrb[192].mxu1 %v11294_v9 }
 0x643   :  { %v14453_v23 = vpop.f32.mrb[184].mxu1 }
 0x644   :  { %v14454_v0 = vpop.f32.mrb[185].mxu1 }
 0x645   :  { %v14455_v37 = vadd.f32 %v14454_v0, %v14453_v23  ;;  %v14456_v2 = vpop.f32.mrb[186].mxu1 }
 0x646   :  { %v14457_v56 = vpop.f32.mrb[187].mxu1 }
 0x647   :  { %v11975_v24 = vadd.f32 %v14455_v37, %v11459_v4 }
 0x64b   :  { %v14475_v11 = vpop.f32.mrb[200].mxu0 }
 0x64c   :  { %v14476_v31 = vpop.f32.mrb[201].mxu0 }
 0x64d   :  { %v14477_v26 = vadd.f32 %v14476_v31, %v14475_v11  ;;  %v14478_v20 = vpop.f32.mrb[202].mxu0 }
 0x64e   :  { %v14479_v12 = vpop.f32.mrb[203].mxu0 }
 0x64f   :  { %v12015_v50 = vadd.f32 %v14477_v26, %v11975_v24 }
 0x663   :  { %v14497_v27 = vpop.f32.mrb[188].mxu1 }
 0x664   :  { %v14498_v1 = vpop.f32.mrb[189].mxu1 }
 0x665   :  { %v14499_v32 = vadd.f32 %v14498_v1, %v14497_v27  ;;  %v14500_v34 = vpop.f32.mrb[190].mxu1 }
 0x666   :  { %v14501_v49 = vpop.f32.mrb[191].mxu1 }
 0x667   :  { %v12055_v57 = vadd.f32 %v14499_v32, %v12015_v50 }
 0x66b   :  { %v14519_v45 = vpop.f32.mrb[204].mxu0 }
 0x66c   :  { %v14520_v63 = vpop.f32.mrb[205].mxu0 }
 0x66d   :  { %v14521_v19 = vadd.f32 %v14520_v63, %v14519_v45  ;;  %v14522_v38 = vpop.f32.mrb[206].mxu0 }
 0x66e   :  { %v14523_v14 = vpop.f32.mrb[207].mxu0 }
 0x66f   :  { %v12095_v47 = vadd.f32 %v14521_v19, %v12055_v57 }
 0x683   :  { %v14541_v44 = vpop.f32.mrb[192].mxu1 }
 0x684   :  { %v14542_v58 = vpop.f32.mrb[193].mxu1 }
 0x685   :  { %v14543_v5 = vadd.f32 %v14542_v58, %v14541_v44  ;;  %v14544_v60 = vpop.f32.mrb[194].mxu1 }
 0x686   :  { %v14545_v25 = vpop.f32.mrb[195].mxu1 }
 0x687   :  { %v12135_v6 = vadd.f32 %v14543_v5, %v12095_v47 }
 0x689   :  { %14576 = vmatmul.mubr.msk.f32.vlgmr.msra.gmra.mrb[182].mxu0 %vm12146_vm8, %v12135_v6 }
 0x68a   :  { %14611 = vmatpush3.bf16.msra.mxu0 %v14610_v7  ;;  %14586 = vmatprep.mubr.msk.f32.mxu0 %vm15933_vm4, %v15934_v55 }
 0x68b   :  { %14612 = vmatprep.subr.bf16.mxu0 %v15931_v36 }
 0x68e   :  { %14614 = vmatpush3.bf16.msra.mxu0 %v14613_v42 }
 0x68f   :  { %14615 = vmatprep.subr.bf16.mxu0 %v15931_v36 }
 0x691   :  { %14587 = vmatmul.mubr.msk.f32.vlgmr.msra.gmra.mrb[208].mxu0 %vm10909_vm7, %v10980_v3 }
 0x692   :  { %14597 = vmatprep.mubr.msk.f32.mxu0 %vm15933_vm4, %v15934_v55  ;;  %14617 = vmatpush3.bf16.msra.mxu0 %v14616_v52  ;;  %v12302_v55 = vld [vmem:[%s19645_s9 + $0x18] sm:$0xff]  ;;  %s15935_s9 = smov [#allocation2]  }
 0x693   :  { %14618 = vmatprep.subr.bf16.mxu0 %v15931_v36  ;;  %v14619_v18 = vpack.c.bf16 %v12302_v55, %v12301_v21  ;;  %s12399_s28 = sshll.u32 %s15935_s9, 4  ;;  %s12400_s28 = int_to_ptr.vmem [resolvable:$true] %s12399_s28 }
 0x694   :  { %s15905_s1 = scalar_lea.vmem %s12400_s28, 32  ;;  %p15910_p1 = scmp.lt.s32.totalorder %s12400_s28, %s12400_s28 }
 0x695   :  { %p15906_p0 = scmp.ne.s32.totalorder %s12400_s28, %s15905_s1  ;;  %p15911_p2 = scmp.lt.s32.totalorder %s15905_s1, %s15905_s1 }
 0x696   :  { %14620 = vmatpush3.bf16.msra.mxu0 %v14619_v18 }
 0x697   :  { %p15912_p3 = por %p15911_p2, %p15910_p1 }
 0x699   :  { %p15913_p4 = pnand %p15912_p3, %p15906_p0 }
 0x75c   :  { %v12216_v59 = vpop.f32.mrb[182].mxu0 }
 0x75d   :  { %v14577_v8 = vpop.f32.mrb[183].mxu0 }
 0x764   :  { %v12289_v61 = vpop.f32.mrb[208].mxu0 }
 0x765   :  { %v12290_v62 = vadd.f32 %v12289_v61, %v12216_v59  ;;  %v14588_v28 = vpop.f32.mrb[209].mxu0 }
 0x767   :  { %v12297_v36 = vadd.f32 %v12296_v54, %v12290_v62 }
 0x769   :  { %v12298_v17 = vmax.f32 %v12297_v36, 0.0 }
 0x76b   :  { %14598 = vmatmul.mubr.msk.f32.vlgmr.msra.gmra.mrb[210].mxu0 %vm10909_vm7, %v12298_v17 }
 0x83e   :  { %v12376_v9 = vpop.f32.mrb[210].mxu0 }
 0x83f   :  { %v12377_v40 = vadd.f32 %v12376_v9, %v12306_v29  ;;  %v14599_v22 = vpop.f32.mrb[211].mxu0 }
 0x841   :  { %v12381_v39 = vsel %vm12380_vm9, %v12377_v40, -inf }
 0x842   :  { %12382 = vmax.xlane.f32.xlu0 %v12381_v39 }
 0x8cf   :  { %v12383_v23 = vpop.xlane.xlu0 %12382 }
 0x8d0   :  { %v12384_v0 = vsub.f32 %v12377_v40, %v12383_v23 }
 0x8d2   :  { %v12385_v48 = vmul.f32 1.442695, %v12384_v0 }
 0x8d4   :  { %15900 = vpow2.f32 %v12385_v48 }
 0x8de   :  { %v15901_v37 = vpop.eup %15900 }
 0x8df   :  { %v12387_v2 = vsel %vm12380_vm9, %v15901_v37, 0.0 }
 0x8e0   :  { %12388 = vadd.xlane.f32.xlu0 %v12387_v2 }
 0x96d   :  { %v12389_v56 = vpop.xlane.xlu0 %12388 }
 0x96e   :  { %15902 = vrcp.f32 %v12389_v56 }
 0x978   :  { %v15903_v30 = vpop.eup %15902 }
 0x979   :  { %v12391_v35 = vmul.f32 %v15903_v30, %v15901_v37 }
 0x97b   :  { %12392 = vst.msk [vmem:[#allocation2] sm:$0x3] %vm12380_vm9, %v12391_v35 }
 0x97c   :  { %15916 = shalt.err (!%p15913_p4)
}
 0x97d   :  { %s15917_s12 = scalar_lea.hbm %s19647_s11, 32 }
 0x97e   :  { %p15918_p5 = scmp.ne.s32.totalorder %s19647_s11, %s15917_s12  ;;  %p15921_p6 = scmp.lt.u32.totalorder %s15917_s12, %s19647_s11 }
 0x980   :  { %p15923_p7 = pnand %p15921_p6, %p15918_p5 }
 0x982   :  { %15926 = shalt.err (!%p15923_p7)
}
 0x983   :  { %12402 = dma.vmem_to_hbm [thread:$0]  %s12400_s28, 32, %s19647_s11, [#allocation3]  }
 0x984   :  { %15927 = dma.done.wait [#allocation3], 32  }
 0x985   :  { %15928 = vsyncadd [#allocation3], 4294967264 }
 0x986   :  { %12406 = vsyncpa [#allocation3], 1 }

</bundles_post_ra>
